<compile_context>
chip_gen: v7x
topology: tpu7x:2x2x1
jax: 0.10.0
libtpu: 0.0.40
codegen_flags: <defaults>
</compile_context>

<pallas_src>
import jax
import jax.numpy as jnp
from jax.experimental import pallas as pl
from jax.experimental.pallas import tpu as pltpu


# ----------------------------------------------------------------------------
# Fused Pallas kernel: whole DiffusionNetBody trunk, single launch, no grid
# ----------------------------------------------------------------------------
def _diffusion_body_kernel(
    x_in_ref,     # (W, V)    f32  input features (post input-linear), transposed
    evecs_m_ref,  # (V, K)    bf16 mass-weighted eigenvectors (to_basis operand)
    opsT_ref,     # (K, 3V)   bf16 [evecs | grad_re | grad_im]^T
    coefs_ref,    # (B, W, K) f32  per-block diffusion coefficients (transposed)
    a2_ref,       # (B, 2W, W) bf16 per-block [A_re^T ; A_im^T]
    w0_ref,       # (B, W, 3W) bf16 per-block MLP layer-0^T (concat folded)
    b0_ref,       # (B, W, 1)  f32
    w1_ref,       # (B, W, W)  bf16
    b1_ref,       # (B, W, 1)  f32
    w2_ref,       # (B, W, W)  bf16
    b2_ref,       # (B, W, 1)  f32
    o_ref,        # (W, V)    f32  output feature state (transposed)
):
    f32, bf16 = jnp.float32, jnp.bfloat16
    W, V = o_ref.shape
    num_blocks = coefs_ref.shape[0]

    evecs_m = evecs_m_ref[...]     # (V, K)  bf16, loaded once
    opsT = opsT_ref[...]           # (K, 3V) bf16, loaded once

    def block_body(b, x0):         # x0: (W, V) f32, carried in vregs
        # --- geometry.to_basis (mass folded): x_spec^T = x0^T @ (mass * evecs)
        x_spec = jnp.dot(x0.astype(bf16), evecs_m,
                         preferred_element_type=f32)              # (W, K)

        # --- LaplacianBlock: spectral diffusion (coefs precomputed on host)
        x_spec = coefs_ref[b] * x_spec                            # (W, K) f32

        # --- from_basis + cmatvecmul_stacked as ONE lane-dense matmul
        stacked = jnp.dot(x_spec.astype(bf16), opsT,
                          preferred_element_type=f32)             # (W, 3V)
        x_lap = stacked[:, :V]                                    # evecs part
        g2 = stacked[:, V:]                                       # (W, 2V) = [g_re | g_im]
        g_re = g2[:, :V]
        g_im = g2[:, V:]

        # --- PairwiseDot: single (2W,W)@(W,2V) matmul + tanh
        pq = jnp.dot(a2_ref[b], g2.astype(bf16),
                     preferred_element_type=f32)                  # (2W, 2V)
        b_re = pq[:W, :V] - pq[W:, V:]                            # A_re@g_re - A_im@g_im
        b_im = pq[:W, V:] + pq[W:, :V]                            # A_re@g_im + A_im@g_re
        dots = jnp.tanh(g_re * b_re + g_im * b_im)                # (W, V)

        # --- MiniMLP on sublane-stacked concat [x0 ; x_lap ; dots]
        comb = jnp.concatenate([x0, x_lap, dots], axis=0).astype(bf16)  # (3W, V)
        h = jnp.dot(w0_ref[b], comb, preferred_element_type=f32) + b0_ref[b]
        h = jnp.maximum(h, 0.0)
        h = jnp.dot(w1_ref[b], h.astype(bf16),
                    preferred_element_type=f32) + b1_ref[b]
        h = jnp.maximum(h, 0.0)
        out = jnp.dot(w2_ref[b], h.astype(bf16),
                      preferred_element_type=f32) + b2_ref[b]

        return out + x0                                           # residual

    o_ref[...] = jax.lax.fori_loop(0, num_blocks, block_body,
                                   x_in_ref[...], unroll=True)


# ----------------------------------------------------------------------------
# Plain-JAX glue
# ----------------------------------------------------------------------------
def normalize_positions(verts):
    # geometry.normalize_positions: center, divide by max vertex norm
    verts = verts - jnp.mean(verts, axis=-2, keepdims=True)
    scale = jnp.max(jnp.linalg.norm(verts, axis=-1), axis=-1,
                    keepdims=True)[..., None]
    return verts / scale


def _stack_block_params(params, evals):
    """Stack per-block params to (num_blocks, ...), transposed & bf16 for MXU."""
    W = params["W_in"].shape[1]
    bf16 = jnp.bfloat16
    coefs, a2, w0, b0, w1, b1, w2, b2 = [], [], [], [], [], [], [], []
    for p in params["blocks"]:
        # transposed diffusion coefficients: (W, K), kept f32 (elementwise use)
        coefs.append(jnp.exp(-jnp.abs(p["dt"])[:, None] * evals[None, :]))
        a2.append(jnp.concatenate([p["A_re"].T, p["A_im"].T], axis=0).astype(bf16))
        w0.append(p["W0"].T.astype(bf16))
        b0.append(p["b0"].reshape(W, 1))
        w1.append(p["W1"].T.astype(bf16))
        b1.append(p["b1"].reshape(W, 1))
        w2.append(p["W2"].T.astype(bf16))
        b2.append(p["b2"].reshape(W, 1))
    return (jnp.stack(coefs), jnp.stack(a2), jnp.stack(w0), jnp.stack(b0),
            jnp.stack(w1), jnp.stack(b1), jnp.stack(w2), jnp.stack(b2))


def diffusion_net_body(params, verts, mass, evals, evecs, grad_re, grad_im):
    # tqdm in the torch forward is a no-op progress wrapper; dropout is off
    # (default dropout=False in DiffusionNetBody).
    V, K = evecs.shape
    W = params["W_in"].shape[1]
    num_blocks = len(params["blocks"])

    # Input linear in plain JAX ((V,3)@(3,W) is tiny); state kept transposed.
    x_in = jnp.dot(normalize_positions(verts), params["W_in"]) + params["b_in"]
    x_inT = x_in.T.astype(jnp.float32)                          # (W, V)

    # Geometry operators, transposed so the lane axis is V / 3V, bf16 operands.
    evecs_m = (mass[:, None] * evecs).astype(jnp.bfloat16)      # (V, K)
    opsT = jnp.concatenate([evecs.T, grad_re.T, grad_im.T],
                           axis=1).astype(jnp.bfloat16)         # (K, 3V)

    stacked_w = _stack_block_params(params, evals)
    operands = (x_inT, evecs_m, opsT) + stacked_w

    flops = num_blocks * (2 * W * V * K                # to_basis
                          + 2 * W * K * 3 * V          # from_basis + grads
                          + 2 * (2 * W) * W * (2 * V)  # PairwiseDot
                          + 2 * W * (3 * W) * V        # MLP layer 0
                          + 2 * 2 * W * W * V)         # MLP layers 1, 2
    bytes_accessed = (sum(int(a.size) * a.dtype.itemsize for a in operands)
                      + V * W * 4)

    outT = pl.pallas_call(
        _diffusion_body_kernel,
        out_shape=jax.ShapeDtypeStruct((W, V), jnp.float32),
        compiler_params=pltpu.CompilerParams(
            vmem_limit_bytes=16 * 1024 * 1024,   # real footprint ~0.3 MB
        ),
        cost_estimate=pl.CostEstimate(
            flops=flops,
            transcendentals=num_blocks * V * W,
            bytes_accessed=bytes_accessed,
        ),
    )(*operands)

    return outT.T                                    # (V, W), torch layout


# ----------------------------------------------------------------------------
# Parameter init (deterministic synthetic). Linear weights stored in "x @ W"
# form (already transposed relative to torch nn.Linear.weight).
# ----------------------------------------------------------------------------
def init_params(key, input_size=3, width=32, num_blocks=4):
    keys = jax.random.split(key, 1 + num_blocks)

    def lin(k, fan_in, fan_out):
        return (jax.random.normal(k, (fan_in, fan_out), jnp.float32)
                / jnp.sqrt(jnp.float32(fan_in)))

    k_in = jax.random.split(keys[0], 2)
    params = {
        "W_in": lin(k_in[0], input_size, width),
        "b_in": jax.random.normal(k_in[1], (1, width), jnp.float32) * 0.01,
        "blocks": [],
    }
    for i in range(num_blocks):
        ks = jax.random.split(keys[1 + i], 8)
        params["blocks"].append({
            # nn.init.constant_(diffusion_time, 0.0001)
            "dt": jnp.full((width,), 1e-4, jnp.float32),
            "A_re": lin(ks[1], width, width),
            "A_im": lin(ks[2], width, width),
            "W0": lin(ks[0], 3 * width, width),
            "b0": jax.random.normal(ks[3], (width,), jnp.float32) * 0.01,
            "W1": lin(ks[4], width, width),
            "b1": jax.random.normal(ks[5], (width,), jnp.float32) * 0.01,
            "W2": lin(ks[6], width, width),
            "b2": jax.random.normal(ks[7], (width,), jnp.float32) * 0.01,
        })
    return params


# ----------------------------------------------------------------------------
# Pure-JAX reference (faithful to the torch module, HIGHEST precision, f32)
# ----------------------------------------------------------------------------
def reference(params, verts, mass, evals, evecs, grad_re, grad_im):
    hp = jax.lax.Precision.HIGHEST
    x0 = normalize_positions(verts)
    x0 = jnp.dot(x0, params["W_in"], precision=hp) + params["b_in"]
    for p in params["blocks"]:
        x_m = x0 * mass[:, None]
        x_spec = jnp.dot(evecs.T, x_m, precision=hp)
        coefs = jnp.exp(-evals[:, None] * jnp.abs(p["dt"])[None, :])
        x_spec = coefs * x_spec
        x_lap = jnp.dot(evecs, x_spec, precision=hp)
        g_re = jnp.dot(grad_re, x_spec, precision=hp)
        g_im = jnp.dot(grad_im, x_spec, precision=hp)
        b_re = (jnp.dot(g_re, p["A_re"], precision=hp)
                - jnp.dot(g_im, p["A_im"], precision=hp))
        b_im = (jnp.dot(g_im, p["A_re"], precision=hp)
                + jnp.dot(g_re, p["A_im"], precision=hp))
        dots = jnp.tanh(g_re * b_re + g_im * b_im)
        comb = jnp.concatenate([x0, x_lap, dots], axis=-1)
        h = jax.nn.relu(jnp.dot(comb, p["W0"], precision=hp) + p["b0"][None, :])
        h = jax.nn.relu(jnp.dot(h, p["W1"], precision=hp) + p["b1"][None, :])
        out = jnp.dot(h, p["W2"], precision=hp) + p["b2"][None, :]
        x0 = out + x0
    return x0


# ----------------------------------------------------------------------------
if __name__ == "__main__":
    V, K, width, input_size, num_blocks = 256, 64, 32, 3, 4

    key = jax.random.PRNGKey(0)
    k_param, k_v, k_m, k_e, k_ev, k_gr, k_gi = jax.random.split(key, 7)

    params = init_params(k_param, input_size=input_size, width=width,
                         num_blocks=num_blocks)

    verts = jax.random.normal(k_v, (V, input_size), jnp.float32)
    mass = jax.random.uniform(k_m, (V,), jnp.float32, minval=0.5, maxval=1.5)
    evals = jnp.sort(jax.random.uniform(k_e, (K,), jnp.float32,
                                        minval=0.0, maxval=10.0))
    evecs = jax.random.normal(k_ev, (V, K), jnp.float32) / jnp.sqrt(float(V))
    # grad_from_spectral: complex (V, K) operator stored as stacked real/imag.
    grad_re = jax.random.normal(k_gr, (V, K), jnp.float32) / jnp.sqrt(float(K))
    grad_im = jax.random.normal(k_gi, (V, K), jnp.float32) / jnp.sqrt(float(K))

    fwd = jax.jit(diffusion_net_body)
    out = fwd(params, verts, mass, evals, evecs, grad_re, grad_im)
    out = jax.block_until_ready(out)

    ref = reference(params, verts, mass, evals, evecs, grad_re, grad_im)

    assert out.shape == (V, width)
    assert bool(jnp.all(jnp.isfinite(out)))
    # bf16 matmul operands with f32 accumulation -> loose tolerance vs f32 ref.
    assert bool(jnp.allclose(out, ref, atol=5e-2, rtol=5e-2))
    print("KERNEL_OK")
</pallas_src>

<mosaic_0001>
module attributes {stable_mosaic.version = 11 : i64} {
  func.func @_diffusion_body_kernel(%arg0: memref<32x256xf32, #tpu.memory_space<vmem>>, %arg1: memref<256x64xbf16, #tpu.memory_space<vmem>>, %arg2: memref<64x768xbf16, #tpu.memory_space<vmem>>, %arg3: memref<4x32x64xf32, #tpu.memory_space<vmem>>, %arg4: memref<4x64x32xbf16, #tpu.memory_space<vmem>>, %arg5: memref<4x32x96xbf16, #tpu.memory_space<vmem>>, %arg6: memref<4x32x1xf32, #tpu.memory_space<vmem>>, %arg7: memref<4x32x32xbf16, #tpu.memory_space<vmem>>, %arg8: memref<4x32x1xf32, #tpu.memory_space<vmem>>, %arg9: memref<4x32x32xbf16, #tpu.memory_space<vmem>>, %arg10: memref<4x32x1xf32, #tpu.memory_space<vmem>>, %arg11: memref<32x256xf32, #tpu.memory_space<vmem>>) attributes {dimension_semantics = [], scalar_prefetch = 0 : i64, scratch_operands = 0 : i64, tpu.core_type = #tpu.core_type<tc>} {
    %c0 = arith.constant 0 : index
    %c0_0 = arith.constant 0 : index
    %0 = vector.load %arg1[%c0, %c0_0] : memref<256x64xbf16, #tpu.memory_space<vmem>>, vector<256x64xbf16>
    %c0_1 = arith.constant 0 : index
    %c0_2 = arith.constant 0 : index
    %1 = vector.load %arg2[%c0_1, %c0_2] : memref<64x768xbf16, #tpu.memory_space<vmem>>, vector<64x768xbf16>
    %c0_3 = arith.constant 0 : index
    %c0_4 = arith.constant 0 : index
    %2 = vector.load %arg0[%c0_3, %c0_4] : memref<32x256xf32, #tpu.memory_space<vmem>>, vector<32x256xf32>
    %c0_i32 = arith.constant 0 : i32
    %3 = arith.truncf %2 : vector<32x256xf32> to vector<32x256xbf16>
    %cst = arith.constant dense<0.000000e+00> : vector<32x64xf32>
    %4 = tpu.matmul %3, %0, %cst {dimension_numbers = #tpu.dot_dimension_numbers<[1], [0], [0], [1], [0, 0, 1, 1], [], []>} : vector<32x256xbf16>, vector<256x64xbf16>, vector<32x64xf32> -> vector<32x64xf32>
    %5 = arith.index_cast %c0_i32 : i32 to index
    %c0_5 = arith.constant 0 : index
    %c0_6 = arith.constant 0 : index
    %6 = vector.load %arg3[%5, %c0_5, %c0_6] : memref<4x32x64xf32, #tpu.memory_space<vmem>>, vector<1x32x64xf32>
    %7 = vector.shape_cast %6 : vector<1x32x64xf32> to vector<32x64xf32>
    %8 = arith.mulf %7, %4 : vector<32x64xf32>
    %9 = arith.truncf %8 : vector<32x64xf32> to vector<32x64xbf16>
    %cst_7 = arith.constant dense<0.000000e+00> : vector<32x768xf32>
    %10 = tpu.matmul %9, %1, %cst_7 {dimension_numbers = #tpu.dot_dimension_numbers<[1], [0], [0], [1], [0, 0, 1, 1], [], []>} : vector<32x64xbf16>, vector<64x768xbf16>, vector<32x768xf32> -> vector<32x768xf32>
    %11 = vector.extract_strided_slice %10 {offsets = [0, 0], sizes = [32, 256], strides = [1, 1]} : vector<32x768xf32> to vector<32x256xf32>
    %12 = vector.extract_strided_slice %10 {offsets = [0, 256], sizes = [32, 512], strides = [1, 1]} : vector<32x768xf32> to vector<32x512xf32>
    %13 = vector.extract_strided_slice %12 {offsets = [0, 0], sizes = [32, 256], strides = [1, 1]} : vector<32x512xf32> to vector<32x256xf32>
    %14 = vector.extract_strided_slice %12 {offsets = [0, 256], sizes = [32, 256], strides = [1, 1]} : vector<32x512xf32> to vector<32x256xf32>
    %15 = arith.index_cast %c0_i32 : i32 to index
    %c0_8 = arith.constant 0 : index
    %c0_9 = arith.constant 0 : index
    %16 = vector.load %arg4[%15, %c0_8, %c0_9] : memref<4x64x32xbf16, #tpu.memory_space<vmem>>, vector<1x64x32xbf16>
    %17 = vector.shape_cast %16 : vector<1x64x32xbf16> to vector<64x32xbf16>
    %18 = arith.truncf %12 : vector<32x512xf32> to vector<32x512xbf16>
    %cst_10 = arith.constant dense<0.000000e+00> : vector<64x512xf32>
    %19 = tpu.matmul %17, %18, %cst_10 {dimension_numbers = #tpu.dot_dimension_numbers<[1], [0], [0], [1], [0, 0, 1, 1], [], []>} : vector<64x32xbf16>, vector<32x512xbf16>, vector<64x512xf32> -> vector<64x512xf32>
    %20 = vector.extract_strided_slice %19 {offsets = [0, 0], sizes = [32, 256], strides = [1, 1]} : vector<64x512xf32> to vector<32x256xf32>
    %21 = vector.extract_strided_slice %19 {offsets = [32, 256], sizes = [32, 256], strides = [1, 1]} : vector<64x512xf32> to vector<32x256xf32>
    %22 = arith.subf %20, %21 : vector<32x256xf32>
    %23 = vector.extract_strided_slice %19 {offsets = [0, 256], sizes = [32, 256], strides = [1, 1]} : vector<64x512xf32> to vector<32x256xf32>
    %24 = vector.extract_strided_slice %19 {offsets = [32, 0], sizes = [32, 256], strides = [1, 1]} : vector<64x512xf32> to vector<32x256xf32>
    %25 = arith.addf %23, %24 : vector<32x256xf32>
    %26 = arith.mulf %13, %22 : vector<32x256xf32>
    %27 = arith.mulf %14, %25 : vector<32x256xf32>
    %28 = arith.addf %26, %27 : vector<32x256xf32>
    %29 = math.tanh %28 : vector<32x256xf32>
    %30 = tpu.concatenate %2, %11, %29 in 0 : vector<32x256xf32>, vector<32x256xf32>, vector<32x256xf32> -> vector<96x256xf32>
    %31 = arith.truncf %30 : vector<96x256xf32> to vector<96x256xbf16>
    %32 = arith.index_cast %c0_i32 : i32 to index
    %c0_11 = arith.constant 0 : index
    %c0_12 = arith.constant 0 : index
    %33 = vector.load %arg5[%32, %c0_11, %c0_12] : memref<4x32x96xbf16, #tpu.memory_space<vmem>>, vector<1x32x96xbf16>
    %34 = vector.shape_cast %33 : vector<1x32x96xbf16> to vector<32x96xbf16>
    %cst_13 = arith.constant dense<0.000000e+00> : vector<32x256xf32>
    %35 = tpu.matmul %34, %31, %cst_13 {dimension_numbers = #tpu.dot_dimension_numbers<[1], [0], [0], [1], [0, 0, 1, 1], [], []>} : vector<32x96xbf16>, vector<96x256xbf16>, vector<32x256xf32> -> vector<32x256xf32>
    %36 = arith.index_cast %c0_i32 : i32 to index
    %c0_14 = arith.constant 0 : index
    %c0_15 = arith.constant 0 : index
    %37 = vector.load %arg6[%36, %c0_14, %c0_15] : memref<4x32x1xf32, #tpu.memory_space<vmem>>, vector<1x32x1xf32>
    %38 = vector.shape_cast %37 : vector<1x32x1xf32> to vector<32x1xf32>
    %39 = vector.broadcast %38 : vector<32x1xf32> to vector<32x256xf32>
    %40 = arith.addf %35, %39 : vector<32x256xf32>
    %cst_16 = arith.constant 0.000000e+00 : f32
    %41 = vector.broadcast %cst_16 : f32 to vector<32x256xf32>
    %42 = arith.maximumf %40, %41 : vector<32x256xf32>
    %43 = arith.index_cast %c0_i32 : i32 to index
    %c0_17 = arith.constant 0 : index
    %c0_18 = arith.constant 0 : index
    %44 = vector.load %arg7[%43, %c0_17, %c0_18] : memref<4x32x32xbf16, #tpu.memory_space<vmem>>, vector<1x32x32xbf16>
    %45 = vector.shape_cast %44 : vector<1x32x32xbf16> to vector<32x32xbf16>
    %46 = arith.truncf %42 : vector<32x256xf32> to vector<32x256xbf16>
    %cst_19 = arith.constant dense<0.000000e+00> : vector<32x256xf32>
    %47 = tpu.matmul %45, %46, %cst_19 {dimension_numbers = #tpu.dot_dimension_numbers<[1], [0], [0], [1], [0, 0, 1, 1], [], []>} : vector<32x32xbf16>, vector<32x256xbf16>, vector<32x256xf32> -> vector<32x256xf32>
    %48 = arith.index_cast %c0_i32 : i32 to index
    %c0_20 = arith.constant 0 : index
    %c0_21 = arith.constant 0 : index
    %49 = vector.load %arg8[%48, %c0_20, %c0_21] : memref<4x32x1xf32, #tpu.memory_space<vmem>>, vector<1x32x1xf32>
    %50 = vector.shape_cast %49 : vector<1x32x1xf32> to vector<32x1xf32>
    %51 = vector.broadcast %50 : vector<32x1xf32> to vector<32x256xf32>
    %52 = arith.addf %47, %51 : vector<32x256xf32>
    %cst_22 = arith.constant 0.000000e+00 : f32
    %53 = vector.broadcast %cst_22 : f32 to vector<32x256xf32>
    %54 = arith.maximumf %52, %53 : vector<32x256xf32>
    %55 = arith.index_cast %c0_i32 : i32 to index
    %c0_23 = arith.constant 0 : index
    %c0_24 = arith.constant 0 : index
    %56 = vector.load %arg9[%55, %c0_23, %c0_24] : memref<4x32x32xbf16, #tpu.memory_space<vmem>>, vector<1x32x32xbf16>
    %57 = vector.shape_cast %56 : vector<1x32x32xbf16> to vector<32x32xbf16>
    %58 = arith.truncf %54 : vector<32x256xf32> to vector<32x256xbf16>
    %cst_25 = arith.constant dense<0.000000e+00> : vector<32x256xf32>
    %59 = tpu.matmul %57, %58, %cst_25 {dimension_numbers = #tpu.dot_dimension_numbers<[1], [0], [0], [1], [0, 0, 1, 1], [], []>} : vector<32x32xbf16>, vector<32x256xbf16>, vector<32x256xf32> -> vector<32x256xf32>
    %60 = arith.index_cast %c0_i32 : i32 to index
    %c0_26 = arith.constant 0 : index
    %c0_27 = arith.constant 0 : index
    %61 = vector.load %arg10[%60, %c0_26, %c0_27] : memref<4x32x1xf32, #tpu.memory_space<vmem>>, vector<1x32x1xf32>
    %62 = vector.shape_cast %61 : vector<1x32x1xf32> to vector<32x1xf32>
    %63 = vector.broadcast %62 : vector<32x1xf32> to vector<32x256xf32>
    %64 = arith.addf %59, %63 : vector<32x256xf32>
    %65 = arith.addf %64, %2 : vector<32x256xf32>
    %c1_i32 = arith.constant 1 : i32
    %66 = arith.truncf %65 : vector<32x256xf32> to vector<32x256xbf16>
    %cst_28 = arith.constant dense<0.000000e+00> : vector<32x64xf32>
    %67 = tpu.matmul %66, %0, %cst_28 {dimension_numbers = #tpu.dot_dimension_numbers<[1], [0], [0], [1], [0, 0, 1, 1], [], []>} : vector<32x256xbf16>, vector<256x64xbf16>, vector<32x64xf32> -> vector<32x64xf32>
    %68 = arith.index_cast %c1_i32 : i32 to index
    %c0_29 = arith.constant 0 : index
    %c0_30 = arith.constant 0 : index
    %69 = vector.load %arg3[%68, %c0_29, %c0_30] : memref<4x32x64xf32, #tpu.memory_space<vmem>>, vector<1x32x64xf32>
    %70 = vector.shape_cast %69 : vector<1x32x64xf32> to vector<32x64xf32>
    %71 = arith.mulf %70, %67 : vector<32x64xf32>
    %72 = arith.truncf %71 : vector<32x64xf32> to vector<32x64xbf16>
    %cst_31 = arith.constant dense<0.000000e+00> : vector<32x768xf32>
    %73 = tpu.matmul %72, %1, %cst_31 {dimension_numbers = #tpu.dot_dimension_numbers<[1], [0], [0], [1], [0, 0, 1, 1], [], []>} : vector<32x64xbf16>, vector<64x768xbf16>, vector<32x768xf32> -> vector<32x768xf32>
    %74 = vector.extract_strided_slice %73 {offsets = [0, 0], sizes = [32, 256], strides = [1, 1]} : vector<32x768xf32> to vector<32x256xf32>
    %75 = vector.extract_strided_slice %73 {offsets = [0, 256], sizes = [32, 512], strides = [1, 1]} : vector<32x768xf32> to vector<32x512xf32>
    %76 = vector.extract_strided_slice %75 {offsets = [0, 0], sizes = [32, 256], strides = [1, 1]} : vector<32x512xf32> to vector<32x256xf32>
    %77 = vector.extract_strided_slice %75 {offsets = [0, 256], sizes = [32, 256], strides = [1, 1]} : vector<32x512xf32> to vector<32x256xf32>
    %78 = arith.index_cast %c1_i32 : i32 to index
    %c0_32 = arith.constant 0 : index
    %c0_33 = arith.constant 0 : index
    %79 = vector.load %arg4[%78, %c0_32, %c0_33] : memref<4x64x32xbf16, #tpu.memory_space<vmem>>, vector<1x64x32xbf16>
    %80 = vector.shape_cast %79 : vector<1x64x32xbf16> to vector<64x32xbf16>
    %81 = arith.truncf %75 : vector<32x512xf32> to vector<32x512xbf16>
    %cst_34 = arith.constant dense<0.000000e+00> : vector<64x512xf32>
    %82 = tpu.matmul %80, %81, %cst_34 {dimension_numbers = #tpu.dot_dimension_numbers<[1], [0], [0], [1], [0, 0, 1, 1], [], []>} : vector<64x32xbf16>, vector<32x512xbf16>, vector<64x512xf32> -> vector<64x512xf32>
    %83 = vector.extract_strided_slice %82 {offsets = [0, 0], sizes = [32, 256], strides = [1, 1]} : vector<64x512xf32> to vector<32x256xf32>
    %84 = vector.extract_strided_slice %82 {offsets = [32, 256], sizes = [32, 256], strides = [1, 1]} : vector<64x512xf32> to vector<32x256xf32>
    %85 = arith.subf %83, %84 : vector<32x256xf32>
    %86 = vector.extract_strided_slice %82 {offsets = [0, 256], sizes = [32, 256], strides = [1, 1]} : vector<64x512xf32> to vector<32x256xf32>
    %87 = vector.extract_strided_slice %82 {offsets = [32, 0], sizes = [32, 256], strides = [1, 1]} : vector<64x512xf32> to vector<32x256xf32>
    %88 = arith.addf %86, %87 : vector<32x256xf32>
    %89 = arith.mulf %76, %85 : vector<32x256xf32>
    %90 = arith.mulf %77, %88 : vector<32x256xf32>
    %91 = arith.addf %89, %90 : vector<32x256xf32>
    %92 = math.tanh %91 : vector<32x256xf32>
    %93 = tpu.concatenate %65, %74, %92 in 0 : vector<32x256xf32>, vector<32x256xf32>, vector<32x256xf32> -> vector<96x256xf32>
    %94 = arith.truncf %93 : vector<96x256xf32> to vector<96x256xbf16>
    %95 = arith.index_cast %c1_i32 : i32 to index
    %c0_35 = arith.constant 0 : index
    %c0_36 = arith.constant 0 : index
    %96 = vector.load %arg5[%95, %c0_35, %c0_36] : memref<4x32x96xbf16, #tpu.memory_space<vmem>>, vector<1x32x96xbf16>
    %97 = vector.shape_cast %96 : vector<1x32x96xbf16> to vector<32x96xbf16>
    %cst_37 = arith.constant dense<0.000000e+00> : vector<32x256xf32>
    %98 = tpu.matmul %97, %94, %cst_37 {dimension_numbers = #tpu.dot_dimension_numbers<[1], [0], [0], [1], [0, 0, 1, 1], [], []>} : vector<32x96xbf16>, vector<96x256xbf16>, vector<32x256xf32> -> vector<32x256xf32>
    %99 = arith.index_cast %c1_i32 : i32 to index
    %c0_38 = arith.constant 0 : index
    %c0_39 = arith.constant 0 : index
    %100 = vector.load %arg6[%99, %c0_38, %c0_39] : memref<4x32x1xf32, #tpu.memory_space<vmem>>, vector<1x32x1xf32>
    %101 = vector.shape_cast %100 : vector<1x32x1xf32> to vector<32x1xf32>
    %102 = vector.broadcast %101 : vector<32x1xf32> to vector<32x256xf32>
    %103 = arith.addf %98, %102 : vector<32x256xf32>
    %cst_40 = arith.constant 0.000000e+00 : f32
    %104 = vector.broadcast %cst_40 : f32 to vector<32x256xf32>
    %105 = arith.maximumf %103, %104 : vector<32x256xf32>
    %106 = arith.index_cast %c1_i32 : i32 to index
    %c0_41 = arith.constant 0 : index
    %c0_42 = arith.constant 0 : index
    %107 = vector.load %arg7[%106, %c0_41, %c0_42] : memref<4x32x32xbf16, #tpu.memory_space<vmem>>, vector<1x32x32xbf16>
    %108 = vector.shape_cast %107 : vector<1x32x32xbf16> to vector<32x32xbf16>
    %109 = arith.truncf %105 : vector<32x256xf32> to vector<32x256xbf16>
    %cst_43 = arith.constant dense<0.000000e+00> : vector<32x256xf32>
    %110 = tpu.matmul %108, %109, %cst_43 {dimension_numbers = #tpu.dot_dimension_numbers<[1], [0], [0], [1], [0, 0, 1, 1], [], []>} : vector<32x32xbf16>, vector<32x256xbf16>, vector<32x256xf32> -> vector<32x256xf32>
    %111 = arith.index_cast %c1_i32 : i32 to index
    %c0_44 = arith.constant 0 : index
    %c0_45 = arith.constant 0 : index
    %112 = vector.load %arg8[%111, %c0_44, %c0_45] : memref<4x32x1xf32, #tpu.memory_space<vmem>>, vector<1x32x1xf32>
    %113 = vector.shape_cast %112 : vector<1x32x1xf32> to vector<32x1xf32>
    %114 = vector.broadcast %113 : vector<32x1xf32> to vector<32x256xf32>
    %115 = arith.addf %110, %114 : vector<32x256xf32>
    %cst_46 = arith.constant 0.000000e+00 : f32
    %116 = vector.broadcast %cst_46 : f32 to vector<32x256xf32>
    %117 = arith.maximumf %115, %116 : vector<32x256xf32>
    %118 = arith.index_cast %c1_i32 : i32 to index
    %c0_47 = arith.constant 0 : index
    %c0_48 = arith.constant 0 : index
    %119 = vector.load %arg9[%118, %c0_47, %c0_48] : memref<4x32x32xbf16, #tpu.memory_space<vmem>>, vector<1x32x32xbf16>
    %120 = vector.shape_cast %119 : vector<1x32x32xbf16> to vector<32x32xbf16>
    %121 = arith.truncf %117 : vector<32x256xf32> to vector<32x256xbf16>
    %cst_49 = arith.constant dense<0.000000e+00> : vector<32x256xf32>
    %122 = tpu.matmul %120, %121, %cst_49 {dimension_numbers = #tpu.dot_dimension_numbers<[1], [0], [0], [1], [0, 0, 1, 1], [], []>} : vector<32x32xbf16>, vector<32x256xbf16>, vector<32x256xf32> -> vector<32x256xf32>
    %123 = arith.index_cast %c1_i32 : i32 to index
    %c0_50 = arith.constant 0 : index
    %c0_51 = arith.constant 0 : index
    %124 = vector.load %arg10[%123, %c0_50, %c0_51] : memref<4x32x1xf32, #tpu.memory_space<vmem>>, vector<1x32x1xf32>
    %125 = vector.shape_cast %124 : vector<1x32x1xf32> to vector<32x1xf32>
    %126 = vector.broadcast %125 : vector<32x1xf32> to vector<32x256xf32>
    %127 = arith.addf %122, %126 : vector<32x256xf32>
    %128 = arith.addf %127, %65 : vector<32x256xf32>
    %c2_i32 = arith.constant 2 : i32
    %129 = arith.truncf %128 : vector<32x256xf32> to vector<32x256xbf16>
    %cst_52 = arith.constant dense<0.000000e+00> : vector<32x64xf32>
    %130 = tpu.matmul %129, %0, %cst_52 {dimension_numbers = #tpu.dot_dimension_numbers<[1], [0], [0], [1], [0, 0, 1, 1], [], []>} : vector<32x256xbf16>, vector<256x64xbf16>, vector<32x64xf32> -> vector<32x64xf32>
    %131 = arith.index_cast %c2_i32 : i32 to index
    %c0_53 = arith.constant 0 : index
    %c0_54 = arith.constant 0 : index
    %132 = vector.load %arg3[%131, %c0_53, %c0_54] : memref<4x32x64xf32, #tpu.memory_space<vmem>>, vector<1x32x64xf32>
    %133 = vector.shape_cast %132 : vector<1x32x64xf32> to vector<32x64xf32>
    %134 = arith.mulf %133, %130 : vector<32x64xf32>
    %135 = arith.truncf %134 : vector<32x64xf32> to vector<32x64xbf16>
    %cst_55 = arith.constant dense<0.000000e+00> : vector<32x768xf32>
    %136 = tpu.matmul %135, %1, %cst_55 {dimension_numbers = #tpu.dot_dimension_numbers<[1], [0], [0], [1], [0, 0, 1, 1], [], []>} : vector<32x64xbf16>, vector<64x768xbf16>, vector<32x768xf32> -> vector<32x768xf32>
    %137 = vector.extract_strided_slice %136 {offsets = [0, 0], sizes = [32, 256], strides = [1, 1]} : vector<32x768xf32> to vector<32x256xf32>
    %138 = vector.extract_strided_slice %136 {offsets = [0, 256], sizes = [32, 512], strides = [1, 1]} : vector<32x768xf32> to vector<32x512xf32>
    %139 = vector.extract_strided_slice %138 {offsets = [0, 0], sizes = [32, 256], strides = [1, 1]} : vector<32x512xf32> to vector<32x256xf32>
    %140 = vector.extract_strided_slice %138 {offsets = [0, 256], sizes = [32, 256], strides = [1, 1]} : vector<32x512xf32> to vector<32x256xf32>
    %141 = arith.index_cast %c2_i32 : i32 to index
    %c0_56 = arith.constant 0 : index
    %c0_57 = arith.constant 0 : index
    %142 = vector.load %arg4[%141, %c0_56, %c0_57] : memref<4x64x32xbf16, #tpu.memory_space<vmem>>, vector<1x64x32xbf16>
    %143 = vector.shape_cast %142 : vector<1x64x32xbf16> to vector<64x32xbf16>
    %144 = arith.truncf %138 : vector<32x512xf32> to vector<32x512xbf16>
    %cst_58 = arith.constant dense<0.000000e+00> : vector<64x512xf32>
    %145 = tpu.matmul %143, %144, %cst_58 {dimension_numbers = #tpu.dot_dimension_numbers<[1], [0], [0], [1], [0, 0, 1, 1], [], []>} : vector<64x32xbf16>, vector<32x512xbf16>, vector<64x512xf32> -> vector<64x512xf32>
    %146 = vector.extract_strided_slice %145 {offsets = [0, 0], sizes = [32, 256], strides = [1, 1]} : vector<64x512xf32> to vector<32x256xf32>
    %147 = vector.extract_strided_slice %145 {offsets = [32, 256], sizes = [32, 256], strides = [1, 1]} : vector<64x512xf32> to vector<32x256xf32>
    %148 = arith.subf %146, %147 : vector<32x256xf32>
    %149 = vector.extract_strided_slice %145 {offsets = [0, 256], sizes = [32, 256], strides = [1, 1]} : vector<64x512xf32> to vector<32x256xf32>
    %150 = vector.extract_strided_slice %145 {offsets = [32, 0], sizes = [32, 256], strides = [1, 1]} : vector<64x512xf32> to vector<32x256xf32>
    %151 = arith.addf %149, %150 : vector<32x256xf32>
    %152 = arith.mulf %139, %148 : vector<32x256xf32>
    %153 = arith.mulf %140, %151 : vector<32x256xf32>
    %154 = arith.addf %152, %153 : vector<32x256xf32>
    %155 = math.tanh %154 : vector<32x256xf32>
    %156 = tpu.concatenate %128, %137, %155 in 0 : vector<32x256xf32>, vector<32x256xf32>, vector<32x256xf32> -> vector<96x256xf32>
    %157 = arith.truncf %156 : vector<96x256xf32> to vector<96x256xbf16>
    %158 = arith.index_cast %c2_i32 : i32 to index
    %c0_59 = arith.constant 0 : index
    %c0_60 = arith.constant 0 : index
    %159 = vector.load %arg5[%158, %c0_59, %c0_60] : memref<4x32x96xbf16, #tpu.memory_space<vmem>>, vector<1x32x96xbf16>
    %160 = vector.shape_cast %159 : vector<1x32x96xbf16> to vector<32x96xbf16>
    %cst_61 = arith.constant dense<0.000000e+00> : vector<32x256xf32>
    %161 = tpu.matmul %160, %157, %cst_61 {dimension_numbers = #tpu.dot_dimension_numbers<[1], [0], [0], [1], [0, 0, 1, 1], [], []>} : vector<32x96xbf16>, vector<96x256xbf16>, vector<32x256xf32> -> vector<32x256xf32>
    %162 = arith.index_cast %c2_i32 : i32 to index
    %c0_62 = arith.constant 0 : index
    %c0_63 = arith.constant 0 : index
    %163 = vector.load %arg6[%162, %c0_62, %c0_63] : memref<4x32x1xf32, #tpu.memory_space<vmem>>, vector<1x32x1xf32>
    %164 = vector.shape_cast %163 : vector<1x32x1xf32> to vector<32x1xf32>
    %165 = vector.broadcast %164 : vector<32x1xf32> to vector<32x256xf32>
    %166 = arith.addf %161, %165 : vector<32x256xf32>
    %cst_64 = arith.constant 0.000000e+00 : f32
    %167 = vector.broadcast %cst_64 : f32 to vector<32x256xf32>
    %168 = arith.maximumf %166, %167 : vector<32x256xf32>
    %169 = arith.index_cast %c2_i32 : i32 to index
    %c0_65 = arith.constant 0 : index
    %c0_66 = arith.constant 0 : index
    %170 = vector.load %arg7[%169, %c0_65, %c0_66] : memref<4x32x32xbf16, #tpu.memory_space<vmem>>, vector<1x32x32xbf16>
    %171 = vector.shape_cast %170 : vector<1x32x32xbf16> to vector<32x32xbf16>
    %172 = arith.truncf %168 : vector<32x256xf32> to vector<32x256xbf16>
    %cst_67 = arith.constant dense<0.000000e+00> : vector<32x256xf32>
    %173 = tpu.matmul %171, %172, %cst_67 {dimension_numbers = #tpu.dot_dimension_numbers<[1], [0], [0], [1], [0, 0, 1, 1], [], []>} : vector<32x32xbf16>, vector<32x256xbf16>, vector<32x256xf32> -> vector<32x256xf32>
    %174 = arith.index_cast %c2_i32 : i32 to index
    %c0_68 = arith.constant 0 : index
    %c0_69 = arith.constant 0 : index
    %175 = vector.load %arg8[%174, %c0_68, %c0_69] : memref<4x32x1xf32, #tpu.memory_space<vmem>>, vector<1x32x1xf32>
    %176 = vector.shape_cast %175 : vector<1x32x1xf32> to vector<32x1xf32>
    %177 = vector.broadcast %176 : vector<32x1xf32> to vector<32x256xf32>
    %178 = arith.addf %173, %177 : vector<32x256xf32>
    %cst_70 = arith.constant 0.000000e+00 : f32
    %179 = vector.broadcast %cst_70 : f32 to vector<32x256xf32>
    %180 = arith.maximumf %178, %179 : vector<32x256xf32>
    %181 = arith.index_cast %c2_i32 : i32 to index
    %c0_71 = arith.constant 0 : index
    %c0_72 = arith.constant 0 : index
    %182 = vector.load %arg9[%181, %c0_71, %c0_72] : memref<4x32x32xbf16, #tpu.memory_space<vmem>>, vector<1x32x32xbf16>
    %183 = vector.shape_cast %182 : vector<1x32x32xbf16> to vector<32x32xbf16>
    %184 = arith.truncf %180 : vector<32x256xf32> to vector<32x256xbf16>
    %cst_73 = arith.constant dense<0.000000e+00> : vector<32x256xf32>
    %185 = tpu.matmul %183, %184, %cst_73 {dimension_numbers = #tpu.dot_dimension_numbers<[1], [0], [0], [1], [0, 0, 1, 1], [], []>} : vector<32x32xbf16>, vector<32x256xbf16>, vector<32x256xf32> -> vector<32x256xf32>
    %186 = arith.index_cast %c2_i32 : i32 to index
    %c0_74 = arith.constant 0 : index
    %c0_75 = arith.constant 0 : index
    %187 = vector.load %arg10[%186, %c0_74, %c0_75] : memref<4x32x1xf32, #tpu.memory_space<vmem>>, vector<1x32x1xf32>
    %188 = vector.shape_cast %187 : vector<1x32x1xf32> to vector<32x1xf32>
    %189 = vector.broadcast %188 : vector<32x1xf32> to vector<32x256xf32>
    %190 = arith.addf %185, %189 : vector<32x256xf32>
    %191 = arith.addf %190, %128 : vector<32x256xf32>
    %c3_i32 = arith.constant 3 : i32
    %192 = arith.truncf %191 : vector<32x256xf32> to vector<32x256xbf16>
    %cst_76 = arith.constant dense<0.000000e+00> : vector<32x64xf32>
    %193 = tpu.matmul %192, %0, %cst_76 {dimension_numbers = #tpu.dot_dimension_numbers<[1], [0], [0], [1], [0, 0, 1, 1], [], []>} : vector<32x256xbf16>, vector<256x64xbf16>, vector<32x64xf32> -> vector<32x64xf32>
    %194 = arith.index_cast %c3_i32 : i32 to index
    %c0_77 = arith.constant 0 : index
    %c0_78 = arith.constant 0 : index
    %195 = vector.load %arg3[%194, %c0_77, %c0_78] : memref<4x32x64xf32, #tpu.memory_space<vmem>>, vector<1x32x64xf32>
    %196 = vector.shape_cast %195 : vector<1x32x64xf32> to vector<32x64xf32>
    %197 = arith.mulf %196, %193 : vector<32x64xf32>
    %198 = arith.truncf %197 : vector<32x64xf32> to vector<32x64xbf16>
    %cst_79 = arith.constant dense<0.000000e+00> : vector<32x768xf32>
    %199 = tpu.matmul %198, %1, %cst_79 {dimension_numbers = #tpu.dot_dimension_numbers<[1], [0], [0], [1], [0, 0, 1, 1], [], []>} : vector<32x64xbf16>, vector<64x768xbf16>, vector<32x768xf32> -> vector<32x768xf32>
    %200 = vector.extract_strided_slice %199 {offsets = [0, 0], sizes = [32, 256], strides = [1, 1]} : vector<32x768xf32> to vector<32x256xf32>
    %201 = vector.extract_strided_slice %199 {offsets = [0, 256], sizes = [32, 512], strides = [1, 1]} : vector<32x768xf32> to vector<32x512xf32>
    %202 = vector.extract_strided_slice %201 {offsets = [0, 0], sizes = [32, 256], strides = [1, 1]} : vector<32x512xf32> to vector<32x256xf32>
    %203 = vector.extract_strided_slice %201 {offsets = [0, 256], sizes = [32, 256], strides = [1, 1]} : vector<32x512xf32> to vector<32x256xf32>
    %204 = arith.index_cast %c3_i32 : i32 to index
    %c0_80 = arith.constant 0 : index
    %c0_81 = arith.constant 0 : index
    %205 = vector.load %arg4[%204, %c0_80, %c0_81] : memref<4x64x32xbf16, #tpu.memory_space<vmem>>, vector<1x64x32xbf16>
    %206 = vector.shape_cast %205 : vector<1x64x32xbf16> to vector<64x32xbf16>
    %207 = arith.truncf %201 : vector<32x512xf32> to vector<32x512xbf16>
    %cst_82 = arith.constant dense<0.000000e+00> : vector<64x512xf32>
    %208 = tpu.matmul %206, %207, %cst_82 {dimension_numbers = #tpu.dot_dimension_numbers<[1], [0], [0], [1], [0, 0, 1, 1], [], []>} : vector<64x32xbf16>, vector<32x512xbf16>, vector<64x512xf32> -> vector<64x512xf32>
    %209 = vector.extract_strided_slice %208 {offsets = [0, 0], sizes = [32, 256], strides = [1, 1]} : vector<64x512xf32> to vector<32x256xf32>
    %210 = vector.extract_strided_slice %208 {offsets = [32, 256], sizes = [32, 256], strides = [1, 1]} : vector<64x512xf32> to vector<32x256xf32>
    %211 = arith.subf %209, %210 : vector<32x256xf32>
    %212 = vector.extract_strided_slice %208 {offsets = [0, 256], sizes = [32, 256], strides = [1, 1]} : vector<64x512xf32> to vector<32x256xf32>
    %213 = vector.extract_strided_slice %208 {offsets = [32, 0], sizes = [32, 256], strides = [1, 1]} : vector<64x512xf32> to vector<32x256xf32>
    %214 = arith.addf %212, %213 : vector<32x256xf32>
    %215 = arith.mulf %202, %211 : vector<32x256xf32>
    %216 = arith.mulf %203, %214 : vector<32x256xf32>
    %217 = arith.addf %215, %216 : vector<32x256xf32>
    %218 = math.tanh %217 : vector<32x256xf32>
    %219 = tpu.concatenate %191, %200, %218 in 0 : vector<32x256xf32>, vector<32x256xf32>, vector<32x256xf32> -> vector<96x256xf32>
    %220 = arith.truncf %219 : vector<96x256xf32> to vector<96x256xbf16>
    %221 = arith.index_cast %c3_i32 : i32 to index
    %c0_83 = arith.constant 0 : index
    %c0_84 = arith.constant 0 : index
    %222 = vector.load %arg5[%221, %c0_83, %c0_84] : memref<4x32x96xbf16, #tpu.memory_space<vmem>>, vector<1x32x96xbf16>
    %223 = vector.shape_cast %222 : vector<1x32x96xbf16> to vector<32x96xbf16>
    %cst_85 = arith.constant dense<0.000000e+00> : vector<32x256xf32>
    %224 = tpu.matmul %223, %220, %cst_85 {dimension_numbers = #tpu.dot_dimension_numbers<[1], [0], [0], [1], [0, 0, 1, 1], [], []>} : vector<32x96xbf16>, vector<96x256xbf16>, vector<32x256xf32> -> vector<32x256xf32>
    %225 = arith.index_cast %c3_i32 : i32 to index
    %c0_86 = arith.constant 0 : index
    %c0_87 = arith.constant 0 : index
    %226 = vector.load %arg6[%225, %c0_86, %c0_87] : memref<4x32x1xf32, #tpu.memory_space<vmem>>, vector<1x32x1xf32>
    %227 = vector.shape_cast %226 : vector<1x32x1xf32> to vector<32x1xf32>
    %228 = vector.broadcast %227 : vector<32x1xf32> to vector<32x256xf32>
    %229 = arith.addf %224, %228 : vector<32x256xf32>
    %cst_88 = arith.constant 0.000000e+00 : f32
    %230 = vector.broadcast %cst_88 : f32 to vector<32x256xf32>
    %231 = arith.maximumf %229, %230 : vector<32x256xf32>
    %232 = arith.index_cast %c3_i32 : i32 to index
    %c0_89 = arith.constant 0 : index
    %c0_90 = arith.constant 0 : index
    %233 = vector.load %arg7[%232, %c0_89, %c0_90] : memref<4x32x32xbf16, #tpu.memory_space<vmem>>, vector<1x32x32xbf16>
    %234 = vector.shape_cast %233 : vector<1x32x32xbf16> to vector<32x32xbf16>
    %235 = arith.truncf %231 : vector<32x256xf32> to vector<32x256xbf16>
    %cst_91 = arith.constant dense<0.000000e+00> : vector<32x256xf32>
    %236 = tpu.matmul %234, %235, %cst_91 {dimension_numbers = #tpu.dot_dimension_numbers<[1], [0], [0], [1], [0, 0, 1, 1], [], []>} : vector<32x32xbf16>, vector<32x256xbf16>, vector<32x256xf32> -> vector<32x256xf32>
    %237 = arith.index_cast %c3_i32 : i32 to index
    %c0_92 = arith.constant 0 : index
    %c0_93 = arith.constant 0 : index
    %238 = vector.load %arg8[%237, %c0_92, %c0_93] : memref<4x32x1xf32, #tpu.memory_space<vmem>>, vector<1x32x1xf32>
    %239 = vector.shape_cast %238 : vector<1x32x1xf32> to vector<32x1xf32>
    %240 = vector.broadcast %239 : vector<32x1xf32> to vector<32x256xf32>
    %241 = arith.addf %236, %240 : vector<32x256xf32>
    %cst_94 = arith.constant 0.000000e+00 : f32
    %242 = vector.broadcast %cst_94 : f32 to vector<32x256xf32>
    %243 = arith.maximumf %241, %242 : vector<32x256xf32>
    %244 = arith.index_cast %c3_i32 : i32 to index
    %c0_95 = arith.constant 0 : index
    %c0_96 = arith.constant 0 : index
    %245 = vector.load %arg9[%244, %c0_95, %c0_96] : memref<4x32x32xbf16, #tpu.memory_space<vmem>>, vector<1x32x32xbf16>
    %246 = vector.shape_cast %245 : vector<1x32x32xbf16> to vector<32x32xbf16>
    %247 = arith.truncf %243 : vector<32x256xf32> to vector<32x256xbf16>
    %cst_97 = arith.constant dense<0.000000e+00> : vector<32x256xf32>
    %248 = tpu.matmul %246, %247, %cst_97 {dimension_numbers = #tpu.dot_dimension_numbers<[1], [0], [0], [1], [0, 0, 1, 1], [], []>} : vector<32x32xbf16>, vector<32x256xbf16>, vector<32x256xf32> -> vector<32x256xf32>
    %249 = arith.index_cast %c3_i32 : i32 to index
    %c0_98 = arith.constant 0 : index
    %c0_99 = arith.constant 0 : index
    %250 = vector.load %arg10[%249, %c0_98, %c0_99] : memref<4x32x1xf32, #tpu.memory_space<vmem>>, vector<1x32x1xf32>
    %251 = vector.shape_cast %250 : vector<1x32x1xf32> to vector<32x1xf32>
    %252 = vector.broadcast %251 : vector<32x1xf32> to vector<32x256xf32>
    %253 = arith.addf %248, %252 : vector<32x256xf32>
    %254 = arith.addf %253, %191 : vector<32x256xf32>
    %c4_i32 = arith.constant 4 : i32
    %c0_100 = arith.constant 0 : index
    %c0_101 = arith.constant 0 : index
    %255 = vector.load %arg11[%c0_100, %c0_101] : memref<32x256xf32, #tpu.memory_space<vmem>>, vector<32x256xf32>
    tpu.vector_store %arg11[%c0_100, %c0_101], %254 {strides = array<i32>} : memref<32x256xf32, #tpu.memory_space<vmem>>, vector<32x256xf32>,
    return
  }
}

</mosaic_0001>

<bundles_post_ra>
// kernel: diffusion_net_body.1
= control target key start
LH: loop header
LB: loop body
LE: loop exit
PB: predicated region body
PF: predicated region fallthrough
CT: control target
= control target key end

     0   :  { %s5775_s0 = inlined_call_operand.vmem [shape: f32[32,256], index: 0, kind: input, shape index: {}]   ;;  %s5776_s1 = inlined_call_operand.vmem [shape: bf16[256,64], index: 1, kind: input, shape index: {}]   ;;  %s5777_s2 = inlined_call_operand.vmem [shape: bf16[64,768], index: 2, kind: input, shape index: {}]   ;;  %s5778_s3 = inlined_call_operand.vmem [shape: f32[4,32,64], index: 3, kind: input, shape index: {}]   ;;  %s5779_s4 = inlined_call_operand.vmem [shape: bf16[4,64,32], index: 4, kind: input, shape index: {}]   ;;  %s5780_s5 = inlined_call_operand.vmem [shape: bf16[4,32,96], index: 5, kind: input, shape index: {}]   ;;  %s5781_s6 = inlined_call_operand.vmem [shape: f32[4,32,1], index: 6, kind: input, shape index: {}]   ;;  %s5782_s7 = inlined_call_operand.vmem [shape: bf16[4,32,32], index: 7, kind: input, shape index: {}]   ;;  %s5783_s8 = inlined_call_operand.vmem [shape: f32[4,32,1], index: 8, kind: input, shape index: {}]   ;;  %s5784_s9 = inlined_call_operand.vmem [shape: bf16[4,32,32], index: 9, kind: input, shape index: {}]   ;;  %s5785_s10 = inlined_call_operand.vmem [shape: f32[4,32,1], index: 10, kind: input, shape index: {}]   ;;  %s5786_s11 = inlined_call_operand.hbm [shape: f32[32,256], index: 11, kind: output, shape index: {}]  }
   0x1   :  { %v4296_v0 = vld [vmem:[%s5776_s1 + $0x40] sm:$0xff]   ;;  %v4307_v2 = vld [vmem:[%s5776_s1 + $0x48] sm:$0xff]   ;;  %v4319_v4 = vld [vmem:[%s5776_s1 + $0x50] sm:$0xff]  }
   0x2   :  { %v4301_v1 = vld [vmem:[%s5776_s1] sm:$0xff]   ;;  %3843 = vmatprep.subr.bf16.mxu0 %v4296_v0  ;;  %v4313_v3 = vld [vmem:[%s5776_s1 + $0x8] sm:$0xff]   ;;  %v4325_v5 = vld [vmem:[%s5776_s1 + $0x10] sm:$0xff]  }
   0x3   :  { %3844 = vmatpush3.bf16.msra.mxu0 %v4301_v1  ;;  %v4331_v6 = vld [vmem:[%s5776_s1 + $0x58] sm:$0xff]   ;;  %v4343_v8 = vld [vmem:[%s5776_s1 + $0x60] sm:$0xff]   ;;  %v4355_v10 = vld [vmem:[%s5776_s1 + $0x68] sm:$0xff]  }
   0x4   :  { %3845 = vmatprep.subr.bf16.mxu0 %v4307_v2  ;;  %v4337_v7 = vld [vmem:[%s5776_s1 + $0x18] sm:$0xff]   ;;  %v4349_v9 = vld [vmem:[%s5776_s1 + $0x20] sm:$0xff]   ;;  %v97_v11 = vld [vmem:[%s5775_s0 + $0x8] sm:$0xff] }
   0x5   :  { %v99_v12 = vld [vmem:[%s5775_s0 + $0x18] sm:$0xff]  ;;  %v4366_v14 = vld [vmem:[%s5776_s1 + $0x28] sm:$0xff]   ;;  %v4376_v16 = vld [vmem:[%s5776_s1 + $0x70] sm:$0xff]  }
   0x6   :  { %v105_v13 = vpack.c.bf16 %v99_v12, %v97_v11  ;;  %v4009_v15 = vld [vmem:[%s5777_s2 + $0x4] ss:$24 sps:$4 sm:$0xff]   ;;  %v4013_v17 = vld [vmem:[%s5777_s2] ss:$24 sps:$4 sm:$0xff]   ;;  %v4015_v18 = vld [vmem:[%s5777_s2 + $0x34] ss:$24 sps:$4 sm:$0xff]  }
   0x7   :  { %3846 = vmatpush3.bf16.msra.mxu0 %v4313_v3  ;;  %390 = vmatprep.subr.bf16.mxu1 %v4009_v15  ;;  %v4388_v19 = vld [vmem:[%s5776_s1 + $0x30] sm:$0xff]   ;;  %v4393_v20 = vld [vmem:[%s5776_s1 + $0x78] sm:$0xff]   ;;  %v96_v23 = vld [vmem:[%s5775_s0] sm:$0xff] }
   0x8   :  { %3847 = vmatprep.subr.bf16.mxu0 %v4319_v4  ;;  %236 = vmatprep.mubr.bf16.mxu0 %v105_v13  ;;  %v4019_v21 = vld [vmem:[%s5777_s2 + $0x30] ss:$24 sps:$4 sm:$0xff]   ;;  %v4402_v22 = vld [vmem:[%s5776_s1 + $0x38] sm:$0xff]   ;;  %v4011_v27 = vld [vmem:[%s5777_s2 + $0x14] ss:$24 sps:$4 sm:$0xff]  }
   0x9   :  { %391 = vmatpush1.bf16.msra.mxu1 %v4013_v17  ;;  %v98_v24 = vld [vmem:[%s5775_s0 + $0x10] sm:$0xff]  ;;  %v101_v25 = vld [vmem:[%s5775_s0 + $0x28] sm:$0xff]  ;;  %v103_v26 = vld [vmem:[%s5775_s0 + $0x38] sm:$0xff] }
   0xa   :  { %392 = vmatprep.subr.bf16.mxu1 %v4015_v18  ;;  %v4014_v28 = vld [vmem:[%s5777_s2 + $0x10] ss:$24 sps:$4 sm:$0xff]   ;;  %v4424_v29 = vpack.c.bf16 %v98_v24, %v96_v23  ;;  %v4017_v30 = vld [vmem:[%s5777_s2 + $0x44] ss:$24 sps:$4 sm:$0xff]   ;;  %v4430_v31 = vpack.c.bf16 %v103_v26, %v101_v25  ;;  %v4020_v34 = vld [vmem:[%s5777_s2 + $0x40] ss:$24 sps:$4 sm:$0xff]  }
   0xb   :  { %3848 = vmatpush3.bf16.msra.mxu0 %v4325_v5  ;;  %v100_v32 = vld [vmem:[%s5775_s0 + $0x20] sm:$0xff]  ;;  %v102_v33 = vld [vmem:[%s5775_s0 + $0x30] sm:$0xff] }
   0xc   :  { %3849 = vmatprep.subr.bf16.mxu0 %v4331_v6  ;;  %v4443_v35 = vpack.c.bf16 %v102_v33, %v100_v32 }
   0xd   :  { %393 = vmatpush1.bf16.msra.mxu1 %v4019_v21 }
   0xf   :  { %3850 = vmatpush3.bf16.msra.mxu0 %v4337_v7 }
  0x10   :  { %3851 = vmatprep.subr.bf16.mxu0 %v4343_v8 }
  0x13   :  { %3852 = vmatpush3.bf16.msra.mxu0 %v4349_v9 }
  0x14   :  { %3853 = vmatprep.subr.bf16.mxu0 %v4355_v10 }
  0x17   :  { %3854 = vmatpush3.bf16.msra.mxu0 %v4366_v14 }
  0x18   :  { %3855 = vmatprep.subr.bf16.mxu0 %v4376_v16 }
  0x1b   :  { %3856 = vmatpush3.bf16.msra.mxu0 %v4388_v19 }
  0x1c   :  { %3857 = vmatprep.subr.bf16.mxu0 %v4393_v20 }
  0x1f   :  { %3858 = vmatpush3.bf16.msra.mxu0 %v4402_v22 }
  0x20   :  { %496 = vmatprep.subr.bf16.mxu0 %v4011_v27 }
  0x22   :  { %237 = vmatmul.mubr.bf16.vlgmr.msra.gmra.mrb[0].mxu0 %v4424_v29 }
  0x23   :  { %244 = vmatprep.mubr.bf16.mxu0 %v4430_v31  ;;  %497 = vmatpush1.bf16.msra.mxu0 %v4014_v28 }
  0x24   :  { %498 = vmatprep.subr.bf16.mxu0 %v4017_v30 }
  0x27   :  { %499 = vmatpush1.bf16.msra.mxu0 %v4020_v34 }
  0x2a   :  { %245 = vmatmul.mubr.bf16.gmra.mrb[4].mxu0 %v4443_v35 }
  0x2b   :  { %16 = vsyncpa [#allocation3], 0  ;;  %v4449_v36 = vld [vmem:[%s5777_s2 + $0x64] ss:$24 sps:$4 sm:$0xff]   ;;  %v4454_v37 = vld [vmem:[%s5777_s2 + $0x74] ss:$24 sps:$4 sm:$0xff]  }
  0x2c   :  { %v4459_v38 = vld [vmem:[%s5777_s2 + $0x60] ss:$24 sps:$4 sm:$0xff]   ;;  %v4464_v39 = vld [vmem:[%s5777_s2 + $0x70] ss:$24 sps:$4 sm:$0xff]   ;;  %394 = vmatprep.subr.bf16.mxu1 %v4449_v36  ;;  %500 = vmatprep.subr.bf16.mxu0 %v4454_v37  ;;  %v4473_v40 = vld [vmem:[%s5777_s2 + $0x94] ss:$24 sps:$4 sm:$0xff]  }
  0x2d   :  { %395 = vmatpush1.bf16.msra.mxu1 %v4459_v38  ;;  %501 = vmatpush1.bf16.msra.mxu0 %v4464_v39  ;;  %v4478_v41 = vld [vmem:[%s5777_s2 + $0xa4] ss:$24 sps:$4 sm:$0xff]   ;;  %v4483_v42 = vld [vmem:[%s5777_s2 + $0x90] ss:$24 sps:$4 sm:$0xff]   ;;  %v4488_v43 = vld [vmem:[%s5777_s2 + $0xa0] ss:$24 sps:$4 sm:$0xff]  }
  0x2e   :  { %396 = vmatprep.subr.bf16.mxu1 %v4473_v40  ;;  %502 = vmatprep.subr.bf16.mxu0 %v4478_v41  ;;  %v4497_v44 = vld [vmem:[%s5777_s2 + $0xc] ss:$24 sps:$4 sm:$0xff]   ;;  %v5787_v45 = vmov 0   ;;  %vm383_vm0 = vcmask 523264   ;;  %v4513_v56 = vld [vmem:[%s5777_s2 + $0x8] ss:$24 sps:$4 sm:$0xff]  }
  0x2f   :  { %422 = vmatprep.mubr.bf16.mxu1 %v5787_v45  ;;  %528 = vmatprep.mubr.bf16.mxu0 %v5787_v45  ;;  %v253_v50 = vld [vmem:[%s5778_s3] sm:$0xff]  ;;  %v254_v52 = vld [vmem:[%s5778_s3 + $0x8] sm:$0xff]  ;;  %v4518_v59 = vld [vmem:[%s5777_s2 + $0x3c] ss:$24 sps:$4 sm:$0xff]   ;;  %vm585_vm1 = vcmask 261120   ;;  %vm838_vm2 = vcmask 785408  }
  0x30   :  { %3991 = vset.pattern.permute.xlu0 %v5787_v45  ;;  %3992 = vset.pattern.permute.xlu1 %v5787_v45  ;;  %v255_v63 = vld [vmem:[%s5778_s3 + $0x10] sm:$0xff]  ;;  %v256_v12 = vld [vmem:[%s5778_s3 + $0x18] sm:$0xff]  ;;  %v4540_v17 = vld [vmem:[%s5777_s2 + $0x6c] ss:$24 sps:$4 sm:$0xff]  }
  0x31   :  { %397 = vmatpush1.bf16.msra.mxu1 %v4483_v42  ;;  %503 = vmatpush1.bf16.msra.mxu0 %v4488_v43  ;;  %v4548_v23 = vld [vmem:[%s5777_s2 + $0x68] ss:$24 sps:$4 sm:$0xff]   ;;  %v4554_v25 = vld [vmem:[%s5777_s2 + $0x9c] ss:$24 sps:$4 sm:$0xff]   ;;  %v4563_v26 = vld [vmem:[%s5777_s2 + $0x98] ss:$24 sps:$4 sm:$0xff]  }
  0x32   :  { %845 = vmatprep.subr.bf16.mxu0 %v105_v13  ;;  %443 = vmatprep.subr.bf16.mxu1 %v4497_v44  ;;  %v4532_v13 = vld [vmem:[%s5777_s2 + $0x38] ss:$24 sps:$4 sm:$0xff]  }
  0xf5   :  { %v3859_v46 = vpop.f32.mrb[0].mxu0 }
  0xf6   :  { %v3860_v47 = vpop.f32.mrb[1].mxu0 }
  0xf7   :  { %v3861_v48 = vadd.f32 %v3860_v47, %v3859_v46  ;;  %v3862_v49 = vpop.f32.mrb[2].mxu0 }
  0xf8   :  { %v3863_v51 = vpop.f32.mrb[3].mxu0 }
  0xf9   :  { %v3864_v53 = vadd.f32 %v3863_v51, %v3862_v49  ;;  %v257_v54 = vmul.f32 %v3861_v48, %v253_v50 }
  0xfb   :  { %v258_v55 = vmul.f32 %v3864_v53, %v254_v52 }
  0xfd   :  { %v261_v57 = vpack.c.bf16 %v258_v55, %v257_v54  ;;  %v3865_v58 = vpop.f32.mrb[4].mxu0 }
  0xfe   :  { %v3866_v60 = vpop.f32.mrb[5].mxu0 }
  0xff   :  { %v3867_v61 = vadd.f32 %v3866_v60, %v3865_v58  ;;  %v3868_v62 = vpop.f32.mrb[6].mxu0  ;;  %3615 = vmatmul.mubr.msk.bf16.vlgmr.msra.gmra.mrb[0].mxu1 %vm383_vm0, %v261_v57  ;;  %3619 = vmatmul.mubr.msk.bf16.vlgmr.msra.gmra.mrb[8].mxu0 %vm383_vm0, %v261_v57 }
 0x100   :  { %v3869_v11 = vpop.f32.mrb[7].mxu0  ;;  %444 = vmatpush1.bf16.msra.mxu1 %v4513_v56  ;;  %432 = vmatprep.mubr.bf16.mxu1 %v5787_v45 }
 0x101   :  { %v3870_v15 = vadd.f32 %v3869_v11, %v3868_v62  ;;  %445 = vmatprep.subr.bf16.mxu1 %v4518_v59  ;;  %538 = vmatprep.mubr.bf16.mxu0 %v5787_v45  ;;  %v259_v18 = vmul.f32 %v3867_v61, %v255_v63 }
 0x102   :  { %846 = vmatpush1.bf16.msra.mxu0 %v4424_v29 }
 0x103   :  { %v260_v21 = vmul.f32 %v3870_v15, %v256_v12  ;;  %847 = vmatprep.subr.bf16.mxu0 %v4430_v31 }
 0x104   :  { %446 = vmatpush1.bf16.msra.mxu1 %v4532_v13 }
 0x105   :  { %v262_v24 = vpack.c.bf16 %v260_v21, %v259_v18  ;;  %447 = vmatprep.subr.bf16.mxu1 %v4540_v17 }
 0x106   :  { %848 = vmatpush1.bf16.msra.mxu0 %v4443_v35 }
 0x107   :  { %3616 = vmatmul.mubr.msk.bf16.gmra.mrb[4].mxu1 %vm383_vm0, %v262_v24  ;;  %3620 = vmatmul.mubr.msk.bf16.gmra.mrb[12].mxu0 %vm383_vm0, %v262_v24 }
 0x108   :  { %448 = vmatpush1.bf16.msra.mxu1 %v4548_v23  ;;  %475 = vmatprep.mubr.bf16.mxu1 %v5787_v45 }
 0x109   :  { %449 = vmatprep.subr.bf16.mxu1 %v4554_v25  ;;  %877 = vmatprep.mubr.bf16.mxu0 %v5787_v45 }
 0x10c   :  { %450 = vmatpush1.bf16.msra.mxu1 %v4563_v26 }
 0x10f   :  { %3617 = vmatmul.mubr.msk.bf16.vlgmr.msra.gmra.mrb[8].mxu1 %vm383_vm0, %v261_v57 }
 0x110   :  { %485 = vmatprep.mubr.bf16.mxu1 %v5787_v45 }
 0x117   :  { %3618 = vmatmul.mubr.msk.bf16.gmra.mrb[12].mxu1 %vm383_vm0, %v262_v24 }
 0x118   :  { %630 = vmatprep.mubr.bf16.mxu1 %v5787_v45 }
 0x1d2   :  { %v424_v27 = vpop.f32.mrb[0].mxu1  ;;  %v4573_v28 = vpop.f32.mrb[8].mxu0 }
 0x1d3   :  { %v426_v29 = vpop.f32.mrb[1].mxu1  ;;  %v4575_v30 = vpop.f32.mrb[9].mxu0 }
 0x1d4   :  { %v428_v31 = vpop.f32.mrb[2].mxu1  ;;  %v4577_v32 = vpop.f32.mrb[10].mxu0 }
 0x1d5   :  { %v792_v33 = vpack.c.bf16 %v428_v31, %v424_v27  ;;  %v559_v34 = vpack.c.bf16 %v4577_v32, %v4573_v28  ;;  %v430_v35 = vpop.f32.mrb[3].mxu1  ;;  %v4581_v46 = vpop.f32.mrb[11].mxu0 }
 0x1d6   :  { %v793_v47 = vpack.c.bf16 %v430_v35, %v426_v29  ;;  %v560_v48 = vpack.c.bf16 %v4581_v46, %v4575_v30 }
 0x1d8   :  { %849 = vmatprep.subr.bf16.mxu0 %v793_v47  ;;  %v4045_v47 = vld [vmem:[%s5779_s4] sm:$0xff]  }
 0x1d9   :  { %850 = vmatpush1.bf16.msra.mxu0 %v792_v33 }
 0x1da   :  { %v434_v49 = vpop.f32.mrb[4].mxu1  ;;  %v4585_v50 = vpop.f32.mrb[12].mxu0 }
 0x1db   :  { %v436_v51 = vpop.f32.mrb[5].mxu1  ;;  %v4587_v52 = vpop.f32.mrb[13].mxu0 }
 0x1dc   :  { %v438_v53 = vpop.f32.mrb[6].mxu1  ;;  %v4589_v54 = vpop.f32.mrb[14].mxu0 }
 0x1dd   :  { %v794_v55 = vpack.c.bf16 %v438_v53, %v434_v49  ;;  %v563_v57 = vpack.c.bf16 %v4589_v54, %v4585_v50  ;;  %v440_v58 = vpop.f32.mrb[7].mxu1  ;;  %v4593_v60 = vpop.f32.mrb[15].mxu0  ;;  %v4046_v49 = vld [vmem:[%s5779_s4 + $0x8] sm:$0xff]  }
 0x1de   :  { %v795_v61 = vpack.c.bf16 %v440_v58, %v436_v51  ;;  %v564_v62 = vpack.c.bf16 %v4593_v60, %v4587_v52  ;;  %v3693_v51 = vld [vmem:[%s5783_s8 + $0x30] sm:$0xff]  ;;  %v3692_v53 = vld [vmem:[%s5783_s8 + $0x28] sm:$0xff] }
 0x1df   :  { %v3705_v58 = vld [vmem:[%s5785_s10 + $0x30] sm:$0xff] }
 0x1e0   :  { %851 = vmatprep.subr.bf16.mxu0 %v795_v61  ;;  %v3704_v61 = vld [vmem:[%s5785_s10 + $0x28] sm:$0xff] }
 0x1e1   :  { %852 = vmatpush1.bf16.msra.mxu0 %v794_v55  ;;  %v3703_v55 = vld [vmem:[%s5785_s10 + $0x20] sm:$0xff] }
 0x1e2   :  { %v4597_v63 = vpop.f32.mrb[8].mxu1 }
 0x1e3   :  { %v4599_v11 = vpop.f32.mrb[9].mxu1 }
 0x1e4   :  { %v4601_v12 = vpop.f32.mrb[10].mxu1 }
 0x1e5   :  { %v557_v15 = vpack.c.bf16 %v4601_v12, %v4597_v63  ;;  %v4605_v18 = vpop.f32.mrb[11].mxu1 }
 0x1e6   :  { %v558_v21 = vpack.c.bf16 %v4605_v18, %v4599_v11 }
 0x1e8   :  { %598 = vmatprep.subr.bf16.mxu1 %v558_v21  ;;  %v3747_v21 = vld [vmem:[%s5781_s6 + $0x50] sm:$0xff] }
 0x1e9   :  { %599 = vmatpush1.bf16.msra.mxu1 %v557_v15  ;;  %v3706_v15 = vld [vmem:[%s5785_s10 + $0x38] sm:$0xff] }
 0x1ea   :  { %v4609_v24 = vpop.f32.mrb[12].mxu1 }
 0x1eb   :  { %v4611_v27 = vpop.f32.mrb[13].mxu1 }
 0x1ec   :  { %v4613_v29 = vpop.f32.mrb[14].mxu1 }
 0x1ed   :  { %v561_v31 = vpack.c.bf16 %v4613_v29, %v4609_v24  ;;  %v4617_v33 = vpop.f32.mrb[15].mxu1 }
 0x1ee   :  { %v562_v35 = vpack.c.bf16 %v4617_v33, %v4611_v27 }
 0x1f0   :  { %600 = vmatprep.subr.bf16.mxu1 %v562_v35  ;;  %v3757_v35 = vld [vmem:[%s5783_s8 + $0x40] sm:$0xff] }
 0x1f1   :  { %601 = vmatpush1.bf16.msra.mxu1 %v561_v31  ;;  %v3746_v31 = vld [vmem:[%s5781_s6 + $0x48] sm:$0xff] }
 0x1f2   :  { %671 = vmatprep.subr.bf16.mxu1 %v560_v48  ;;  %v4047_v48 = vld [vmem:[%s5779_s4 + $0x10] sm:$0xff]  }
 0x1f4   :  { %3625 = vmatmul.mubr.msk.bf16.vlgmr.msra.gmra.mrb[16].mxu1 %vm585_vm1, %v4045_v47 }
 0x1f5   :  { %672 = vmatpush1.bf16.msra.mxu1 %v559_v34  ;;  %640 = vmatprep.mubr.bf16.mxu1 %v5787_v45  ;;  %v4048_v34 = vld [vmem:[%s5779_s4 + $0x18] sm:$0xff]  }
 0x1f6   :  { %673 = vmatprep.subr.bf16.mxu1 %v564_v62  ;;  %v3745_v62 = vld [vmem:[%s5781_s6 + $0x40] sm:$0xff] }
 0x1f9   :  { %674 = vmatpush1.bf16.msra.mxu1 %v563_v57  ;;  %v3694_v57 = vld [vmem:[%s5783_s8 + $0x38] sm:$0xff] }
 0x1fa   :  { %3871 = vmatprep.subr.bf16.mxu1 %v4296_v0  ;;  %v804_v0 = vld [vmem:[%s5781_s6] sm:$0xff] }
 0x1fb   :  { %810 = vperm.xlu0 %3991, %v804_v0   ;;  %v3759_v0 = vld [vmem:[%s5783_s8 + $0x50] sm:$0xff] }
 0x1fc   :  { %3626 = vmatmul.mubr.msk.bf16.gmra.mrb[20].mxu1 %vm585_vm1, %v4046_v49 }
 0x1fd   :  { %650 = vmatprep.mubr.bf16.mxu1 %v5787_v45 }
 0x204   :  { %3627 = vmatmul.mubr.msk.bf16.gmra.mrb[24].mxu1 %vm585_vm1, %v4047_v48 }
 0x205   :  { %660 = vmatprep.mubr.bf16.mxu1 %v5787_v45 }
 0x20c   :  { %3628 = vmatmul.mubr.msk.bf16.gmra.mrb[28].mxu1 %vm585_vm1, %v4048_v34 }
 0x20d   :  { %703 = vmatprep.mubr.bf16.mxu1 %v5787_v45 }
 0x214   :  { %3629 = vmatmul.mubr.msk.bf16.vlgmr.msra.gmra.mrb[24].mxu1 %vm585_vm1, %v4045_v47 }
 0x215   :  { %713 = vmatprep.mubr.bf16.mxu1 %v5787_v45  ;;  %3872 = vmatpush3.bf16.msra.mxu1 %v4301_v1  ;;  %v805_v1 = vld [vmem:[%s5781_s6 + $0x8] sm:$0xff] }
 0x216   :  { %3873 = vmatprep.subr.bf16.mxu1 %v4307_v2  ;;  %815 = vperm.xlu0 %3991, %v805_v1   ;;  %v806_v2 = vld [vmem:[%s5781_s6 + $0x10] sm:$0xff] }
 0x217   :  { %820 = vperm.xlu1 %3992, %v806_v2   ;;  %v3758_v2 = vld [vmem:[%s5783_s8 + $0x48] sm:$0xff] }
 0x219   :  { %3874 = vmatpush3.bf16.msra.mxu1 %v4313_v3  ;;  %v914_v3 = vld [vmem:[%s5783_s8] sm:$0xff] }
 0x21a   :  { %3875 = vmatprep.subr.bf16.mxu1 %v4319_v4  ;;  %920 = vperm.xlu0 %3991, %v914_v3   ;;  %v807_v4 = vld [vmem:[%s5781_s6 + $0x18] sm:$0xff]  ;;  %v3769_v3 = vld [vmem:[%s5785_s10 + $0x40] sm:$0xff] }
 0x21b   :  { %825 = vperm.xlu1 %3992, %v807_v4  }
 0x21c   :  { %3630 = vmatmul.mubr.msk.bf16.gmra.mrb[28].mxu1 %vm585_vm1, %v4046_v49 }
 0x21d   :  { %723 = vmatprep.mubr.bf16.mxu1 %v5787_v45  ;;  %3876 = vmatpush3.bf16.msra.mxu1 %v4325_v5  ;;  %v916_v5 = vld [vmem:[%s5783_s8 + $0x10] sm:$0xff] }
 0x21e   :  { %3877 = vmatprep.subr.bf16.mxu1 %v4331_v6  ;;  %930 = vperm.xlu0 %3991, %v916_v5   ;;  %v915_v6 = vld [vmem:[%s5783_s8 + $0x8] sm:$0xff] }
 0x21f   :  { %925 = vperm.xlu1 %3992, %v915_v6  }
 0x221   :  { %3878 = vmatpush3.bf16.msra.mxu1 %v4337_v7  ;;  %v1023_v7 = vld [vmem:[%s5785_s10] sm:$0xff] }
 0x222   :  { %3879 = vmatprep.subr.bf16.mxu1 %v4343_v8  ;;  %1029 = vperm.xlu0 %3991, %v1023_v7   ;;  %v917_v8 = vld [vmem:[%s5783_s8 + $0x18] sm:$0xff] }
 0x223   :  { %935 = vperm.xlu1 %3992, %v917_v8   ;;  %v3760_v7 = vld [vmem:[%s5783_s8 + $0x58] sm:$0xff]  ;;  %v3771_v8 = vld [vmem:[%s5785_s10 + $0x50] sm:$0xff] }
 0x224   :  { %3631 = vmatmul.mubr.msk.bf16.gmra.mrb[32].mxu1 %vm585_vm1, %v4047_v48 }
 0x225   :  { %733 = vmatprep.mubr.bf16.mxu1 %v5787_v45  ;;  %3880 = vmatpush3.bf16.msra.mxu1 %v4349_v9  ;;  %v1025_v9 = vld [vmem:[%s5785_s10 + $0x10] sm:$0xff] }
 0x226   :  { %3881 = vmatprep.subr.bf16.mxu1 %v4355_v10  ;;  %1039 = vperm.xlu0 %3991, %v1025_v9   ;;  %v1024_v10 = vld [vmem:[%s5785_s10 + $0x8] sm:$0xff] }
 0x227   :  { %1034 = vperm.xlu1 %3992, %v1024_v10   ;;  %v3770_v10 = vld [vmem:[%s5785_s10 + $0x48] sm:$0xff] }
 0x229   :  { %3882 = vmatpush3.bf16.msra.mxu1 %v4366_v14  ;;  %v3679_v14 = vld [vmem:[%s5781_s6 + $0x20] sm:$0xff] }
 0x22a   :  { %3883 = vmatprep.subr.bf16.mxu1 %v4376_v16  ;;  %1616 = vperm.xlu0 %3991, %v3679_v14   ;;  %v1026_v16 = vld [vmem:[%s5785_s10 + $0x18] sm:$0xff]  ;;  %v3811_v14 = vld [vmem:[%s5781_s6 + $0x60] sm:$0xff] }
 0x22b   :  { %1044 = vperm.xlu1 %3992, %v1026_v16   ;;  %v3772_v16 = vld [vmem:[%s5785_s10 + $0x58] sm:$0xff] }
 0x22c   :  { %3632 = vmatmul.mubr.msk.bf16.gmra.mrb[36].mxu1 %vm585_vm1, %v4048_v34  ;;  %v3748_v34 = vld [vmem:[%s5781_s6 + $0x58] sm:$0xff] }
 0x22d   :  { %3884 = vmatpush3.bf16.msra.mxu1 %v4388_v19  ;;  %v3681_v19 = vld [vmem:[%s5781_s6 + $0x30] sm:$0xff] }
 0x22e   :  { %3885 = vmatprep.subr.bf16.mxu1 %v4393_v20  ;;  %1626 = vperm.xlu0 %3991, %v3681_v19   ;;  %v3680_v20 = vld [vmem:[%s5781_s6 + $0x28] sm:$0xff]  ;;  %v3813_v19 = vld [vmem:[%s5781_s6 + $0x70] sm:$0xff] }
 0x22f   :  { %1621 = vperm.xlu1 %3992, %v3680_v20   ;;  %v3812_v20 = vld [vmem:[%s5781_s6 + $0x68] sm:$0xff] }
 0x231   :  { %3886 = vmatpush3.bf16.msra.mxu1 %v4402_v22  ;;  %v3691_v22 = vld [vmem:[%s5783_s8 + $0x20] sm:$0xff] }
 0x232   :  { %1247 = vmatprep.subr.bf16.mxu1 %v4497_v44  ;;  %1727 = vperm.xlu0 %3991, %v3691_v22   ;;  %v3682_v44 = vld [vmem:[%s5781_s6 + $0x38] sm:$0xff]  ;;  %v3823_v22 = vld [vmem:[%s5783_s8 + $0x60] sm:$0xff] }
 0x233   :  { %1631 = vperm.xlu1 %3992, %v3682_v44   ;;  %v3814_v44 = vld [vmem:[%s5781_s6 + $0x78] sm:$0xff] }
 0x236   :  { %1737 = vperm.xlu0 %3991, %v3693_v51   ;;  %v3825_v51 = vld [vmem:[%s5783_s8 + $0x70] sm:$0xff] }
 0x237   :  { %1732 = vperm.xlu1 %3992, %v3692_v53   ;;  %v3824_v53 = vld [vmem:[%s5783_s8 + $0x68] sm:$0xff] }
 0x23a   :  { %1838 = vperm.xlu0 %3991, %v3703_v55   ;;  %v3835_v55 = vld [vmem:[%s5785_s10 + $0x60] sm:$0xff] }
 0x23b   :  { %1742 = vperm.xlu1 %3992, %v3694_v57  }
 0x23e   :  { %1848 = vperm.xlu0 %3991, %v3705_v58  }
 0x23f   :  { %1843 = vperm.xlu1 %3992, %v3704_v61  }
 0x242   :  { %2425 = vperm.xlu0 %3991, %v3745_v62  }
 0x243   :  { %1853 = vperm.xlu1 %3992, %v3706_v15  }
 0x246   :  { %2435 = vperm.xlu0 %3991, %v3747_v21   ;;  %v3826_v21 = vld [vmem:[%s5783_s8 + $0x78] sm:$0xff] }
 0x247   :  { %2430 = vperm.xlu1 %3992, %v3746_v31   ;;  %v3837_v31 = vld [vmem:[%s5785_s10 + $0x70] sm:$0xff] }
 0x24a   :  { %2536 = vperm.xlu0 %3991, %v3757_v35  }
 0x24b   :  { %2440 = vperm.xlu1 %3992, %v3748_v34  }
 0x24e   :  { %2546 = vperm.xlu0 %3991, %v3759_v0  }
 0x24f   :  { %2541 = vperm.xlu1 %3992, %v3758_v2  }
 0x252   :  { %2647 = vperm.xlu0 %3991, %v3769_v3  }
 0x253   :  { %2551 = vperm.xlu1 %3992, %v3760_v7  }
 0x256   :  { %2657 = vperm.xlu0 %3991, %v3771_v8  }
 0x257   :  { %2652 = vperm.xlu1 %3992, %v3770_v10  }
 0x25a   :  { %3234 = vperm.xlu0 %3991, %v3811_v14  }
 0x25b   :  { %2662 = vperm.xlu1 %3992, %v3772_v16  }
 0x25e   :  { %3244 = vperm.xlu0 %3991, %v3813_v19  }
 0x25f   :  { %3239 = vperm.xlu1 %3992, %v3812_v20  }
 0x262   :  { %3345 = vperm.xlu0 %3991, %v3823_v22  }
 0x263   :  { %3249 = vperm.xlu1 %3992, %v3814_v44  }
 0x266   :  { %3355 = vperm.xlu0 %3991, %v3825_v51  }
 0x267   :  { %3350 = vperm.xlu1 %3992, %v3824_v53  }
 0x26a   :  { %3456 = vperm.xlu0 %3991, %v3835_v55  }
 0x26b   :  { %3360 = vperm.xlu1 %3992, %v3826_v21  }
 0x26e   :  { %3466 = vperm.xlu0 %3991, %v3837_v31  }
 0x2c7   :  { %v4749_v47 = vpop.f32.mrb[16].mxu1 }
 0x2c8   :  { %v4751_v49 = vpop.f32.mrb[17].mxu1 }
 0x2c9   :  { %v4753_v48 = vpop.f32.mrb[18].mxu1 }
 0x2ca   :  { %v4761_v1 = vpop.f32.mrb[19].mxu1 }
 0x2cf   :  { %v4769_v4 = vpop.f32.mrb[20].mxu1 }
 0x2d0   :  { %v4771_v5 = vpop.f32.mrb[21].mxu1 }
 0x2d1   :  { %v4773_v6 = vpop.f32.mrb[22].mxu1 }
 0x2d2   :  { %v4781_v9 = vpop.f32.mrb[23].mxu1 }
 0x2e7   :  { %v705_v57 = vpop.f32.mrb[24].mxu1 }
 0x2e8   :  { %v768_v58 = vmul.f32 %v705_v57, %v4573_v28  ;;  %v707_v61 = vpop.f32.mrb[25].mxu1  ;;  %v3836_v28 = vld [vmem:[%s5785_s10 + $0x68] sm:$0xff] }
 0x2e9   :  { %v769_v62 = vmul.f32 %v707_v61, %v4575_v30  ;;  %v709_v15 = vpop.f32.mrb[26].mxu1  ;;  %3461 = vperm.xlu1 %3992, %v3836_v28  }
 0x2ea   :  { %v770_v35 = vmul.f32 %v709_v15, %v4577_v32  ;;  %v711_v34 = vpop.f32.mrb[27].mxu1  ;;  %v3838_v32 = vld [vmem:[%s5785_s10 + $0x78] sm:$0xff] }
 0x2eb   :  { %v771_v0 = vmul.f32 %v711_v34, %v4581_v46 }
 0x2ed   :  { %3471 = vperm.xlu1 %3992, %v3838_v32   ;;  %v4049_v32 = vld [vmem:[%s5780_s5] sm:$0xff]  }
 0x2ef   :  { %v715_v30 = vpop.f32.mrb[28].mxu1 }
 0x2f0   :  { %v772_v2 = vmul.f32 %v715_v30, %v4585_v50  ;;  %v717_v3 = vpop.f32.mrb[29].mxu1 }
 0x2f1   :  { %v773_v7 = vmul.f32 %v717_v3, %v4587_v52  ;;  %v719_v8 = vpop.f32.mrb[30].mxu1 }
 0x2f2   :  { %v774_v46 = vmul.f32 %v719_v8, %v4589_v54  ;;  %v721_v10 = vpop.f32.mrb[31].mxu1 }
 0x2f3   :  { %v775_v14 = vmul.f32 %v721_v10, %v4593_v60  ;;  %v811_v10 = vpop.permute.xlu0 %810 }
 0x2f7   :  { %v725_v16 = vpop.f32.mrb[32].mxu1 }
 0x2f8   :  { %v744_v19 = vsub.f32 %v4749_v47, %v725_v16  ;;  %v727_v20 = vpop.f32.mrb[33].mxu1 }
 0x2f9   :  { %v745_v50 = vsub.f32 %v4751_v49, %v727_v20  ;;  %v729_v22 = vpop.f32.mrb[34].mxu1  ;;  %v816_v20 = vpop.permute.xlu0 %815 }
 0x2fa   :  { %v760_v52 = vmul.f32 %v744_v19, %v4597_v63  ;;  %v746_v44 = vsub.f32 %v4753_v48, %v729_v22  ;;  %v731_v51 = vpop.f32.mrb[35].mxu1 }
 0x2fb   :  { %v761_v53 = vmul.f32 %v745_v50, %v4599_v11  ;;  %v747_v54 = vsub.f32 %v4761_v1, %v731_v51  ;;  %v821_v51 = vpop.permute.xlu1 %820 }
 0x2fc   :  { %v776_v55 = vadd.f32 %v768_v58, %v760_v52  ;;  %v762_v60 = vmul.f32 %v746_v44, %v4601_v12 }
 0x2fd   :  { %v777_v57 = vadd.f32 %v769_v62, %v761_v53  ;;  %v763_v61 = vmul.f32 %v747_v54, %v4605_v18 }
 0x2fe   :  { %4085 = vtanh.f32 %v776_v55  ;;  %v778_v47 = vadd.f32 %v770_v35, %v762_v60 }
 0x2ff   :  { %4087 = vtanh.f32 %v777_v57  ;;  %v779_v49 = vadd.f32 %v771_v0, %v763_v61  ;;  %v735_v15 = vpop.f32.mrb[36].mxu1 }
 0x300   :  { %4089 = vtanh.f32 %v778_v47  ;;  %v748_v63 = vsub.f32 %v4769_v4, %v735_v15  ;;  %v737_v48 = vpop.f32.mrb[37].mxu1 }
 0x301   :  { %4091 = vtanh.f32 %v779_v49  ;;  %v749_v11 = vsub.f32 %v4771_v5, %v737_v48  ;;  %v739_v21 = vpop.f32.mrb[38].mxu1  ;;  %v826_v48 = vpop.permute.xlu1 %825 }
 0x302   :  { %v764_v1 = vmul.f32 %v748_v63, %v4609_v24  ;;  %v750_v12 = vsub.f32 %v4773_v6, %v739_v21  ;;  %v741_v58 = vpop.f32.mrb[39].mxu1 }
 0x303   :  { %v765_v18 = vmul.f32 %v749_v11, %v4611_v27  ;;  %v751_v62 = vsub.f32 %v4781_v9, %v741_v58 }
 0x304   :  { %v780_v31 = vadd.f32 %v772_v2, %v764_v1  ;;  %v766_v35 = vmul.f32 %v750_v12, %v4613_v29 }
 0x305   :  { %v781_v34 = vadd.f32 %v773_v7, %v765_v18  ;;  %v767_v4 = vmul.f32 %v751_v62, %v4617_v33 }
 0x306   :  { %4093 = vtanh.f32 %v780_v31  ;;  %v782_v0 = vadd.f32 %v774_v46, %v766_v35  ;;  %v4050_v46 = vld [vmem:[%s5780_s5 + $0x8] sm:$0xff]  }
 0x307   :  { %4095 = vtanh.f32 %v781_v34  ;;  %v783_v5 = vadd.f32 %v775_v14, %v767_v4 }
 0x308   :  { %v4086_v28 = vpop.eup %4085  ;;  %4097 = vtanh.f32 %v782_v0  ;;  %v4051_v0 = vld [vmem:[%s5782_s7] sm:$0xff]  }
 0x309   :  { %v4088_v24 = vpop.eup %4087  ;;  %4099 = vtanh.f32 %v783_v5  ;;  %v4052_v5 = vld [vmem:[%s5782_s7 + $0x8] sm:$0xff]  }
 0x30a   :  { %v4090_v6 = vpop.eup %4089 }
 0x30b   :  { %v4092_v30 = vpop.eup %4091  ;;  %v796_v3 = vpack.c.bf16 %v4090_v6, %v4086_v28  ;;  %v921_v28 = vpop.permute.xlu0 %920 }
 0x30c   :  { %v797_v27 = vpack.c.bf16 %v4092_v30, %v4088_v24 }
 0x30e   :  { %853 = vmatprep.subr.bf16.mxu0 %v797_v27 }
 0x30f   :  { %854 = vmatpush1.bf16.msra.mxu0 %v796_v3  ;;  %v926_v3 = vpop.permute.xlu1 %925 }
 0x310   :  { %v4094_v9 = vpop.eup %4093 }
 0x311   :  { %v4096_v2 = vpop.eup %4095 }
 0x312   :  { %v4098_v29 = vpop.eup %4097 }
 0x313   :  { %v4100_v7 = vpop.eup %4099  ;;  %v798_v8 = vpack.c.bf16 %v4098_v29, %v4094_v9 }
 0x314   :  { %v799_v33 = vpack.c.bf16 %v4100_v7, %v4096_v2 }
 0x316   :  { %855 = vmatprep.subr.bf16.mxu0 %v799_v33 }
 0x317   :  { %856 = vmatpush1.bf16.msra.mxu0 %v798_v8 }
 0x31a   :  { %3635 = vmatmul.mubr.msk.bf16.vlgmr.msra.gmra.mrb[16].mxu0 %vm838_vm2, %v4049_v32 }
 0x31b   :  { %887 = vmatprep.mubr.bf16.mxu0 %v5787_v45 }
 0x322   :  { %3636 = vmatmul.mubr.msk.bf16.gmra.mrb[20].mxu0 %vm838_vm2, %v4050_v46 }
 0x323   :  { %986 = vmatprep.mubr.bf16.mxu0 %v5787_v45 }
 0x3ed   :  { %v879_v14 = vpop.f32.mrb[16].mxu0 }
 0x3ee   :  { %v880_v16 = vadd.f32 %v879_v14, %v811_v10  ;;  %v881_v19 = vpop.f32.mrb[17].mxu0  ;;  %v931_v14 = vpop.permute.xlu0 %930 }
 0x3ef   :  { %v882_v50 = vadd.f32 %v881_v19, %v811_v10  ;;  %v883_v22 = vpop.f32.mrb[18].mxu0 }
 0x3f0   :  { %v884_v52 = vadd.f32 %v883_v22, %v816_v20  ;;  %v885_v44 = vpop.f32.mrb[19].mxu0  ;;  %v898_v54 = vmax.f32 %v880_v16, 0.0  ;;  %v936_v22 = vpop.permute.xlu1 %935 }
 0x3f1   :  { %v886_v53 = vadd.f32 %v885_v44, %v816_v20  ;;  %v899_v60 = vmax.f32 %v882_v50, 0.0 }
 0x3f2   :  { %v900_v55 = vmax.f32 %v884_v52, 0.0 }
 0x3f3   :  { %v901_v57 = vmax.f32 %v886_v53, 0.0 }
 0x3f4   :  { %v910_v61 = vpack.c.bf16 %v900_v55, %v898_v54 }
 0x3f5   :  { %v911_v47 = vpack.c.bf16 %v901_v57, %v899_v60  ;;  %v889_v49 = vpop.f32.mrb[20].mxu0 }
 0x3f6   :  { %v890_v15 = vadd.f32 %v889_v49, %v821_v51  ;;  %v891_v63 = vpop.f32.mrb[21].mxu0 }
 0x3f7   :  { %v892_v11 = vadd.f32 %v891_v63, %v821_v51  ;;  %v893_v21 = vpop.f32.mrb[22].mxu0  ;;  %954 = vmatprep.subr.bf16.mxu0 %v911_v47  ;;  %v4875_v63 = vld [vmem:[%s5777_s2 + $0x4] ss:$24 sps:$4 sm:$0xff]  }
 0x3f8   :  { %v894_v1 = vadd.f32 %v893_v21, %v826_v48  ;;  %v895_v12 = vpop.f32.mrb[23].mxu0  ;;  %955 = vmatpush1.bf16.msra.mxu0 %v910_v61  ;;  %v902_v18 = vmax.f32 %v890_v15, 0.0  ;;  %v4053_v15 = vld [vmem:[%s5784_s9] sm:$0xff]   ;;  %v4054_v21 = vld [vmem:[%s5784_s9 + $0x8] sm:$0xff]  }
 0x3f9   :  { %v896_v58 = vadd.f32 %v895_v12, %v826_v48  ;;  %v903_v31 = vmax.f32 %v892_v11, 0.0  ;;  %v4883_v48 = vld [vmem:[%s5777_s2] ss:$24 sps:$4 sm:$0xff]   ;;  %v4889_v11 = vld [vmem:[%s5777_s2 + $0x34] ss:$24 sps:$4 sm:$0xff]  }
 0x3fa   :  { %v904_v62 = vmax.f32 %v894_v1, 0.0  ;;  %v4898_v1 = vld [vmem:[%s5777_s2 + $0x30] ss:$24 sps:$4 sm:$0xff]   ;;  %v4910_v12 = vld [vmem:[%s5777_s2 + $0x14] ss:$24 sps:$4 sm:$0xff]  }
 0x3fb   :  { %v905_v35 = vmax.f32 %v896_v58, 0.0 }
 0x3fc   :  { %v912_v34 = vpack.c.bf16 %v904_v62, %v902_v18  ;;  %v1030_v18 = vpop.permute.xlu0 %1029  ;;  %v1035_v62 = vpop.permute.xlu1 %1034 }
 0x3fd   :  { %v913_v4 = vpack.c.bf16 %v905_v35, %v903_v31 }
 0x3ff   :  { %956 = vmatprep.subr.bf16.mxu0 %v913_v4 }
 0x400   :  { %957 = vmatpush1.bf16.msra.mxu0 %v912_v34 }
 0x403   :  { %3639 = vmatmul.mubr.msk.bf16.vlgmr.msra.gmra.mrb[24].mxu0 %vm585_vm1, %v4051_v0 }
 0x404   :  { %996 = vmatprep.mubr.bf16.mxu0 %v5787_v45 }
 0x40b   :  { %3640 = vmatmul.mubr.msk.bf16.gmra.mrb[28].mxu0 %vm585_vm1, %v4052_v5  ;;  %v4155_v5 = vld [vmem:[%s5775_s0 + $0x8] sm:$0xff] }
 0x40c   :  { %1095 = vmatprep.mubr.bf16.mxu0 %v5787_v45 }
 0x4d6   :  { %v988_v24 = vpop.f32.mrb[24].mxu0 }
 0x4d7   :  { %v989_v6 = vadd.f32 %v988_v24, %v921_v28  ;;  %v990_v30 = vpop.f32.mrb[25].mxu0  ;;  %v4156_v24 = vld [vmem:[%s5775_s0 + $0x18] sm:$0xff] }
 0x4d8   :  { %v991_v27 = vadd.f32 %v990_v30, %v921_v28  ;;  %v992_v9 = vpop.f32.mrb[26].mxu0  ;;  %v4157_v30 = vld [vmem:[%s5775_s0] sm:$0xff] }
 0x4d9   :  { %v993_v2 = vadd.f32 %v992_v9, %v926_v3  ;;  %v994_v29 = vpop.f32.mrb[27].mxu0  ;;  %v1007_v8 = vmax.f32 %v989_v6, 0.0 }
 0x4da   :  { %v995_v7 = vadd.f32 %v994_v29, %v926_v3  ;;  %v1008_v32 = vmax.f32 %v991_v27, 0.0 }
 0x4db   :  { %v1009_v33 = vmax.f32 %v993_v2, 0.0  ;;  %v1040_v2 = vpop.permute.xlu0 %1039 }
 0x4dc   :  { %v1010_v46 = vmax.f32 %v995_v7, 0.0 }
 0x4dd   :  { %v1019_v10 = vpack.c.bf16 %v1009_v33, %v1007_v8  ;;  %v1045_v8 = vpop.permute.xlu1 %1044 }
 0x4de   :  { %v1020_v16 = vpack.c.bf16 %v1010_v46, %v1008_v32  ;;  %v998_v19 = vpop.f32.mrb[28].mxu0 }
 0x4df   :  { %v999_v20 = vadd.f32 %v998_v19, %v931_v14  ;;  %v1000_v50 = vpop.f32.mrb[29].mxu0  ;;  %v4158_v19 = vld [vmem:[%s5775_s0 + $0x30] sm:$0xff] }
 0x4e0   :  { %v1001_v52 = vadd.f32 %v1000_v50, %v931_v14  ;;  %v1002_v44 = vpop.f32.mrb[30].mxu0  ;;  %1063 = vmatprep.subr.bf16.mxu0 %v1020_v16  ;;  %v4159_v50 = vld [vmem:[%s5775_s0 + $0x28] sm:$0xff] }
 0x4e1   :  { %v1003_v51 = vadd.f32 %v1002_v44, %v936_v22  ;;  %v1004_v53 = vpop.f32.mrb[31].mxu0  ;;  %1064 = vmatpush1.bf16.msra.mxu0 %v1019_v10  ;;  %v1011_v55 = vmax.f32 %v999_v20, 0.0 }
 0x4e2   :  { %v1005_v54 = vadd.f32 %v1004_v53, %v936_v22  ;;  %v1012_v57 = vmax.f32 %v1001_v52, 0.0  ;;  %v4160_v52 = vld [vmem:[%s5775_s0 + $0x38] sm:$0xff] }
 0x4e3   :  { %v1013_v60 = vmax.f32 %v1003_v51, 0.0 }
 0x4e4   :  { %v1014_v61 = vmax.f32 %v1005_v54, 0.0 }
 0x4e5   :  { %v1021_v47 = vpack.c.bf16 %v1013_v60, %v1011_v55 }
 0x4e6   :  { %v1022_v49 = vpack.c.bf16 %v1014_v61, %v1012_v57 }
 0x4e8   :  { %1065 = vmatprep.subr.bf16.mxu0 %v1022_v49 }
 0x4e9   :  { %1066 = vmatpush1.bf16.msra.mxu0 %v1021_v47 }
 0x4ea   :  { %1194 = vmatprep.subr.bf16.mxu0 %v4875_v63 }
 0x4ec   :  { %3643 = vmatmul.mubr.msk.bf16.vlgmr.msra.gmra.mrb[32].mxu0 %vm585_vm1, %v4053_v15 }
 0x4ed   :  { %1105 = vmatprep.mubr.bf16.mxu0 %v5787_v45  ;;  %1195 = vmatpush1.bf16.msra.mxu0 %v4883_v48 }
 0x4ee   :  { %1196 = vmatprep.subr.bf16.mxu0 %v4889_v11 }
 0x4f1   :  { %1197 = vmatpush1.bf16.msra.mxu0 %v4898_v1 }
 0x4f2   :  { %1198 = vmatprep.subr.bf16.mxu0 %v4449_v36 }
 0x4f4   :  { %3644 = vmatmul.mubr.msk.bf16.gmra.mrb[36].mxu0 %vm585_vm1, %v4054_v21 }
 0x4f5   :  { %1199 = vmatpush1.bf16.msra.mxu0 %v4459_v38  ;;  %1226 = vmatprep.mubr.bf16.mxu0 %v5787_v45 }
 0x4f6   :  { %1200 = vmatprep.subr.bf16.mxu0 %v4473_v40  ;;  %v4154_v40 = vld [vmem:[%s5775_s0 + $0x10] sm:$0xff] }
 0x4f9   :  { %1201 = vmatpush1.bf16.msra.mxu0 %v4483_v42 }
 0x4fa   :  { %1300 = vmatprep.subr.bf16.mxu0 %v4910_v12 }
 0x5bf   :  { %v1097_v58 = vpop.f32.mrb[32].mxu0 }
 0x5c0   :  { %v1099_v36 = vpop.f32.mrb[33].mxu0  ;;  %v1098_v38 = vadd.f32 %v1097_v58, %v1030_v18 }
 0x5c1   :  { %v1100_v31 = vadd.f32 %v1099_v36, %v1030_v18  ;;  %v1101_v35 = vpop.f32.mrb[34].mxu0  ;;  %v3647_v18 = vld [vmem:[%s5778_s3 + $0x30] sm:$0xff] }
 0x5c2   :  { %v1102_v34 = vadd.f32 %v1101_v35, %v1035_v62  ;;  %v1103_v4 = vpop.f32.mrb[35].mxu0  ;;  %v4931_v3 = vadd.f32 %v4157_v30, %v1098_v38  ;;  %v4989_v36 = vld [vmem:[%s5777_s2 + $0x10] ss:$24 sps:$4 sm:$0xff]   ;;  %v4999_v38 = vld [vmem:[%s5777_s2 + $0x44] ss:$24 sps:$4 sm:$0xff]  }
 0x5c3   :  { %v1104_v0 = vadd.f32 %v1103_v4, %v1035_v62  ;;  %v4921_v28 = vadd.f32 %v4155_v5, %v1100_v31  ;;  %v3648_v31 = vld [vmem:[%s5778_s3 + $0x38] sm:$0xff] }
 0x5c4   :  { %v4916_v42 = vadd.f32 %v4154_v40, %v1102_v34 }
 0x5c5   :  { %v4926_v6 = vadd.f32 %v4156_v24, %v1104_v0  ;;  %v5006_v0 = vld [vmem:[%s5777_s2 + $0x40] ss:$24 sps:$4 sm:$0xff]  }
 0x5c6   :  { %v4939_v29 = vpack.c.bf16 %v4916_v42, %v4931_v3 }
 0x5c7   :  { %v1107_v27 = vpop.f32.mrb[36].mxu0  ;;  %v4935_v9 = vpack.c.bf16 %v4926_v6, %v4921_v28 }
 0x5c8   :  { %v1109_v7 = vpop.f32.mrb[37].mxu0  ;;  %v1108_v46 = vadd.f32 %v1107_v27, %v1040_v2 }
 0x5c9   :  { %v1110_v33 = vadd.f32 %v1109_v7, %v1040_v2  ;;  %v1111_v32 = vpop.f32.mrb[38].mxu0  ;;  %1160 = vmatprep.mubr.bf16.mxu1 %v4935_v9 }
 0x5ca   :  { %v1112_v10 = vadd.f32 %v1111_v32, %v1045_v8  ;;  %v1113_v14 = vpop.f32.mrb[39].mxu0  ;;  %1161 = vmatmul.mubr.bf16.vlgmr.msra.gmra.mrb[40].mxu1 %v4939_v29 }
 0x5cb   :  { %v1114_v16 = vadd.f32 %v1113_v14, %v1045_v8  ;;  %1248 = vmatpush1.bf16.msra.mxu1 %v4513_v56  ;;  %v4953_v22 = vadd.f32 %v4159_v50, %v1110_v33  ;;  %v4161_v56 = vld [vmem:[%s5775_s0 + $0x20] sm:$0xff] }
 0x5cc   :  { %v4947_v20 = vadd.f32 %v4158_v19, %v1112_v10  ;;  %1249 = vmatprep.subr.bf16.mxu1 %v4518_v59  ;;  %v4963_v51 = vadd.f32 %v4161_v56, %v1108_v46 }
 0x5cd   :  { %v4958_v44 = vadd.f32 %v4160_v52, %v1114_v16 }
 0x5ce   :  { %v1126_v53 = vpack.c.bf16 %v4947_v20, %v4963_v51 }
 0x5cf   :  { %v1127_v59 = vpack.c.bf16 %v4958_v44, %v4953_v22  ;;  %1250 = vmatpush1.bf16.msra.mxu1 %v4532_v13  ;;  %v3645_v13 = vld [vmem:[%s5778_s3 + $0x20] sm:$0xff] }
 0x5d0   :  { %1251 = vmatprep.subr.bf16.mxu1 %v4540_v17  ;;  %v3646_v17 = vld [vmem:[%s5778_s3 + $0x28] sm:$0xff] }
 0x5d1   :  { %1168 = vmatprep.mubr.bf16.mxu1 %v1127_v59 }
 0x5d2   :  { %1169 = vmatmul.mubr.bf16.gmra.mrb[44].mxu1 %v1126_v53 }
 0x5d3   :  { %1252 = vmatpush1.bf16.msra.mxu1 %v4548_v23  ;;  %1279 = vmatprep.mubr.bf16.mxu1 %v5787_v45 }
 0x5d4   :  { %1253 = vmatprep.subr.bf16.mxu1 %v4554_v25 }
 0x5d7   :  { %1254 = vmatpush1.bf16.msra.mxu1 %v4563_v26 }
 0x69d   :  { %v3887_v54 = vpop.f32.mrb[40].mxu1 }
 0x69e   :  { %v3888_v55 = vpop.f32.mrb[41].mxu1 }
 0x69f   :  { %v3889_v60 = vadd.f32 %v3888_v55, %v3887_v54  ;;  %v3890_v57 = vpop.f32.mrb[42].mxu1 }
 0x6a0   :  { %v3891_v61 = vpop.f32.mrb[43].mxu1 }
 0x6a1   :  { %v3892_v23 = vadd.f32 %v3891_v61, %v3890_v57  ;;  %v1182_v47 = vmul.f32 %v3889_v60, %v3645_v13 }
 0x6a3   :  { %v1183_v49 = vmul.f32 %v3892_v23, %v3646_v17  ;;  %v4056_v17 = vld [vmem:[%s5779_s4 + $0x28] sm:$0xff]  }
 0x6a5   :  { %v1186_v15 = vpack.c.bf16 %v1183_v49, %v1182_v47  ;;  %v3893_v25 = vpop.f32.mrb[44].mxu1 }
 0x6a6   :  { %v3894_v21 = vpop.f32.mrb[45].mxu1 }
 0x6a7   :  { %v3895_v26 = vadd.f32 %v3894_v21, %v3893_v25  ;;  %v3896_v58 = vpop.f32.mrb[46].mxu1  ;;  %3649 = vmatmul.mubr.msk.bf16.vlgmr.msra.gmra.mrb[40].mxu0 %vm383_vm0, %v1186_v15  ;;  %3651 = vmatmul.mubr.msk.bf16.vlgmr.msra.gmra.mrb[48].mxu1 %vm383_vm0, %v1186_v15 }
 0x6a8   :  { %1301 = vmatpush1.bf16.msra.mxu0 %v4989_v36  ;;  %v3897_v62 = vpop.f32.mrb[47].mxu1  ;;  %1236 = vmatprep.mubr.bf16.mxu0 %v5787_v45 }
 0x6a9   :  { %v3898_v35 = vadd.f32 %v3897_v62, %v3896_v58  ;;  %1302 = vmatprep.subr.bf16.mxu0 %v4999_v38  ;;  %1289 = vmatprep.mubr.bf16.mxu1 %v5787_v45  ;;  %v1184_v34 = vmul.f32 %v3895_v26, %v3647_v18  ;;  %v4057_v26 = vld [vmem:[%s5779_s4 + $0x30] sm:$0xff]   ;;  %v5087_v58 = vld [vmem:[%s5776_s1 + $0x40] sm:$0xff]   ;;  %v4058_v18 = vld [vmem:[%s5779_s4 + $0x38] sm:$0xff]  }
 0x6aa   :  { %v5102_v62 = vld [vmem:[%s5776_s1] sm:$0xff]  }
 0x6ab   :  { %v1185_v4 = vmul.f32 %v3898_v35, %v3648_v31  ;;  %v5108_v31 = vld [vmem:[%s5776_s1 + $0x48] sm:$0xff]  }
 0x6ac   :  { %1303 = vmatpush1.bf16.msra.mxu0 %v5006_v0  ;;  %v5114_v35 = vld [vmem:[%s5776_s1 + $0x8] sm:$0xff]  }
 0x6ad   :  { %v1187_v40 = vpack.c.bf16 %v1185_v4, %v1184_v34  ;;  %1304 = vmatprep.subr.bf16.mxu0 %v4454_v37  ;;  %v5120_v34 = vld [vmem:[%s5776_s1 + $0x50] sm:$0xff]  }
 0x6ae   :  { %v5128_v4 = vld [vmem:[%s5776_s1 + $0x10] sm:$0xff]  }
 0x6af   :  { %3650 = vmatmul.mubr.msk.bf16.gmra.mrb[44].mxu0 %vm383_vm0, %v1187_v40  ;;  %3652 = vmatmul.mubr.msk.bf16.gmra.mrb[52].mxu1 %vm383_vm0, %v1187_v40 }
 0x6b0   :  { %1305 = vmatpush1.bf16.msra.mxu0 %v4464_v39  ;;  %1332 = vmatprep.mubr.bf16.mxu0 %v5787_v45 }
 0x6b1   :  { %1306 = vmatprep.subr.bf16.mxu0 %v4478_v41  ;;  %1434 = vmatprep.mubr.bf16.mxu1 %v5787_v45 }
 0x6b4   :  { %1307 = vmatpush1.bf16.msra.mxu0 %v4488_v43 }
 0x6b5   :  { %1650 = vmatprep.subr.bf16.mxu0 %v4935_v9 }
 0x6b7   :  { %3653 = vmatmul.mubr.msk.bf16.vlgmr.msra.gmra.mrb[48].mxu0 %vm383_vm0, %v1186_v15 }
 0x6b8   :  { %1651 = vmatpush1.bf16.msra.mxu0 %v4939_v29  ;;  %1342 = vmatprep.mubr.bf16.mxu0 %v5787_v45 }
 0x6b9   :  { %1652 = vmatprep.subr.bf16.mxu0 %v1127_v59 }
 0x6bc   :  { %1653 = vmatpush1.bf16.msra.mxu0 %v1126_v53  ;;  %v4055_v53 = vld [vmem:[%s5779_s4 + $0x20] sm:$0xff]  }
 0x6bf   :  { %3654 = vmatmul.mubr.msk.bf16.gmra.mrb[52].mxu0 %vm383_vm0, %v1187_v40  ;;  %v5134_v40 = vld [vmem:[%s5776_s1 + $0x58] sm:$0xff]  }
 0x6c0   :  { %1682 = vmatprep.mubr.bf16.mxu0 %v5787_v45 }
 0x77a   :  { %v1228_v37 = vpop.f32.mrb[40].mxu0  ;;  %v5023_v39 = vpop.f32.mrb[48].mxu1 }
 0x77b   :  { %v1230_v41 = vpop.f32.mrb[41].mxu0  ;;  %v5025_v5 = vpop.f32.mrb[49].mxu1 }
 0x77c   :  { %v1232_v43 = vpop.f32.mrb[42].mxu0  ;;  %v5027_v24 = vpop.f32.mrb[50].mxu1 }
 0x77d   :  { %v1596_v30 = vpack.c.bf16 %v1232_v43, %v1228_v37  ;;  %v1362_v27 = vpack.c.bf16 %v5027_v24, %v5023_v39  ;;  %v1234_v9 = vpop.f32.mrb[43].mxu0  ;;  %v5031_v2 = vpop.f32.mrb[51].mxu1  ;;  %v5140_v37 = vld [vmem:[%s5776_s1 + $0x18] sm:$0xff]   ;;  %v5154_v43 = vld [vmem:[%s5776_s1 + $0x20] sm:$0xff]  }
 0x77e   :  { %v1597_v29 = vpack.c.bf16 %v1234_v9, %v1230_v41  ;;  %v1363_v7 = vpack.c.bf16 %v5031_v2, %v5025_v5  ;;  %v5146_v41 = vld [vmem:[%s5776_s1 + $0x60] sm:$0xff]   ;;  %5800 = vst [vmem:[#allocation6_spill] sm:$0xff] %v5154_v43  ;;  %v5172_v9 = vld [vmem:[%s5776_s1 + $0x70] sm:$0xff]  }
 0x77f   :  { %5799 = vst [vmem:[#allocation5_spill] sm:$0xff] %v5146_v41  ;;  %5803 = vst [vmem:[#allocation9_spill] sm:$0xff] %v5172_v9 }
 0x780   :  { %1402 = vmatprep.subr.bf16.mxu1 %v1363_v7  ;;  %1654 = vmatprep.subr.bf16.mxu0 %v1597_v29  ;;  %v5179_v29 = vld [vmem:[%s5776_s1 + $0x30] sm:$0xff]   ;;  %v5185_v7 = vld [vmem:[%s5776_s1 + $0x78] sm:$0xff]  }
 0x781   :  { %1403 = vmatpush1.bf16.msra.mxu1 %v1362_v27  ;;  %1655 = vmatpush1.bf16.msra.mxu0 %v1596_v30  ;;  %v5160_v30 = vld [vmem:[%s5776_s1 + $0x68] sm:$0xff]   ;;  %5804 = vst [vmem:[#allocation10_spill] sm:$0xff] %v5179_v29  ;;  %5805 = vst [vmem:[#allocation11_spill] sm:$0xff] %v5185_v7 }
 0x782   :  { %v1238_v8 = vpop.f32.mrb[44].mxu0  ;;  %v5035_v33 = vpop.f32.mrb[52].mxu1  ;;  %5801 = vst [vmem:[#allocation7_spill] sm:$0xff] %v5160_v30  ;;  %v5166_v27 = vld [vmem:[%s5776_s1 + $0x28] sm:$0xff]  }
 0x783   :  { %v1240_v32 = vpop.f32.mrb[45].mxu0  ;;  %v5037_v46 = vpop.f32.mrb[53].mxu1  ;;  %5802 = vst [vmem:[#allocation8_spill] sm:$0xff] %v5166_v27 }
 0x784   :  { %v1242_v10 = vpop.f32.mrb[46].mxu0  ;;  %v5039_v14 = vpop.f32.mrb[54].mxu1 }
 0x785   :  { %v1598_v16 = vpack.c.bf16 %v1242_v10, %v1238_v8  ;;  %v1366_v19 = vpack.c.bf16 %v5039_v14, %v5035_v33  ;;  %v1244_v50 = vpop.f32.mrb[47].mxu0  ;;  %v5043_v52 = vpop.f32.mrb[55].mxu1  ;;  %v5191_v8 = vld [vmem:[%s5776_s1 + $0x38] sm:$0xff]  }
 0x786   :  { %v1599_v56 = vpack.c.bf16 %v1244_v50, %v1240_v32  ;;  %v1367_v59 = vpack.c.bf16 %v5043_v52, %v5037_v46  ;;  %5806 = vst [vmem:[#allocation12_spill] sm:$0xff] %v5191_v8 }
 0x788   :  { %1404 = vmatprep.subr.bf16.mxu1 %v1367_v59  ;;  %1656 = vmatprep.subr.bf16.mxu0 %v1599_v56 }
 0x789   :  { %1405 = vmatpush1.bf16.msra.mxu1 %v1366_v19  ;;  %1657 = vmatpush1.bf16.msra.mxu0 %v1598_v16 }
 0x78a   :  { %v5050_v54 = vpop.f32.mrb[48].mxu0 }
 0x78b   :  { %v5052_v55 = vpop.f32.mrb[49].mxu0 }
 0x78c   :  { %v5054_v60 = vpop.f32.mrb[50].mxu0  ;;  %3667 = vmatmul.mubr.msk.bf16.vlgmr.msra.gmra.mrb[56].mxu1 %vm585_vm1, %v4055_v53 }
 0x78d   :  { %v1364_v57 = vpack.c.bf16 %v5054_v60, %v5050_v54  ;;  %v5059_v13 = vpop.f32.mrb[51].mxu0  ;;  %1444 = vmatprep.mubr.bf16.mxu1 %v5787_v45 }
 0x78e   :  { %v1365_v61 = vpack.c.bf16 %v5059_v13, %v5052_v55 }
 0x790   :  { %1475 = vmatprep.subr.bf16.mxu1 %v1365_v61 }
 0x791   :  { %1476 = vmatpush1.bf16.msra.mxu1 %v1364_v57 }
 0x792   :  { %v5067_v23 = vpop.f32.mrb[52].mxu0 }
 0x793   :  { %v5069_v47 = vpop.f32.mrb[53].mxu0 }
 0x794   :  { %v5071_v49 = vpop.f32.mrb[54].mxu0  ;;  %3668 = vmatmul.mubr.msk.bf16.gmra.mrb[60].mxu1 %vm585_vm1, %v4056_v17 }
 0x795   :  { %v1368_v15 = vpack.c.bf16 %v5071_v49, %v5067_v23  ;;  %v5076_v25 = vpop.f32.mrb[55].mxu0  ;;  %1454 = vmatprep.mubr.bf16.mxu1 %v5787_v45 }
 0x796   :  { %v1369_v21 = vpack.c.bf16 %v5076_v25, %v5069_v47 }
 0x798   :  { %1477 = vmatprep.subr.bf16.mxu1 %v1369_v21 }
 0x799   :  { %1478 = vmatpush1.bf16.msra.mxu1 %v1368_v15 }
 0x79a   :  { %3899 = vmatprep.subr.bf16.mxu1 %v5087_v58 }
 0x79c   :  { %3669 = vmatmul.mubr.msk.bf16.gmra.mrb[64].mxu1 %vm585_vm1, %v4057_v26 }
 0x79d   :  { %1464 = vmatprep.mubr.bf16.mxu1 %v5787_v45 }
 0x7a4   :  { %3670 = vmatmul.mubr.msk.bf16.gmra.mrb[68].mxu1 %vm585_vm1, %v4058_v18 }
 0x7a5   :  { %1507 = vmatprep.mubr.bf16.mxu1 %v5787_v45 }
 0x7ac   :  { %3671 = vmatmul.mubr.msk.bf16.vlgmr.msra.gmra.mrb[64].mxu1 %vm585_vm1, %v4055_v53 }
 0x7ad   :  { %1517 = vmatprep.mubr.bf16.mxu1 %v5787_v45  ;;  %3900 = vmatpush3.bf16.msra.mxu1 %v5102_v62 }
 0x7ae   :  { %3901 = vmatprep.subr.bf16.mxu1 %v5108_v31 }
 0x7b1   :  { %3902 = vmatpush3.bf16.msra.mxu1 %v5114_v35 }
 0x7b2   :  { %3903 = vmatprep.subr.bf16.mxu1 %v5120_v34 }
 0x7b4   :  { %3672 = vmatmul.mubr.msk.bf16.gmra.mrb[68].mxu1 %vm585_vm1, %v4056_v17 }
 0x7b5   :  { %1527 = vmatprep.mubr.bf16.mxu1 %v5787_v45  ;;  %3904 = vmatpush3.bf16.msra.mxu1 %v5128_v4 }
 0x7b6   :  { %3905 = vmatprep.subr.bf16.mxu1 %v5134_v40 }
 0x7b9   :  { %3906 = vmatpush3.bf16.msra.mxu1 %v5140_v37 }
 0x7ba   :  { %3907 = vmatprep.subr.bf16.mxu1 %v5146_v41 }
 0x7bc   :  { %3673 = vmatmul.mubr.msk.bf16.gmra.mrb[72].mxu1 %vm585_vm1, %v4057_v26 }
 0x7bd   :  { %1537 = vmatprep.mubr.bf16.mxu1 %v5787_v45  ;;  %3908 = vmatpush3.bf16.msra.mxu1 %v5154_v43 }
 0x7be   :  { %3909 = vmatprep.subr.bf16.mxu1 %v5160_v30 }
 0x7c1   :  { %3910 = vmatpush3.bf16.msra.mxu1 %v5166_v27 }
 0x7c2   :  { %3911 = vmatprep.subr.bf16.mxu1 %v5172_v9 }
 0x7c4   :  { %3674 = vmatmul.mubr.msk.bf16.gmra.mrb[76].mxu1 %vm585_vm1, %v4058_v18 }
 0x7c5   :  { %3912 = vmatpush3.bf16.msra.mxu1 %v5179_v29 }
 0x7c6   :  { %3913 = vmatprep.subr.bf16.mxu1 %v5185_v7 }
 0x7c9   :  { %3914 = vmatpush3.bf16.msra.mxu1 %v5191_v8 }
 0x7ca   :  { %2109 = vmatprep.subr.bf16.mxu1 %v4910_v12 }
 0x85f   :  { %v1436_v32 = vpop.f32.mrb[56].mxu1 }
 0x860   :  { %v1438_v10 = vpop.f32.mrb[57].mxu1 }
 0x861   :  { %v1440_v16 = vpop.f32.mrb[58].mxu1 }
 0x862   :  { %v1442_v19 = vpop.f32.mrb[59].mxu1 }
 0x867   :  { %v1446_v50 = vpop.f32.mrb[60].mxu1 }
 0x868   :  { %v1448_v56 = vpop.f32.mrb[61].mxu1 }
 0x869   :  { %v1450_v59 = vpop.f32.mrb[62].mxu1 }
 0x86a   :  { %v1452_v53 = vpop.f32.mrb[63].mxu1 }
 0x87f   :  { %v1509_v57 = vpop.f32.mrb[64].mxu1 }
 0x880   :  { %v1572_v61 = vmul.f32 %v1509_v57, %v5050_v54  ;;  %v1511_v17 = vpop.f32.mrb[65].mxu1 }
 0x881   :  { %v1573_v15 = vmul.f32 %v1511_v17, %v5052_v55  ;;  %v1513_v21 = vpop.f32.mrb[66].mxu1 }
 0x882   :  { %v1574_v26 = vmul.f32 %v1513_v21, %v5054_v60  ;;  %v1515_v18 = vpop.f32.mrb[67].mxu1 }
 0x883   :  { %v1575_v12 = vmul.f32 %v1515_v18, %v5059_v13 }
 0x887   :  { %v1519_v45 = vpop.f32.mrb[68].mxu1 }
 0x888   :  { %v1576_v8 = vmul.f32 %v1519_v45, %v5067_v23  ;;  %v1521_v7 = vpop.f32.mrb[69].mxu1 }
 0x889   :  { %v1577_v29 = vmul.f32 %v1521_v7, %v5069_v47  ;;  %v1523_v9 = vpop.f32.mrb[70].mxu1 }
 0x88a   :  { %v1578_v27 = vmul.f32 %v1523_v9, %v5071_v49  ;;  %v1525_v30 = vpop.f32.mrb[71].mxu1 }
 0x88b   :  { %v1579_v54 = vmul.f32 %v1525_v30, %v5076_v25 }
 0x88f   :  { %v1529_v57 = vpop.f32.mrb[72].mxu1 }
 0x890   :  { %v1548_v55 = vsub.f32 %v1436_v32, %v1529_v57  ;;  %v1531_v17 = vpop.f32.mrb[73].mxu1 }
 0x891   :  { %v1549_v43 = vsub.f32 %v1438_v10, %v1531_v17  ;;  %v1533_v60 = vpop.f32.mrb[74].mxu1 }
 0x892   :  { %v1564_v21 = vmul.f32 %v1548_v55, %v5023_v39  ;;  %v1550_v13 = vsub.f32 %v1440_v16, %v1533_v60  ;;  %v1535_v18 = vpop.f32.mrb[75].mxu1  ;;  %v4060_v60 = vld [vmem:[%s5780_s5 + $0x18] sm:$0xff]  }
 0x893   :  { %v1565_v45 = vmul.f32 %v1549_v43, %v5025_v5  ;;  %v1551_v23 = vsub.f32 %v1442_v19, %v1535_v18 }
 0x894   :  { %v1580_v41 = vadd.f32 %v1572_v61, %v1564_v21  ;;  %v1566_v47 = vmul.f32 %v1550_v13, %v5027_v24  ;;  %v1617_v21 = vpop.permute.xlu0 %1616 }
 0x895   :  { %v1581_v7 = vadd.f32 %v1573_v15, %v1565_v45  ;;  %v1567_v49 = vmul.f32 %v1551_v23, %v5031_v2  ;;  %v1622_v23 = vpop.permute.xlu1 %1621 }
 0x896   :  { %4101 = vtanh.f32 %v1580_v41  ;;  %v1582_v25 = vadd.f32 %v1574_v26, %v1566_v47 }
 0x897   :  { %4103 = vtanh.f32 %v1581_v7  ;;  %v1583_v30 = vadd.f32 %v1575_v12, %v1567_v49  ;;  %v1539_v9 = vpop.f32.mrb[76].mxu1 }
 0x898   :  { %4105 = vtanh.f32 %v1582_v25  ;;  %v1552_v32 = vsub.f32 %v1446_v50, %v1539_v9  ;;  %v1541_v10 = vpop.f32.mrb[77].mxu1 }
 0x899   :  { %4107 = vtanh.f32 %v1583_v30  ;;  %v1553_v39 = vsub.f32 %v1448_v56, %v1541_v10  ;;  %v1543_v16 = vpop.f32.mrb[78].mxu1 }
 0x89a   :  { %v1568_v5 = vmul.f32 %v1552_v32, %v5035_v33  ;;  %v1554_v43 = vsub.f32 %v1450_v59, %v1543_v16  ;;  %v1545_v19 = vpop.f32.mrb[79].mxu1 }
 0x89b   :  { %v1569_v24 = vmul.f32 %v1553_v39, %v5037_v46  ;;  %v1555_v61 = vsub.f32 %v1452_v53, %v1545_v19 }
 0x89c   :  { %v1584_v15 = vadd.f32 %v1576_v8, %v1568_v5  ;;  %v1570_v2 = vmul.f32 %v1554_v43, %v5039_v14  ;;  %v1627_v5 = vpop.permute.xlu0 %1626 }
 0x89d   :  { %v1585_v41 = vadd.f32 %v1577_v29, %v1569_v24  ;;  %v1571_v26 = vmul.f32 %v1555_v61, %v5043_v52 }
 0x89e   :  { %4109 = vtanh.f32 %v1584_v15  ;;  %v1586_v12 = vadd.f32 %v1578_v27, %v1570_v2  ;;  %v4059_v27 = vld [vmem:[%s5780_s5 + $0x10] sm:$0xff]   ;;  %v1632_v15 = vpop.permute.xlu1 %1631 }
 0x89f   :  { %4111 = vtanh.f32 %v1585_v41  ;;  %v1587_v50 = vadd.f32 %v1579_v54, %v1571_v26  ;;  %v5807_v54 = vmov 0  }
 0x8a0   :  { %v4102_v57 = vpop.eup %4101  ;;  %4113 = vtanh.f32 %v1586_v12 }
 0x8a1   :  { %v4104_v56 = vpop.eup %4103  ;;  %4115 = vtanh.f32 %v1587_v50 }
 0x8a2   :  { %v4106_v33 = vpop.eup %4105 }
 0x8a3   :  { %v4108_v59 = vpop.eup %4107  ;;  %v1600_v55 = vpack.c.bf16 %v4106_v33, %v4102_v57 }
 0x8a4   :  { %v1601_v17 = vpack.c.bf16 %v4108_v59, %v4104_v56 }
 0x8a6   :  { %1658 = vmatprep.subr.bf16.mxu0 %v1601_v17 }
 0x8a7   :  { %1659 = vmatpush1.bf16.msra.mxu0 %v1600_v55 }
 0x8a8   :  { %v4110_v46 = vpop.eup %4109 }
 0x8a9   :  { %v4112_v8 = vpop.eup %4111 }
 0x8aa   :  { %v4114_v14 = vpop.eup %4113 }
 0x8ab   :  { %v4116_v29 = vpop.eup %4115  ;;  %v1602_v53 = vpack.c.bf16 %v4114_v14, %v4110_v46  ;;  %v4061_v46 = vld [vmem:[%s5782_s7 + $0x10] sm:$0xff]   ;;  %v1728_v14 = vpop.permute.xlu0 %1727 }
 0x8ac   :  { %v1603_v52 = vpack.c.bf16 %v4116_v29, %v4112_v8  ;;  %v4062_v8 = vld [vmem:[%s5782_s7 + $0x18] sm:$0xff]  }
 0x8ae   :  { %1660 = vmatprep.subr.bf16.mxu0 %v1603_v52 }
 0x8af   :  { %1661 = vmatpush1.bf16.msra.mxu0 %v1602_v53 }
 0x8b2   :  { %3685 = vmatmul.mubr.msk.bf16.vlgmr.msra.gmra.mrb[56].mxu0 %vm838_vm2, %v4059_v27  ;;  %v1733_v27 = vpop.permute.xlu1 %1732 }
 0x8b3   :  { %1692 = vmatprep.mubr.bf16.mxu0 %v5807_v54 }
 0x8ba   :  { %3686 = vmatmul.mubr.msk.bf16.gmra.mrb[60].mxu0 %vm838_vm2, %v4060_v60 }
 0x8bb   :  { %1793 = vmatprep.mubr.bf16.mxu0 %v5807_v54 }
 0x985   :  { %v1684_v13 = vpop.f32.mrb[56].mxu0 }
 0x986   :  { %v1685_v18 = vadd.f32 %v1684_v13, %v1617_v21  ;;  %v1686_v45 = vpop.f32.mrb[57].mxu0 }
 0x987   :  { %v1687_v47 = vadd.f32 %v1686_v45, %v1617_v21  ;;  %v1688_v7 = vpop.f32.mrb[58].mxu0 }
 0x988   :  { %v1689_v49 = vadd.f32 %v1688_v7, %v1622_v23  ;;  %v1690_v25 = vpop.f32.mrb[59].mxu0  ;;  %v1703_v9 = vmax.f32 %v1685_v18, 0.0 }
 0x989   :  { %v1691_v30 = vadd.f32 %v1690_v25, %v1622_v23  ;;  %v1704_v10 = vmax.f32 %v1687_v47, 0.0 }
 0x98a   :  { %v1705_v32 = vmax.f32 %v1689_v49, 0.0 }
 0x98b   :  { %v1706_v39 = vmax.f32 %v1691_v30, 0.0  ;;  %v1738_v30 = vpop.permute.xlu0 %1737 }
 0x98c   :  { %v1716_v16 = vpack.c.bf16 %v1705_v32, %v1703_v9 }
 0x98d   :  { %v1717_v43 = vpack.c.bf16 %v1706_v39, %v1704_v10  ;;  %v1694_v19 = vpop.f32.mrb[60].mxu0 }
 0x98e   :  { %v1695_v24 = vadd.f32 %v1694_v19, %v1627_v5  ;;  %v1696_v61 = vpop.f32.mrb[61].mxu0 }
 0x98f   :  { %v1697_v2 = vadd.f32 %v1696_v61, %v1627_v5  ;;  %v1698_v41 = vpop.f32.mrb[62].mxu0  ;;  %1761 = vmatprep.subr.bf16.mxu0 %v1717_v43 }
 0x990   :  { %v1699_v26 = vadd.f32 %v1698_v41, %v1632_v15  ;;  %v1700_v12 = vpop.f32.mrb[63].mxu0  ;;  %1762 = vmatpush1.bf16.msra.mxu0 %v1716_v16  ;;  %v1707_v57 = vmax.f32 %v1695_v24, 0.0  ;;  %v1743_v16 = vpop.permute.xlu1 %1742 }
 0x991   :  { %v1701_v50 = vadd.f32 %v1700_v12, %v1632_v15  ;;  %v1708_v33 = vmax.f32 %v1697_v2, 0.0 }
 0x992   :  { %v1709_v56 = vmax.f32 %v1699_v26, 0.0 }
 0x993   :  { %v1710_v59 = vmax.f32 %v1701_v50, 0.0 }
 0x994   :  { %v1718_v55 = vpack.c.bf16 %v1709_v56, %v1707_v57  ;;  %v4063_v57 = vld [vmem:[%s5784_s9 + $0x10] sm:$0xff]   ;;  %v4064_v56 = vld [vmem:[%s5784_s9 + $0x18] sm:$0xff]  }
 0x995   :  { %v1719_v17 = vpack.c.bf16 %v1710_v59, %v1708_v33  ;;  %v5246_v33 = vld [vmem:[%s5777_s2 + $0x64] ss:$24 sps:$4 sm:$0xff]  }
 0x997   :  { %1763 = vmatprep.subr.bf16.mxu0 %v1719_v17 }
 0x998   :  { %1764 = vmatpush1.bf16.msra.mxu0 %v1718_v55  ;;  %v1839_v55 = vpop.permute.xlu0 %1838 }
 0x99b   :  { %3697 = vmatmul.mubr.msk.bf16.vlgmr.msra.gmra.mrb[64].mxu0 %vm585_vm1, %v4061_v46  ;;  %v1844_v46 = vpop.permute.xlu1 %1843 }
 0x99c   :  { %1803 = vmatprep.mubr.bf16.mxu0 %v5807_v54 }
 0x9a3   :  { %3698 = vmatmul.mubr.msk.bf16.gmra.mrb[68].mxu0 %vm585_vm1, %v4062_v8 }
 0x9a4   :  { %1904 = vmatprep.mubr.bf16.mxu0 %v5807_v54 }
 0xa6e   :  { %v1795_v29 = vpop.f32.mrb[64].mxu0 }
 0xa6f   :  { %v1796_v53 = vadd.f32 %v1795_v29, %v1728_v14  ;;  %v1797_v52 = vpop.f32.mrb[65].mxu0 }
 0xa70   :  { %v1798_v60 = vadd.f32 %v1797_v52, %v1728_v14  ;;  %v1799_v21 = vpop.f32.mrb[66].mxu0 }
 0xa71   :  { %v1800_v13 = vadd.f32 %v1799_v21, %v1733_v27  ;;  %v1801_v18 = vpop.f32.mrb[67].mxu0  ;;  %v1814_v23 = vmax.f32 %v1796_v53, 0.0 }
 0xa72   :  { %v1802_v45 = vadd.f32 %v1801_v18, %v1733_v27  ;;  %v1815_v7 = vmax.f32 %v1798_v60, 0.0 }
 0xa73   :  { %v1816_v47 = vmax.f32 %v1800_v13, 0.0 }
 0xa74   :  { %v1817_v49 = vmax.f32 %v1802_v45, 0.0 }
 0xa75   :  { %v1827_v25 = vpack.c.bf16 %v1816_v47, %v1814_v23  ;;  %v1849_v47 = vpop.permute.xlu0 %1848 }
 0xa76   :  { %v1828_v9 = vpack.c.bf16 %v1817_v49, %v1815_v7  ;;  %v1805_v32 = vpop.f32.mrb[68].mxu0 }
 0xa77   :  { %v1806_v10 = vadd.f32 %v1805_v32, %v1738_v30  ;;  %v1807_v39 = vpop.f32.mrb[69].mxu0 }
 0xa78   :  { %v1808_v5 = vadd.f32 %v1807_v39, %v1738_v30  ;;  %v1809_v43 = vpop.f32.mrb[70].mxu0  ;;  %1872 = vmatprep.subr.bf16.mxu0 %v1828_v9 }
 0xa79   :  { %v1810_v19 = vadd.f32 %v1809_v43, %v1743_v16  ;;  %v1811_v24 = vpop.f32.mrb[71].mxu0  ;;  %1873 = vmatpush1.bf16.msra.mxu0 %v1827_v25  ;;  %v1818_v15 = vmax.f32 %v1806_v10, 0.0 }
 0xa7a   :  { %v1812_v61 = vadd.f32 %v1811_v24, %v1743_v16  ;;  %v1819_v41 = vmax.f32 %v1808_v5, 0.0  ;;  %v3711_v24 = vld [vmem:[%s5778_s3 + $0x40] sm:$0xff] }
 0xa7b   :  { %v1820_v2 = vmax.f32 %v1810_v19, 0.0 }
 0xa7c   :  { %v1821_v26 = vmax.f32 %v1812_v61, 0.0 }
 0xa7d   :  { %v1829_v12 = vpack.c.bf16 %v1820_v2, %v1818_v15  ;;  %v3712_v15 = vld [vmem:[%s5778_s3 + $0x48] sm:$0xff] }
 0xa7e   :  { %v1830_v50 = vpack.c.bf16 %v1821_v26, %v1819_v41 }
 0xa80   :  { %1874 = vmatprep.subr.bf16.mxu0 %v1830_v50 }
 0xa81   :  { %1875 = vmatpush1.bf16.msra.mxu0 %v1829_v12 }
 0xa82   :  { %2003 = vmatprep.subr.bf16.mxu0 %v4875_v63  ;;  %v5253_v63 = vld [vmem:[%s5777_s2 + $0x60] ss:$24 sps:$4 sm:$0xff]  }
 0xa84   :  { %3709 = vmatmul.mubr.msk.bf16.vlgmr.msra.gmra.mrb[72].mxu0 %vm585_vm1, %v4063_v57 }
 0xa85   :  { %1914 = vmatprep.mubr.bf16.mxu0 %v5807_v54  ;;  %2004 = vmatpush1.bf16.msra.mxu0 %v4883_v48  ;;  %v5260_v48 = vld [vmem:[%s5777_s2 + $0x94] ss:$24 sps:$4 sm:$0xff]  }
 0xa86   :  { %2005 = vmatprep.subr.bf16.mxu0 %v4889_v11  ;;  %v5266_v11 = vld [vmem:[%s5777_s2 + $0x90] ss:$24 sps:$4 sm:$0xff]  }
 0xa89   :  { %2006 = vmatpush1.bf16.msra.mxu0 %v4898_v1  ;;  %v5272_v1 = vld [vmem:[%s5777_s2 + $0xc] ss:$24 sps:$4 sm:$0xff]  }
 0xa8a   :  { %2007 = vmatprep.subr.bf16.mxu0 %v5246_v33 }
 0xa8c   :  { %3710 = vmatmul.mubr.msk.bf16.gmra.mrb[76].mxu0 %vm585_vm1, %v4064_v56 }
 0xa8d   :  { %2008 = vmatpush1.bf16.msra.mxu0 %v5253_v63  ;;  %2035 = vmatprep.mubr.bf16.mxu0 %v5807_v54 }
 0xa8e   :  { %2009 = vmatprep.subr.bf16.mxu0 %v5260_v48 }
 0xa91   :  { %2010 = vmatpush1.bf16.msra.mxu0 %v5266_v11 }
 0xa92   :  { %2056 = vmatprep.subr.bf16.mxu0 %v5272_v1 }
 0xb57   :  { %v1906_v59 = vpop.f32.mrb[72].mxu0 }
 0xb58   :  { %v1908_v17 = vpop.f32.mrb[73].mxu0  ;;  %v1907_v29 = vadd.f32 %v1906_v59, %v1839_v55 }
 0xb59   :  { %v1909_v8 = vadd.f32 %v1908_v17, %v1839_v55  ;;  %v1910_v14 = vpop.f32.mrb[74].mxu0  ;;  %v3713_v55 = vld [vmem:[%s5778_s3 + $0x50] sm:$0xff] }
 0xb5a   :  { %v1911_v53 = vadd.f32 %v1910_v14, %v1844_v46  ;;  %v1912_v52 = vpop.f32.mrb[75].mxu0  ;;  %v5285_v18 = vadd.f32 %v1907_v29, %v4931_v3  ;;  %v5358_v29 = vld [vmem:[%s5777_s2 + $0x3c] ss:$24 sps:$4 sm:$0xff]  }
 0xb5b   :  { %v1913_v27 = vadd.f32 %v1912_v52, %v1844_v46  ;;  %v5279_v21 = vadd.f32 %v1909_v8, %v4921_v28  ;;  %v3714_v46 = vld [vmem:[%s5778_s3 + $0x58] sm:$0xff]  ;;  %v5352_v8 = vld [vmem:[%s5777_s2 + $0x8] ss:$24 sps:$4 sm:$0xff]  }
 0xb5c   :  { %v5276_v60 = vadd.f32 %v1911_v53, %v4916_v42  ;;  %v1854_v42 = vpop.permute.xlu1 %1853 }
 0xb5d   :  { %v5282_v13 = vadd.f32 %v1913_v27, %v4926_v6  ;;  %v5366_v27 = vld [vmem:[%s5777_s2 + $0x38] ss:$24 sps:$4 sm:$0xff]  }
 0xb5e   :  { %v1933_v7 = vpack.c.bf16 %v5276_v60, %v5285_v18 }
 0xb5f   :  { %v1916_v45 = vpop.f32.mrb[76].mxu0  ;;  %v1934_v23 = vpack.c.bf16 %v5282_v13, %v5279_v21 }
 0xb60   :  { %v1918_v49 = vpop.f32.mrb[77].mxu0  ;;  %v1917_v28 = vadd.f32 %v1916_v45, %v1849_v47 }
 0xb61   :  { %v1919_v25 = vadd.f32 %v1918_v49, %v1849_v47  ;;  %v1920_v30 = vpop.f32.mrb[78].mxu0  ;;  %1969 = vmatprep.mubr.bf16.mxu1 %v1934_v23  ;;  %v5380_v47 = vld [vmem:[%s5777_s2 + $0x68] ss:$24 sps:$4 sm:$0xff]   ;;  %v5394_v49 = vld [vmem:[%s5777_s2 + $0x98] ss:$24 sps:$4 sm:$0xff]  }
 0xb62   :  { %v1921_v9 = vadd.f32 %v1920_v30, %v1854_v42  ;;  %v1922_v6 = vpop.f32.mrb[79].mxu0  ;;  %1970 = vmatmul.mubr.bf16.vlgmr.msra.gmra.mrb[80].mxu1 %v1933_v7  ;;  %v5303_v16 = vadd.f32 %v1917_v28, %v4963_v51  ;;  %v5326_v51 = vld [vmem:[%s5777_s2 + $0xa4] ss:$24 sps:$4 sm:$0xff]   ;;  %5809 = vst [vmem:[#allocation14_spill] sm:$0xff] %v5394_v49 }
 0xb63   :  { %v1923_v32 = vadd.f32 %v1922_v6, %v1854_v42  ;;  %2110 = vmatpush1.bf16.msra.mxu1 %v4989_v36  ;;  %v5297_v10 = vadd.f32 %v1919_v25, %v4953_v22  ;;  %v5332_v36 = vld [vmem:[%s5777_s2 + $0xa0] ss:$24 sps:$4 sm:$0xff]  }
 0xb64   :  { %v5293_v3 = vadd.f32 %v1921_v9, %v4947_v20  ;;  %2111 = vmatprep.subr.bf16.mxu1 %v4999_v38  ;;  %v5311_v20 = vld [vmem:[%s5777_s2 + $0x74] ss:$24 sps:$4 sm:$0xff]  }
 0xb65   :  { %v5300_v39 = vadd.f32 %v1923_v32, %v4958_v44  ;;  %v5319_v44 = vld [vmem:[%s5777_s2 + $0x70] ss:$24 sps:$4 sm:$0xff]  }
 0xb66   :  { %v1935_v22 = vpack.c.bf16 %v5293_v3, %v5303_v16 }
 0xb67   :  { %2112 = vmatpush1.bf16.msra.mxu1 %v5006_v0  ;;  %v1936_v5 = vpack.c.bf16 %v5300_v39, %v5297_v10 }
 0xb68   :  { %2113 = vmatprep.subr.bf16.mxu1 %v5311_v20 }
 0xb69   :  { %1977 = vmatprep.mubr.bf16.mxu1 %v1936_v5 }
 0xb6a   :  { %1978 = vmatmul.mubr.bf16.gmra.mrb[84].mxu1 %v1935_v22 }
 0xb6b   :  { %2114 = vmatpush1.bf16.msra.mxu1 %v5319_v44  ;;  %2141 = vmatprep.mubr.bf16.mxu1 %v5807_v54 }
 0xb6c   :  { %2115 = vmatprep.subr.bf16.mxu1 %v5326_v51 }
 0xb6f   :  { %2116 = vmatpush1.bf16.msra.mxu1 %v5332_v36 }
 0xb70   :  { %2459 = vmatprep.subr.bf16.mxu1 %v1934_v23  ;;  %v5372_v23 = vld [vmem:[%s5777_s2 + $0x6c] ss:$24 sps:$4 sm:$0xff]  }
 0xc35   :  { %v3915_v38 = vpop.f32.mrb[80].mxu1 }
 0xc36   :  { %v3916_v0 = vpop.f32.mrb[81].mxu1 }
 0xc37   :  { %v3917_v43 = vadd.f32 %v3916_v0, %v3915_v38  ;;  %v3918_v19 = vpop.f32.mrb[82].mxu1 }
 0xc38   :  { %v3919_v61 = vpop.f32.mrb[83].mxu1 }
 0xc39   :  { %v3920_v2 = vadd.f32 %v3919_v61, %v3918_v19  ;;  %v1991_v41 = vmul.f32 %v3917_v43, %v3711_v24 }
 0xc3b   :  { %v1992_v26 = vmul.f32 %v3920_v2, %v3712_v15 }
 0xc3d   :  { %v1995_v12 = vpack.c.bf16 %v1992_v26, %v1991_v41  ;;  %v3921_v50 = vpop.f32.mrb[84].mxu1 }
 0xc3e   :  { %v3922_v57 = vpop.f32.mrb[85].mxu1 }
 0xc3f   :  { %v3923_v56 = vadd.f32 %v3922_v57, %v3921_v50  ;;  %v3924_v59 = vpop.f32.mrb[86].mxu1  ;;  %3715 = vmatmul.mubr.msk.bf16.vlgmr.msra.gmra.mrb[80].mxu0 %vm383_vm0, %v1995_v12  ;;  %3719 = vmatmul.mubr.msk.bf16.vlgmr.msra.gmra.mrb[88].mxu1 %vm383_vm0, %v1995_v12 }
 0xc40   :  { %2460 = vmatpush1.bf16.msra.mxu1 %v1933_v7  ;;  %v3925_v17 = vpop.f32.mrb[87].mxu1  ;;  %2057 = vmatpush1.bf16.msra.mxu0 %v5352_v8  ;;  %v5387_v7 = vld [vmem:[%s5777_s2 + $0x9c] ss:$24 sps:$4 sm:$0xff]  }
 0xc41   :  { %v3926_v14 = vadd.f32 %v3925_v17, %v3924_v59  ;;  %2461 = vmatprep.subr.bf16.mxu1 %v1936_v5  ;;  %2058 = vmatprep.subr.bf16.mxu0 %v5358_v29  ;;  %v1993_v53 = vmul.f32 %v3923_v56, %v3713_v55  ;;  %5808 = vst [vmem:[#allocation13_spill] sm:$0xff] %v5387_v7 }
 0xc42   :  { %2045 = vmatprep.mubr.bf16.mxu0 %v5807_v54  ;;  %2151 = vmatprep.mubr.bf16.mxu1 %v5807_v54 }
 0xc43   :  { %v1994_v52 = vmul.f32 %v3926_v14, %v3714_v46 }
 0xc44   :  { %2462 = vmatpush1.bf16.msra.mxu1 %v1935_v22  ;;  %2059 = vmatpush1.bf16.msra.mxu0 %v5366_v27 }
 0xc45   :  { %v1996_v45 = vpack.c.bf16 %v1994_v52, %v1993_v53  ;;  %2060 = vmatprep.subr.bf16.mxu0 %v5372_v23 }
 0xc47   :  { %3716 = vmatmul.mubr.msk.bf16.gmra.mrb[84].mxu0 %vm383_vm0, %v1996_v45  ;;  %3720 = vmatmul.mubr.msk.bf16.gmra.mrb[92].mxu1 %vm383_vm0, %v1996_v45 }
 0xc48   :  { %2061 = vmatpush1.bf16.msra.mxu0 %v5380_v47  ;;  %2088 = vmatprep.mubr.bf16.mxu0 %v5807_v54 }
 0xc49   :  { %2062 = vmatprep.subr.bf16.mxu0 %v5387_v7  ;;  %2491 = vmatprep.mubr.bf16.mxu1 %v5807_v54 }
 0xc4c   :  { %2063 = vmatpush1.bf16.msra.mxu0 %v5394_v49 }
 0xc4f   :  { %3717 = vmatmul.mubr.msk.bf16.vlgmr.msra.gmra.mrb[88].mxu0 %vm383_vm0, %v1995_v12 }
 0xc50   :  { %2098 = vmatprep.mubr.bf16.mxu0 %v5807_v54 }
 0xc57   :  { %3718 = vmatmul.mubr.msk.bf16.gmra.mrb[92].mxu0 %vm383_vm0, %v1996_v45 }
 0xc58   :  { %2243 = vmatprep.mubr.bf16.mxu0 %v5807_v54 }
 0xd12   :  { %v2037_v42 = vpop.f32.mrb[80].mxu0  ;;  %v5401_v25 = vpop.f32.mrb[88].mxu1 }
 0xd13   :  { %v2039_v30 = vpop.f32.mrb[81].mxu0  ;;  %v5403_v28 = vpop.f32.mrb[89].mxu1 }
 0xd14   :  { %v2041_v9 = vpop.f32.mrb[82].mxu0  ;;  %v5405_v6 = vpop.f32.mrb[90].mxu1 }
 0xd15   :  { %v2405_v32 = vpack.c.bf16 %v2041_v9, %v2037_v42  ;;  %v2173_v5 = vpack.c.bf16 %v5405_v6, %v5401_v25  ;;  %v2043_v22 = vpop.f32.mrb[83].mxu0  ;;  %v5409_v38 = vpop.f32.mrb[91].mxu1 }
 0xd16   :  { %v2406_v0 = vpack.c.bf16 %v2043_v22, %v2039_v30  ;;  %v2174_v43 = vpack.c.bf16 %v5409_v38, %v5403_v28 }
 0xd18   :  { %2463 = vmatprep.subr.bf16.mxu1 %v2406_v0  ;;  %v4065_v0 = vld [vmem:[%s5779_s4 + $0x40] sm:$0xff]  }
 0xd19   :  { %2464 = vmatpush1.bf16.msra.mxu1 %v2405_v32 }
 0xd1a   :  { %v2047_v19 = vpop.f32.mrb[84].mxu0  ;;  %v5413_v24 = vpop.f32.mrb[92].mxu1 }
 0xd1b   :  { %v2049_v61 = vpop.f32.mrb[85].mxu0  ;;  %v5415_v15 = vpop.f32.mrb[93].mxu1 }
 0xd1c   :  { %v2051_v2 = vpop.f32.mrb[86].mxu0  ;;  %v5417_v41 = vpop.f32.mrb[94].mxu1 }
 0xd1d   :  { %v2407_v26 = vpack.c.bf16 %v2051_v2, %v2047_v19  ;;  %v2177_v12 = vpack.c.bf16 %v5417_v41, %v5413_v24  ;;  %v2053_v50 = vpop.f32.mrb[87].mxu0  ;;  %v5421_v57 = vpop.f32.mrb[95].mxu1  ;;  %v4066_v19 = vld [vmem:[%s5779_s4 + $0x48] sm:$0xff]  }
 0xd1e   :  { %v2408_v56 = vpack.c.bf16 %v2053_v50, %v2049_v61  ;;  %v2178_v59 = vpack.c.bf16 %v5421_v57, %v5415_v15  ;;  %v4197_v61 = vld [vmem:[%s5777_s2 + $0x14] ss:$24 sps:$4 sm:$0xff]  }
 0xd20   :  { %2465 = vmatprep.subr.bf16.mxu1 %v2408_v56 }
 0xd21   :  { %2466 = vmatpush1.bf16.msra.mxu1 %v2407_v26 }
 0xd22   :  { %v5425_v55 = vpop.f32.mrb[88].mxu0 }
 0xd23   :  { %v5427_v17 = vpop.f32.mrb[89].mxu0 }
 0xd24   :  { %v5429_v46 = vpop.f32.mrb[90].mxu0 }
 0xd25   :  { %v2171_v14 = vpack.c.bf16 %v5429_v46, %v5425_v55  ;;  %v5433_v53 = vpop.f32.mrb[91].mxu0 }
 0xd26   :  { %v2172_v52 = vpack.c.bf16 %v5433_v53, %v5427_v17 }
 0xd28   :  { %2211 = vmatprep.subr.bf16.mxu0 %v2172_v52 }
 0xd29   :  { %2212 = vmatpush1.bf16.msra.mxu0 %v2171_v14 }
 0xd2a   :  { %v5437_v45 = vpop.f32.mrb[92].mxu0 }
 0xd2b   :  { %v5439_v42 = vpop.f32.mrb[93].mxu0 }
 0xd2c   :  { %v5441_v30 = vpop.f32.mrb[94].mxu0 }
 0xd2d   :  { %v2175_v9 = vpack.c.bf16 %v5441_v30, %v5437_v45  ;;  %v5445_v32 = vpop.f32.mrb[95].mxu0 }
 0xd2e   :  { %v2176_v22 = vpack.c.bf16 %v5445_v32, %v5439_v42 }
 0xd30   :  { %2213 = vmatprep.subr.bf16.mxu0 %v2176_v22 }
 0xd31   :  { %2214 = vmatpush1.bf16.msra.mxu0 %v2175_v9 }
 0xd32   :  { %2284 = vmatprep.subr.bf16.mxu0 %v2174_v43  ;;  %v4067_v43 = vld [vmem:[%s5779_s4 + $0x50] sm:$0xff]  }
 0xd34   :  { %3733 = vmatmul.mubr.msk.bf16.vlgmr.msra.gmra.mrb[96].mxu0 %vm585_vm1, %v4065_v0 }
 0xd35   :  { %2285 = vmatpush1.bf16.msra.mxu0 %v2173_v5  ;;  %2253 = vmatprep.mubr.bf16.mxu0 %v5807_v54  ;;  %v4068_v5 = vld [vmem:[%s5779_s4 + $0x58] sm:$0xff]  }
 0xd36   :  { %2286 = vmatprep.subr.bf16.mxu0 %v2178_v59 }
 0xd39   :  { %2287 = vmatpush1.bf16.msra.mxu0 %v2177_v12 }
 0xd3a   :  { %3927 = vmatprep.subr.bf16.mxu0 %v5087_v58  ;;  %v5810_v58 = vld [vmem:[#allocation5_spill] sm:$0xff] }
 0xd3c   :  { %3734 = vmatmul.mubr.msk.bf16.gmra.mrb[100].mxu0 %vm585_vm1, %v4066_v19 }
 0xd3d   :  { %2263 = vmatprep.mubr.bf16.mxu0 %v5807_v54 }
 0xd44   :  { %3735 = vmatmul.mubr.msk.bf16.gmra.mrb[104].mxu0 %vm585_vm1, %v4067_v43 }
 0xd45   :  { %2273 = vmatprep.mubr.bf16.mxu0 %v5807_v54 }
 0xd4c   :  { %3736 = vmatmul.mubr.msk.bf16.gmra.mrb[108].mxu0 %vm585_vm1, %v4068_v5 }
 0xd4d   :  { %2316 = vmatprep.mubr.bf16.mxu0 %v5807_v54 }
 0xd54   :  { %3737 = vmatmul.mubr.msk.bf16.vlgmr.msra.gmra.mrb[104].mxu0 %vm585_vm1, %v4065_v0 }
 0xd55   :  { %2326 = vmatprep.mubr.bf16.mxu0 %v5807_v54  ;;  %3928 = vmatpush3.bf16.msra.mxu0 %v5102_v62  ;;  %v5811_v62 = vld [vmem:[#allocation6_spill] sm:$0xff] }
 0xd56   :  { %3929 = vmatprep.subr.bf16.mxu0 %v5108_v31  ;;  %v5812_v31 = vld [vmem:[#allocation7_spill] sm:$0xff] }
 0xd59   :  { %3930 = vmatpush3.bf16.msra.mxu0 %v5114_v35  ;;  %v5813_v35 = vld [vmem:[#allocation8_spill] sm:$0xff] }
 0xd5a   :  { %3931 = vmatprep.subr.bf16.mxu0 %v5120_v34  ;;  %v5814_v34 = vld [vmem:[#allocation9_spill] sm:$0xff] }
 0xd5c   :  { %3738 = vmatmul.mubr.msk.bf16.gmra.mrb[108].mxu0 %vm585_vm1, %v4066_v19 }
 0xd5d   :  { %2336 = vmatprep.mubr.bf16.mxu0 %v5807_v54  ;;  %3932 = vmatpush3.bf16.msra.mxu0 %v5128_v4  ;;  %v5815_v4 = vld [vmem:[#allocation10_spill] sm:$0xff] }
 0xd5e   :  { %3933 = vmatprep.subr.bf16.mxu0 %v5134_v40  ;;  %v5816_v40 = vld [vmem:[#allocation11_spill] sm:$0xff] }
 0xd61   :  { %3934 = vmatpush3.bf16.msra.mxu0 %v5140_v37  ;;  %v5817_v37 = vld [vmem:[#allocation12_spill] sm:$0xff] }
 0xd62   :  { %3935 = vmatprep.subr.bf16.mxu0 %v5810_v58 }
 0xd64   :  { %3739 = vmatmul.mubr.msk.bf16.gmra.mrb[112].mxu0 %vm585_vm1, %v4067_v43 }
 0xd65   :  { %2346 = vmatprep.mubr.bf16.mxu0 %v5807_v54  ;;  %3936 = vmatpush3.bf16.msra.mxu0 %v5811_v62 }
 0xd66   :  { %3937 = vmatprep.subr.bf16.mxu0 %v5812_v31 }
 0xd69   :  { %3938 = vmatpush3.bf16.msra.mxu0 %v5813_v35 }
 0xd6a   :  { %3939 = vmatprep.subr.bf16.mxu0 %v5814_v34 }
 0xd6c   :  { %3740 = vmatmul.mubr.msk.bf16.gmra.mrb[116].mxu0 %vm585_vm1, %v4068_v5 }
 0xd6d   :  { %3940 = vmatpush3.bf16.msra.mxu0 %v5815_v4 }
 0xd6e   :  { %3941 = vmatprep.subr.bf16.mxu0 %v5816_v40 }
 0xd71   :  { %3942 = vmatpush3.bf16.msra.mxu0 %v5817_v37 }
 0xd72   :  { %2918 = vmatprep.subr.bf16.mxu0 %v4197_v61 }
 0xe07   :  { %v2245_v2 = vpop.f32.mrb[96].mxu0 }
 0xe08   :  { %v2247_v26 = vpop.f32.mrb[97].mxu0 }
 0xe09   :  { %v2249_v12 = vpop.f32.mrb[98].mxu0 }
 0xe0a   :  { %v2251_v50 = vpop.f32.mrb[99].mxu0 }
 0xe0f   :  { %v2255_v56 = vpop.f32.mrb[100].mxu0 }
 0xe10   :  { %v2257_v59 = vpop.f32.mrb[101].mxu0 }
 0xe11   :  { %v2259_v14 = vpop.f32.mrb[102].mxu0 }
 0xe12   :  { %v2261_v52 = vpop.f32.mrb[103].mxu0 }
 0xe27   :  { %v2318_v9 = vpop.f32.mrb[104].mxu0 }
 0xe28   :  { %v2381_v22 = vmul.f32 %v2318_v9, %v5401_v25  ;;  %v2320_v0 = vpop.f32.mrb[105].mxu0 }
 0xe29   :  { %v2382_v19 = vmul.f32 %v2320_v0, %v5403_v28  ;;  %v2322_v43 = vpop.f32.mrb[106].mxu0 }
 0xe2a   :  { %v2383_v5 = vmul.f32 %v2322_v43, %v5405_v6  ;;  %v2324_v58 = vpop.f32.mrb[107].mxu0 }
 0xe2b   :  { %v2384_v62 = vmul.f32 %v2324_v58, %v5409_v38 }
 0xe2f   :  { %v2328_v31 = vpop.f32.mrb[108].mxu0 }
 0xe30   :  { %v2385_v35 = vmul.f32 %v2328_v31, %v5413_v24  ;;  %v2330_v34 = vpop.f32.mrb[109].mxu0 }
 0xe31   :  { %v2386_v4 = vmul.f32 %v2330_v34, %v5415_v15  ;;  %v2332_v40 = vpop.f32.mrb[110].mxu0 }
 0xe32   :  { %v2387_v37 = vmul.f32 %v2332_v40, %v5417_v41  ;;  %v2334_v61 = vpop.f32.mrb[111].mxu0 }
 0xe33   :  { %v2388_v25 = vmul.f32 %v2334_v61, %v5421_v57 }
 0xe37   :  { %v2338_v9 = vpop.f32.mrb[112].mxu0 }
 0xe38   :  { %v2357_v28 = vsub.f32 %v2245_v2, %v2338_v9  ;;  %v2340_v0 = vpop.f32.mrb[113].mxu0 }
 0xe39   :  { %v2358_v49 = vsub.f32 %v2247_v26, %v2340_v0  ;;  %v2342_v6 = vpop.f32.mrb[114].mxu0 }
 0xe3a   :  { %v2373_v43 = vmul.f32 %v2357_v28, %v5425_v55  ;;  %v2359_v38 = vsub.f32 %v2249_v12, %v2342_v6  ;;  %v2344_v58 = vpop.f32.mrb[115].mxu0  ;;  %v2426_v6 = vpop.permute.xlu0 %2425 }
 0xe3b   :  { %v2374_v24 = vmul.f32 %v2358_v49, %v5427_v17  ;;  %v2360_v31 = vsub.f32 %v2251_v50, %v2344_v58 }
 0xe3c   :  { %v2389_v7 = vadd.f32 %v2381_v22, %v2373_v43  ;;  %v2375_v15 = vmul.f32 %v2359_v38, %v5429_v46 }
 0xe3d   :  { %v2390_v34 = vadd.f32 %v2382_v19, %v2374_v24  ;;  %v2376_v41 = vmul.f32 %v2360_v31, %v5433_v53  ;;  %v2431_v24 = vpop.permute.xlu1 %2430 }
 0xe3e   :  { %4117 = vtanh.f32 %v2389_v7  ;;  %v2391_v57 = vadd.f32 %v2383_v5, %v2375_v15 }
 0xe3f   :  { %4119 = vtanh.f32 %v2390_v34  ;;  %v2392_v2 = vadd.f32 %v2384_v62, %v2376_v41  ;;  %v2348_v40 = vpop.f32.mrb[116].mxu0 }
 0xe40   :  { %4121 = vtanh.f32 %v2391_v57  ;;  %v2361_v26 = vsub.f32 %v2255_v56, %v2348_v40  ;;  %v2350_v61 = vpop.f32.mrb[117].mxu0 }
 0xe41   :  { %4123 = vtanh.f32 %v2392_v2  ;;  %v2362_v55 = vsub.f32 %v2257_v59, %v2350_v61  ;;  %v2352_v12 = vpop.f32.mrb[118].mxu0 }
 0xe42   :  { %v2377_v49 = vmul.f32 %v2361_v26, %v5437_v45  ;;  %v2363_v17 = vsub.f32 %v2259_v14, %v2352_v12  ;;  %v2354_v50 = vpop.f32.mrb[119].mxu0  ;;  %v2436_v12 = vpop.permute.xlu0 %2435 }
 0xe43   :  { %v2378_v46 = vmul.f32 %v2362_v55, %v5439_v42  ;;  %v2364_v22 = vsub.f32 %v2261_v52, %v2354_v50 }
 0xe44   :  { %v2393_v19 = vadd.f32 %v2385_v35, %v2377_v49  ;;  %v2379_v7 = vmul.f32 %v2363_v17, %v5441_v30 }
 0xe45   :  { %v2394_v53 = vadd.f32 %v2386_v4, %v2378_v46  ;;  %v2380_v5 = vmul.f32 %v2364_v22, %v5445_v32  ;;  %v2441_v22 = vpop.permute.xlu1 %2440 }
 0xe46   :  { %4125 = vtanh.f32 %v2393_v19  ;;  %v2395_v62 = vadd.f32 %v2387_v37, %v2379_v7  ;;  %v4069_v37 = vld [vmem:[%s5780_s5 + $0x20] sm:$0xff]  }
 0xe47   :  { %4127 = vtanh.f32 %v2394_v53  ;;  %v2396_v56 = vadd.f32 %v2388_v25, %v2380_v5  ;;  %v4070_v25 = vld [vmem:[%s5780_s5 + $0x28] sm:$0xff]  }
 0xe48   :  { %v4118_v9 = vpop.eup %4117  ;;  %4129 = vtanh.f32 %v2395_v62 }
 0xe49   :  { %v4120_v59 = vpop.eup %4119  ;;  %4131 = vtanh.f32 %v2396_v56 }
 0xe4a   :  { %v4122_v45 = vpop.eup %4121 }
 0xe4b   :  { %v4124_v14 = vpop.eup %4123  ;;  %v2409_v28 = vpack.c.bf16 %v4122_v45, %v4118_v9 }
 0xe4c   :  { %v2410_v0 = vpack.c.bf16 %v4124_v14, %v4120_v59 }
 0xe4e   :  { %2467 = vmatprep.subr.bf16.mxu1 %v2410_v0  ;;  %v4071_v0 = vld [vmem:[%s5782_s7 + $0x20] sm:$0xff]  }
 0xe4f   :  { %2468 = vmatpush1.bf16.msra.mxu1 %v2409_v28 }
 0xe50   :  { %v4126_v42 = vpop.eup %4125 }
 0xe51   :  { %v4128_v52 = vpop.eup %4127 }
 0xe52   :  { %v4130_v30 = vpop.eup %4129 }
 0xe53   :  { %v4132_v35 = vpop.eup %4131  ;;  %v2411_v4 = vpack.c.bf16 %v4130_v30, %v4126_v42  ;;  %v4072_v42 = vld [vmem:[%s5782_s7 + $0x28] sm:$0xff]  }
 0xe54   :  { %v2412_v32 = vpack.c.bf16 %v4132_v35, %v4128_v52  ;;  %v2537_v52 = vpop.permute.xlu0 %2536 }
 0xe56   :  { %2469 = vmatprep.subr.bf16.mxu1 %v2412_v32  ;;  %v2542_v32 = vpop.permute.xlu1 %2541 }
 0xe57   :  { %2470 = vmatpush1.bf16.msra.mxu1 %v2411_v4 }
 0xe5a   :  { %3751 = vmatmul.mubr.msk.bf16.vlgmr.msra.gmra.mrb[96].mxu1 %vm838_vm2, %v4069_v37 }
 0xe5b   :  { %2501 = vmatprep.mubr.bf16.mxu1 %v5807_v54 }
 0xe62   :  { %3752 = vmatmul.mubr.msk.bf16.gmra.mrb[100].mxu1 %vm838_vm2, %v4070_v25 }
 0xe63   :  { %2602 = vmatprep.mubr.bf16.mxu1 %v5807_v54 }
 0xf2d   :  { %v2493_v43 = vpop.f32.mrb[96].mxu1 }
 0xf2e   :  { %v2494_v38 = vadd.f32 %v2493_v43, %v2426_v6  ;;  %v2495_v58 = vpop.f32.mrb[97].mxu1 }
 0xf2f   :  { %v2496_v31 = vadd.f32 %v2495_v58, %v2426_v6  ;;  %v2497_v15 = vpop.f32.mrb[98].mxu1 }
 0xf30   :  { %v2498_v34 = vadd.f32 %v2497_v15, %v2431_v24  ;;  %v2499_v41 = vpop.f32.mrb[99].mxu1  ;;  %v2512_v2 = vmax.f32 %v2494_v38, 0.0 }
 0xf31   :  { %v2500_v57 = vadd.f32 %v2499_v41, %v2431_v24  ;;  %v2513_v26 = vmax.f32 %v2496_v31, 0.0  ;;  %v2547_v41 = vpop.permute.xlu0 %2546 }
 0xf32   :  { %v2514_v40 = vmax.f32 %v2498_v34, 0.0 }
 0xf33   :  { %v2515_v61 = vmax.f32 %v2500_v57, 0.0 }
 0xf34   :  { %v2525_v55 = vpack.c.bf16 %v2514_v40, %v2512_v2 }
 0xf35   :  { %v2526_v49 = vpack.c.bf16 %v2515_v61, %v2513_v26  ;;  %v2503_v17 = vpop.f32.mrb[100].mxu1  ;;  %v2552_v61 = vpop.permute.xlu1 %2551 }
 0xf36   :  { %v2504_v50 = vadd.f32 %v2503_v17, %v2436_v12  ;;  %v2505_v46 = vpop.f32.mrb[101].mxu1 }
 0xf37   :  { %v2506_v19 = vadd.f32 %v2505_v46, %v2436_v12  ;;  %v2507_v7 = vpop.f32.mrb[102].mxu1  ;;  %2570 = vmatprep.subr.bf16.mxu1 %v2526_v49 }
 0xf38   :  { %v2508_v53 = vadd.f32 %v2507_v7, %v2441_v22  ;;  %v2509_v5 = vpop.f32.mrb[103].mxu1  ;;  %2571 = vmatpush1.bf16.msra.mxu1 %v2525_v55  ;;  %v2516_v56 = vmax.f32 %v2504_v50, 0.0 }
 0xf39   :  { %v2510_v62 = vadd.f32 %v2509_v5, %v2441_v22  ;;  %v2517_v59 = vmax.f32 %v2506_v19, 0.0 }
 0xf3a   :  { %v2518_v9 = vmax.f32 %v2508_v53, 0.0 }
 0xf3b   :  { %v2519_v45 = vmax.f32 %v2510_v62, 0.0  ;;  %v4073_v62 = vld [vmem:[%s5784_s9 + $0x20] sm:$0xff]  }
 0xf3c   :  { %v2527_v14 = vpack.c.bf16 %v2518_v9, %v2516_v56  ;;  %v4198_v56 = vld [vmem:[%s5777_s2 + $0x4] ss:$24 sps:$4 sm:$0xff]   ;;  %v4199_v9 = vld [vmem:[%s5777_s2] ss:$24 sps:$4 sm:$0xff]  }
 0xf3d   :  { %v2528_v28 = vpack.c.bf16 %v2519_v45, %v2517_v59  ;;  %v4200_v59 = vld [vmem:[%s5777_s2 + $0x34] ss:$24 sps:$4 sm:$0xff]  }
 0xf3e   :  { %v4074_v45 = vld [vmem:[%s5784_s9 + $0x28] sm:$0xff]  }
 0xf3f   :  { %2572 = vmatprep.subr.bf16.mxu1 %v2528_v28 }
 0xf40   :  { %2573 = vmatpush1.bf16.msra.mxu1 %v2527_v14  ;;  %v4201_v14 = vld [vmem:[%s5777_s2 + $0x30] ss:$24 sps:$4 sm:$0xff]  }
 0xf43   :  { %3763 = vmatmul.mubr.msk.bf16.vlgmr.msra.gmra.mrb[104].mxu1 %vm585_vm1, %v4071_v0  ;;  %v2648_v0 = vpop.permute.xlu0 %2647 }
 0xf44   :  { %2612 = vmatprep.mubr.bf16.mxu1 %v5807_v54 }
 0xf4b   :  { %3764 = vmatmul.mubr.msk.bf16.gmra.mrb[108].mxu1 %vm585_vm1, %v4072_v42 }
 0xf4c   :  { %2713 = vmatprep.mubr.bf16.mxu1 %v5807_v54 }
0x1016   :  { %v2604_v30 = vpop.f32.mrb[104].mxu1 }
0x1017   :  { %v2605_v35 = vadd.f32 %v2604_v30, %v2537_v52  ;;  %v2606_v4 = vpop.f32.mrb[105].mxu1 }
0x1018   :  { %v2607_v37 = vadd.f32 %v2606_v4, %v2537_v52  ;;  %v2608_v25 = vpop.f32.mrb[106].mxu1  ;;  %v2653_v52 = vpop.permute.xlu1 %2652 }
0x1019   :  { %v2609_v6 = vadd.f32 %v2608_v25, %v2542_v32  ;;  %v2610_v43 = vpop.f32.mrb[107].mxu1  ;;  %v2623_v58 = vmax.f32 %v2605_v35, 0.0 }
0x101a   :  { %v2611_v38 = vadd.f32 %v2610_v43, %v2542_v32  ;;  %v2624_v31 = vmax.f32 %v2607_v37, 0.0  ;;  %v2658_v43 = vpop.permute.xlu0 %2657 }
0x101b   :  { %v2625_v24 = vmax.f32 %v2609_v6, 0.0 }
0x101c   :  { %v2626_v15 = vmax.f32 %v2611_v38, 0.0 }
0x101d   :  { %v2636_v34 = vpack.c.bf16 %v2625_v24, %v2623_v58 }
0x101e   :  { %v2637_v57 = vpack.c.bf16 %v2626_v15, %v2624_v31  ;;  %v2614_v2 = vpop.f32.mrb[108].mxu1 }
0x101f   :  { %v2615_v40 = vadd.f32 %v2614_v2, %v2547_v41  ;;  %v2616_v26 = vpop.f32.mrb[109].mxu1 }
0x1020   :  { %v2617_v55 = vadd.f32 %v2616_v26, %v2547_v41  ;;  %v2618_v12 = vpop.f32.mrb[110].mxu1  ;;  %2681 = vmatprep.subr.bf16.mxu1 %v2637_v57  ;;  %v4203_v57 = vld [vmem:[%s5777_s2 + $0x44] ss:$24 sps:$4 sm:$0xff]  }
0x1021   :  { %v2619_v49 = vadd.f32 %v2618_v12, %v2552_v61  ;;  %v2620_v17 = vpop.f32.mrb[111].mxu1  ;;  %2682 = vmatpush1.bf16.msra.mxu1 %v2636_v34  ;;  %v2627_v46 = vmax.f32 %v2615_v40, 0.0 }
0x1022   :  { %v2621_v50 = vadd.f32 %v2620_v17, %v2552_v61  ;;  %v2628_v19 = vmax.f32 %v2617_v55, 0.0  ;;  %v4204_v61 = vld [vmem:[%s5777_s2 + $0x40] ss:$24 sps:$4 sm:$0xff]  }
0x1023   :  { %v2629_v22 = vmax.f32 %v2619_v49, 0.0 }
0x1024   :  { %v2630_v7 = vmax.f32 %v2621_v50, 0.0 }
0x1025   :  { %v2638_v53 = vpack.c.bf16 %v2629_v22, %v2627_v46 }
0x1026   :  { %v2639_v5 = vpack.c.bf16 %v2630_v7, %v2628_v19 }
0x1028   :  { %2683 = vmatprep.subr.bf16.mxu1 %v2639_v5 }
0x1029   :  { %2684 = vmatpush1.bf16.msra.mxu1 %v2638_v53  ;;  %v3779_v53 = vld [vmem:[%s5778_s3 + $0x70] sm:$0xff] }
0x102a   :  { %2812 = vmatprep.subr.bf16.mxu1 %v4198_v56 }
0x102c   :  { %3775 = vmatmul.mubr.msk.bf16.vlgmr.msra.gmra.mrb[112].mxu1 %vm585_vm1, %v4073_v62  ;;  %v3780_v62 = vld [vmem:[%s5778_s3 + $0x78] sm:$0xff] }
0x102d   :  { %2723 = vmatprep.mubr.bf16.mxu1 %v5807_v54  ;;  %2813 = vmatpush1.bf16.msra.mxu1 %v4199_v9 }
0x102e   :  { %2814 = vmatprep.subr.bf16.mxu1 %v4200_v59 }
0x1031   :  { %2815 = vmatpush1.bf16.msra.mxu1 %v4201_v14 }
0x1032   :  { %2816 = vmatprep.subr.bf16.mxu1 %v5246_v33 }
0x1034   :  { %3776 = vmatmul.mubr.msk.bf16.gmra.mrb[116].mxu1 %vm585_vm1, %v4074_v45 }
0x1035   :  { %2817 = vmatpush1.bf16.msra.mxu1 %v5253_v63  ;;  %2844 = vmatprep.mubr.bf16.mxu1 %v5807_v54 }
0x1036   :  { %2818 = vmatprep.subr.bf16.mxu1 %v5260_v48 }
0x1039   :  { %2819 = vmatpush1.bf16.msra.mxu1 %v5266_v11 }
0x103a   :  { %2865 = vmatprep.subr.bf16.mxu1 %v5272_v1 }
0x10ff   :  { %v2715_v28 = vpop.f32.mrb[112].mxu1 }
0x1100   :  { %v2717_v42 = vpop.f32.mrb[113].mxu1  ;;  %v2716_v4 = vadd.f32 %v2715_v28, %v2648_v0 }
0x1101   :  { %v2718_v30 = vadd.f32 %v2717_v42, %v2648_v0  ;;  %v2719_v35 = vpop.f32.mrb[114].mxu1 }
0x1102   :  { %v2720_v33 = vadd.f32 %v2719_v35, %v2653_v52  ;;  %v2721_v32 = vpop.f32.mrb[115].mxu1  ;;  %v5568_v11 = vadd.f32 %v2716_v4, %v5285_v18  ;;  %v4202_v18 = vld [vmem:[%s5777_s2 + $0x10] ss:$24 sps:$4 sm:$0xff]  }
0x1103   :  { %v2722_v37 = vadd.f32 %v2721_v32, %v2653_v52  ;;  %v5562_v25 = vadd.f32 %v2718_v30, %v5279_v21 }
0x1104   :  { %v5559_v63 = vadd.f32 %v2720_v33, %v5276_v60  ;;  %v2663_v60 = vpop.permute.xlu1 %2662 }
0x1105   :  { %v5565_v48 = vadd.f32 %v2722_v37, %v5282_v13 }
0x1106   :  { %v2742_v38 = vpack.c.bf16 %v5559_v63, %v5568_v11 }
0x1107   :  { %v2725_v1 = vpop.f32.mrb[116].mxu1  ;;  %v2743_v6 = vpack.c.bf16 %v5565_v48, %v5562_v25 }
0x1108   :  { %v2727_v58 = vpop.f32.mrb[117].mxu1  ;;  %v2726_v21 = vadd.f32 %v2725_v1, %v2658_v43 }
0x1109   :  { %v2728_v24 = vadd.f32 %v2727_v58, %v2658_v43  ;;  %v2729_v31 = vpop.f32.mrb[118].mxu1  ;;  %2778 = vmatprep.mubr.bf16.mxu0 %v2743_v6 }
0x110a   :  { %v2730_v15 = vadd.f32 %v2729_v31, %v2663_v60  ;;  %v2731_v13 = vpop.f32.mrb[119].mxu1  ;;  %2779 = vmatmul.mubr.bf16.vlgmr.msra.gmra.mrb[120].mxu0 %v2742_v38  ;;  %v5590_v26 = vadd.f32 %v2726_v21, %v5303_v16 }
0x110b   :  { %v2732_v34 = vadd.f32 %v2731_v13, %v2663_v60  ;;  %2919 = vmatpush1.bf16.msra.mxu0 %v4202_v18  ;;  %v5584_v2 = vadd.f32 %v2728_v24, %v5297_v10 }
0x110c   :  { %v5578_v41 = vadd.f32 %v2730_v15, %v5293_v3  ;;  %2920 = vmatprep.subr.bf16.mxu0 %v4203_v57 }
0x110d   :  { %v5587_v40 = vadd.f32 %v2732_v34, %v5300_v39 }
0x110e   :  { %v2744_v10 = vpack.c.bf16 %v5578_v41, %v5590_v26 }
0x110f   :  { %2921 = vmatpush1.bf16.msra.mxu0 %v4204_v61  ;;  %v2745_v3 = vpack.c.bf16 %v5587_v40, %v5584_v2 }
0x1110   :  { %2922 = vmatprep.subr.bf16.mxu0 %v5311_v20  ;;  %v3777_v20 = vld [vmem:[%s5778_s3 + $0x60] sm:$0xff] }
0x1111   :  { %2786 = vmatprep.mubr.bf16.mxu0 %v2745_v3 }
0x1112   :  { %2787 = vmatmul.mubr.bf16.gmra.mrb[124].mxu0 %v2744_v10 }
0x1113   :  { %2923 = vmatpush1.bf16.msra.mxu0 %v5319_v44  ;;  %2950 = vmatprep.mubr.bf16.mxu0 %v5807_v54  ;;  %v3778_v44 = vld [vmem:[%s5778_s3 + $0x68] sm:$0xff] }
0x1114   :  { %2924 = vmatprep.subr.bf16.mxu0 %v5326_v51 }
0x1117   :  { %2925 = vmatpush1.bf16.msra.mxu0 %v5332_v36 }
0x1118   :  { %3268 = vmatprep.subr.bf16.mxu0 %v2743_v6 }
0x11dd   :  { %v3943_v39 = vpop.f32.mrb[120].mxu0 }
0x11de   :  { %v3944_v16 = vpop.f32.mrb[121].mxu0 }
0x11df   :  { %v3945_v55 = vadd.f32 %v3944_v16, %v3943_v39  ;;  %v3946_v12 = vpop.f32.mrb[122].mxu0 }
0x11e0   :  { %v3947_v49 = vpop.f32.mrb[123].mxu0 }
0x11e1   :  { %v3948_v17 = vadd.f32 %v3947_v49, %v3946_v12  ;;  %v2800_v50 = vmul.f32 %v3945_v55, %v3777_v20  ;;  %v4075_v49 = vld [vmem:[%s5779_s4 + $0x60] sm:$0xff]  }
0x11e3   :  { %v2801_v46 = vmul.f32 %v3948_v17, %v3778_v44  ;;  %v4076_v44 = vld [vmem:[%s5779_s4 + $0x68] sm:$0xff]   ;;  %v4077_v17 = vld [vmem:[%s5779_s4 + $0x70] sm:$0xff]  }
0x11e5   :  { %v2804_v51 = vpack.c.bf16 %v2801_v46, %v2800_v50  ;;  %v3949_v22 = vpop.f32.mrb[124].mxu0  ;;  %v4078_v50 = vld [vmem:[%s5779_s4 + $0x78] sm:$0xff]  }
0x11e6   :  { %v3950_v36 = vpop.f32.mrb[125].mxu0 }
0x11e7   :  { %v3951_v19 = vadd.f32 %v3950_v36, %v3949_v22  ;;  %v3952_v7 = vpop.f32.mrb[126].mxu0  ;;  %3781 = vmatmul.mubr.msk.bf16.vlgmr.msra.gmra.mrb[120].mxu1 %vm383_vm0, %v2804_v51  ;;  %3785 = vmatmul.mubr.msk.bf16.vlgmr.msra.gmra.mrb[128].mxu0 %vm383_vm0, %v2804_v51 }
0x11e8   :  { %3269 = vmatpush1.bf16.msra.mxu0 %v2742_v38  ;;  %v3953_v5 = vpop.f32.mrb[127].mxu0  ;;  %2866 = vmatpush1.bf16.msra.mxu1 %v5352_v8  ;;  %v5818_v8 = vld [vmem:[#allocation13_spill] sm:$0xff] }
0x11e9   :  { %v3954_v56 = vadd.f32 %v3953_v5, %v3952_v7  ;;  %3270 = vmatprep.subr.bf16.mxu0 %v2745_v3  ;;  %2867 = vmatprep.subr.bf16.mxu1 %v5358_v29  ;;  %v2802_v9 = vmul.f32 %v3951_v19, %v3779_v53  ;;  %v5819_v29 = vld [vmem:[#allocation14_spill] sm:$0xff] }
0x11ea   :  { %2854 = vmatprep.mubr.bf16.mxu1 %v5807_v54  ;;  %2960 = vmatprep.mubr.bf16.mxu0 %v5807_v54 }
0x11eb   :  { %v2803_v59 = vmul.f32 %v3954_v56, %v3780_v62 }
0x11ec   :  { %3271 = vmatpush1.bf16.msra.mxu0 %v2744_v10  ;;  %2868 = vmatpush1.bf16.msra.mxu1 %v5366_v27 }
0x11ed   :  { %v2805_v45 = vpack.c.bf16 %v2803_v59, %v2802_v9  ;;  %2869 = vmatprep.subr.bf16.mxu1 %v5372_v23 }
0x11ef   :  { %3782 = vmatmul.mubr.msk.bf16.gmra.mrb[124].mxu1 %vm383_vm0, %v2805_v45  ;;  %3786 = vmatmul.mubr.msk.bf16.gmra.mrb[132].mxu0 %vm383_vm0, %v2805_v45 }
0x11f0   :  { %2870 = vmatpush1.bf16.msra.mxu1 %v5380_v47  ;;  %2897 = vmatprep.mubr.bf16.mxu1 %v5807_v54 }
0x11f1   :  { %2871 = vmatprep.subr.bf16.mxu1 %v5818_v8  ;;  %3300 = vmatprep.mubr.bf16.mxu0 %v5807_v54 }
0x11f4   :  { %2872 = vmatpush1.bf16.msra.mxu1 %v5819_v29 }
0x11f7   :  { %3783 = vmatmul.mubr.msk.bf16.vlgmr.msra.gmra.mrb[128].mxu1 %vm383_vm0, %v2804_v51 }
0x11f8   :  { %2907 = vmatprep.mubr.bf16.mxu1 %v5807_v54 }
0x11ff   :  { %3784 = vmatmul.mubr.msk.bf16.gmra.mrb[132].mxu1 %vm383_vm0, %v2805_v45 }
0x1200   :  { %3052 = vmatprep.mubr.bf16.mxu1 %v5807_v54 }
0x12ba   :  { %v2846_v27 = vpop.f32.mrb[120].mxu1  ;;  %v5635_v23 = vpop.f32.mrb[128].mxu0 }
0x12bb   :  { %v2848_v47 = vpop.f32.mrb[121].mxu1  ;;  %v5637_v14 = vpop.f32.mrb[129].mxu0 }
0x12bc   :  { %v2850_v28 = vpop.f32.mrb[122].mxu1  ;;  %v5639_v0 = vpop.f32.mrb[130].mxu0 }
0x12bd   :  { %v3214_v42 = vpack.c.bf16 %v2850_v28, %v2846_v27  ;;  %v2982_v52 = vpack.c.bf16 %v5639_v0, %v5635_v23  ;;  %v2852_v30 = vpop.f32.mrb[123].mxu1  ;;  %v5643_v35 = vpop.f32.mrb[131].mxu0 }
0x12be   :  { %v3215_v4 = vpack.c.bf16 %v2852_v30, %v2848_v47  ;;  %v2983_v33 = vpack.c.bf16 %v5643_v35, %v5637_v14 }
0x12c0   :  { %3272 = vmatprep.subr.bf16.mxu0 %v3215_v4 }
0x12c1   :  { %3273 = vmatpush1.bf16.msra.mxu0 %v3214_v42 }
0x12c2   :  { %v2856_v32 = vpop.f32.mrb[124].mxu1  ;;  %v5647_v37 = vpop.f32.mrb[132].mxu0 }
0x12c3   :  { %v2858_v1 = vpop.f32.mrb[125].mxu1  ;;  %v5649_v6 = vpop.f32.mrb[133].mxu0 }
0x12c4   :  { %v2860_v43 = vpop.f32.mrb[126].mxu1  ;;  %v5651_v38 = vpop.f32.mrb[134].mxu0 }
0x12c5   :  { %v3216_v58 = vpack.c.bf16 %v2860_v43, %v2856_v32  ;;  %v2986_v60 = vpack.c.bf16 %v5651_v38, %v5647_v37  ;;  %v2862_v24 = vpop.f32.mrb[127].mxu1  ;;  %v5655_v31 = vpop.f32.mrb[135].mxu0 }
0x12c6   :  { %v3217_v21 = vpack.c.bf16 %v2862_v24, %v2858_v1  ;;  %v2987_v15 = vpack.c.bf16 %v5655_v31, %v5649_v6 }
0x12c8   :  { %3274 = vmatprep.subr.bf16.mxu0 %v3217_v21 }
0x12c9   :  { %3275 = vmatpush1.bf16.msra.mxu0 %v3216_v58 }
0x12ca   :  { %v5659_v13 = vpop.f32.mrb[128].mxu1 }
0x12cb   :  { %v5661_v34 = vpop.f32.mrb[129].mxu1 }
0x12cc   :  { %v5663_v18 = vpop.f32.mrb[130].mxu1 }
0x12cd   :  { %v2980_v57 = vpack.c.bf16 %v5663_v18, %v5659_v13  ;;  %v5667_v61 = vpop.f32.mrb[131].mxu1 }
0x12ce   :  { %v2981_v3 = vpack.c.bf16 %v5667_v61, %v5661_v34 }
0x12d0   :  { %3020 = vmatprep.subr.bf16.mxu1 %v2981_v3 }
0x12d1   :  { %3021 = vmatpush1.bf16.msra.mxu1 %v2980_v57 }
0x12d2   :  { %v5671_v10 = vpop.f32.mrb[132].mxu1 }
0x12d3   :  { %v5673_v39 = vpop.f32.mrb[133].mxu1 }
0x12d4   :  { %v5675_v16 = vpop.f32.mrb[134].mxu1 }
0x12d5   :  { %v2984_v55 = vpack.c.bf16 %v5675_v16, %v5671_v10  ;;  %v5679_v12 = vpop.f32.mrb[135].mxu1 }
0x12d6   :  { %v2985_v20 = vpack.c.bf16 %v5679_v12, %v5673_v39 }
0x12d8   :  { %3022 = vmatprep.subr.bf16.mxu1 %v2985_v20 }
0x12d9   :  { %3023 = vmatpush1.bf16.msra.mxu1 %v2984_v55 }
0x12da   :  { %3093 = vmatprep.subr.bf16.mxu1 %v2983_v33 }
0x12dc   :  { %3799 = vmatmul.mubr.msk.bf16.vlgmr.msra.gmra.mrb[136].mxu1 %vm585_vm1, %v4075_v49 }
0x12dd   :  { %3094 = vmatpush1.bf16.msra.mxu1 %v2982_v52  ;;  %3062 = vmatprep.mubr.bf16.mxu1 %v5807_v54 }
0x12de   :  { %3095 = vmatprep.subr.bf16.mxu1 %v2987_v15 }
0x12e1   :  { %3096 = vmatpush1.bf16.msra.mxu1 %v2986_v60 }
0x12e4   :  { %3800 = vmatmul.mubr.msk.bf16.gmra.mrb[140].mxu1 %vm585_vm1, %v4076_v44 }
0x12e5   :  { %3072 = vmatprep.mubr.bf16.mxu1 %v5807_v54 }
0x12ec   :  { %3801 = vmatmul.mubr.msk.bf16.gmra.mrb[144].mxu1 %vm585_vm1, %v4077_v17 }
0x12ed   :  { %3082 = vmatprep.mubr.bf16.mxu1 %v5807_v54 }
0x12f4   :  { %3802 = vmatmul.mubr.msk.bf16.gmra.mrb[148].mxu1 %vm585_vm1, %v4078_v50 }
0x12f5   :  { %3125 = vmatprep.mubr.bf16.mxu1 %v5807_v54 }
0x12fc   :  { %3803 = vmatmul.mubr.msk.bf16.vlgmr.msra.gmra.mrb[144].mxu1 %vm585_vm1, %v4075_v49 }
0x12fd   :  { %3135 = vmatprep.mubr.bf16.mxu1 %v5807_v54 }
0x1304   :  { %3804 = vmatmul.mubr.msk.bf16.gmra.mrb[148].mxu1 %vm585_vm1, %v4076_v44 }
0x1305   :  { %3145 = vmatprep.mubr.bf16.mxu1 %v5807_v54 }
0x130c   :  { %3805 = vmatmul.mubr.msk.bf16.gmra.mrb[152].mxu1 %vm585_vm1, %v4077_v17 }
0x130d   :  { %3155 = vmatprep.mubr.bf16.mxu1 %v5807_v54 }
0x1314   :  { %3806 = vmatmul.mubr.msk.bf16.gmra.mrb[156].mxu1 %vm585_vm1, %v4078_v50 }
0x13af   :  { %v3054_v46 = vpop.f32.mrb[136].mxu1 }
0x13b0   :  { %v3056_v51 = vpop.f32.mrb[137].mxu1 }
0x13b1   :  { %v3058_v22 = vpop.f32.mrb[138].mxu1 }
0x13b2   :  { %v3060_v36 = vpop.f32.mrb[139].mxu1 }
0x13b7   :  { %v3064_v19 = vpop.f32.mrb[140].mxu1 }
0x13b8   :  { %v3066_v7 = vpop.f32.mrb[141].mxu1 }
0x13b9   :  { %v3068_v53 = vpop.f32.mrb[142].mxu1 }
0x13ba   :  { %v3070_v5 = vpop.f32.mrb[143].mxu1 }
0x13cf   :  { %v3127_v62 = vpop.f32.mrb[144].mxu1 }
0x13d0   :  { %v3190_v56 = vmul.f32 %v3127_v62, %v5635_v23  ;;  %v3129_v9 = vpop.f32.mrb[145].mxu1 }
0x13d1   :  { %v3191_v59 = vmul.f32 %v3129_v9, %v5637_v14  ;;  %v3131_v45 = vpop.f32.mrb[146].mxu1 }
0x13d2   :  { %v3192_v8 = vmul.f32 %v3131_v45, %v5639_v0  ;;  %v3133_v29 = vpop.f32.mrb[147].mxu1 }
0x13d3   :  { %v3193_v27 = vmul.f32 %v3133_v29, %v5643_v35  ;;  %v4080_v29 = vld [vmem:[%s5780_s5 + $0x38] sm:$0xff]  }
0x13d7   :  { %v3137_v47 = vpop.f32.mrb[148].mxu1 }
0x13d8   :  { %v3194_v28 = vmul.f32 %v3137_v47, %v5647_v37  ;;  %v3139_v42 = vpop.f32.mrb[149].mxu1 }
0x13d9   :  { %v3195_v52 = vmul.f32 %v3139_v42, %v5649_v6  ;;  %v3141_v30 = vpop.f32.mrb[150].mxu1 }
0x13da   :  { %v3196_v4 = vmul.f32 %v3141_v30, %v5651_v38  ;;  %v3143_v33 = vpop.f32.mrb[151].mxu1 }
0x13db   :  { %v3197_v23 = vmul.f32 %v3143_v33, %v5655_v31 }
0x13df   :  { %v3147_v32 = vpop.f32.mrb[152].mxu1 }
0x13e0   :  { %v3166_v14 = vsub.f32 %v3054_v46, %v3147_v32  ;;  %v3149_v1 = vpop.f32.mrb[153].mxu1 }
0x13e1   :  { %v3167_v43 = vsub.f32 %v3056_v51, %v3149_v1  ;;  %v3151_v0 = vpop.f32.mrb[154].mxu1 }
0x13e2   :  { %v3182_v58 = vmul.f32 %v3166_v14, %v5659_v13  ;;  %v3168_v35 = vsub.f32 %v3058_v22, %v3151_v0  ;;  %v3153_v60 = vpop.f32.mrb[155].mxu1 }
0x13e3   :  { %v3183_v37 = vmul.f32 %v3167_v43, %v5661_v34  ;;  %v3169_v24 = vsub.f32 %v3060_v36, %v3153_v60 }
0x13e4   :  { %v3198_v21 = vadd.f32 %v3190_v56, %v3182_v58  ;;  %v3184_v6 = vmul.f32 %v3168_v35, %v5663_v18 }
0x13e5   :  { %v3199_v15 = vadd.f32 %v3191_v59, %v3183_v37  ;;  %v3185_v38 = vmul.f32 %v3169_v24, %v5667_v61 }
0x13e6   :  { %4133 = vtanh.f32 %v3198_v21  ;;  %v3200_v31 = vadd.f32 %v3192_v8, %v3184_v6  ;;  %v4079_v8 = vld [vmem:[%s5780_s5 + $0x30] sm:$0xff]  }
0x13e7   :  { %4135 = vtanh.f32 %v3199_v15  ;;  %v3201_v57 = vadd.f32 %v3193_v27, %v3185_v38  ;;  %v3157_v3 = vpop.f32.mrb[156].mxu1  ;;  %v3235_v27 = vpop.permute.xlu0 %3234 }
0x13e8   :  { %4137 = vtanh.f32 %v3200_v31  ;;  %v3170_v55 = vsub.f32 %v3064_v19, %v3157_v3  ;;  %v3159_v20 = vpop.f32.mrb[157].mxu1 }
0x13e9   :  { %4139 = vtanh.f32 %v3201_v57  ;;  %v3171_v13 = vsub.f32 %v3066_v7, %v3159_v20  ;;  %v3161_v49 = vpop.f32.mrb[158].mxu1 }
0x13ea   :  { %v3186_v34 = vmul.f32 %v3170_v55, %v5671_v10  ;;  %v3172_v44 = vsub.f32 %v3068_v53, %v3161_v49  ;;  %v3163_v17 = vpop.f32.mrb[159].mxu1 }
0x13eb   :  { %v3187_v18 = vmul.f32 %v3171_v13, %v5673_v39  ;;  %v3173_v50 = vsub.f32 %v3070_v5, %v3163_v17  ;;  %v3245_v35 = vpop.permute.xlu0 %3244  ;;  %v4081_v17 = vld [vmem:[%s5782_s7 + $0x30] sm:$0xff]  }
0x13ec   :  { %v3202_v46 = vadd.f32 %v3194_v28, %v3186_v34  ;;  %v3188_v61 = vmul.f32 %v3172_v44, %v5675_v16 }
0x13ed   :  { %v3203_v51 = vadd.f32 %v3195_v52, %v3187_v18  ;;  %v3189_v22 = vmul.f32 %v3173_v50, %v5679_v12  ;;  %v3240_v52 = vpop.permute.xlu1 %3239  ;;  %v4082_v18 = vld [vmem:[%s5782_s7 + $0x38] sm:$0xff]  }
0x13ee   :  { %4141 = vtanh.f32 %v3202_v46  ;;  %v3204_v36 = vadd.f32 %v3196_v4, %v3188_v61 }
0x13ef   :  { %4143 = vtanh.f32 %v3203_v51  ;;  %v3205_v19 = vadd.f32 %v3197_v23, %v3189_v22  ;;  %v3346_v50 = vpop.permute.xlu0 %3345 }
0x13f0   :  { %v4134_v62 = vpop.eup %4133  ;;  %4145 = vtanh.f32 %v3204_v36 }
0x13f1   :  { %v4136_v7 = vpop.eup %4135  ;;  %4147 = vtanh.f32 %v3205_v19  ;;  %v3250_v6 = vpop.permute.xlu1 %3249 }
0x13f2   :  { %v4138_v10 = vpop.eup %4137 }
0x13f3   :  { %v4140_v53 = vpop.eup %4139  ;;  %v3218_v56 = vpack.c.bf16 %v4138_v10, %v4134_v62 }
0x13f4   :  { %v3219_v9 = vpack.c.bf16 %v4140_v53, %v4136_v7 }
0x13f5   :  { %v3351_v22 = vpop.permute.xlu1 %3350 }
0x13f6   :  { %3276 = vmatprep.subr.bf16.mxu0 %v3219_v9 }
0x13f7   :  { %3277 = vmatpush1.bf16.msra.mxu0 %v3218_v56 }
0x13f8   :  { %v4142_v39 = vpop.eup %4141 }
0x13f9   :  { %v4144_v5 = vpop.eup %4143 }
0x13fa   :  { %v4146_v16 = vpop.eup %4145 }
0x13fb   :  { %v4148_v59 = vpop.eup %4147  ;;  %v3220_v45 = vpack.c.bf16 %v4146_v16, %v4142_v39  ;;  %v3356_v16 = vpop.permute.xlu0 %3355 }
0x13fc   :  { %v3221_v12 = vpack.c.bf16 %v4148_v59, %v4144_v5 }
0x13fe   :  { %3278 = vmatprep.subr.bf16.mxu0 %v3221_v12 }
0x13ff   :  { %3279 = vmatpush1.bf16.msra.mxu0 %v3220_v45 }
0x1402   :  { %3817 = vmatmul.mubr.msk.bf16.vlgmr.msra.gmra.mrb[136].mxu0 %vm838_vm2, %v4079_v8 }
0x1403   :  { %3310 = vmatprep.mubr.bf16.mxu0 %v5807_v54 }
0x140a   :  { %3818 = vmatmul.mubr.msk.bf16.gmra.mrb[140].mxu0 %vm838_vm2, %v4080_v29  ;;  %v3361_v29 = vpop.permute.xlu1 %3360 }
0x140b   :  { %3411 = vmatprep.mubr.bf16.mxu0 %v5807_v54 }
0x14d5   :  { %v3302_v47 = vpop.f32.mrb[136].mxu0 }
0x14d6   :  { %v3303_v28 = vadd.f32 %v3302_v47, %v3235_v27  ;;  %v3304_v42 = vpop.f32.mrb[137].mxu0 }
0x14d7   :  { %v3305_v30 = vadd.f32 %v3304_v42, %v3235_v27  ;;  %v3306_v4 = vpop.f32.mrb[138].mxu0 }
0x14d8   :  { %v3307_v33 = vadd.f32 %v3306_v4, %v3240_v52  ;;  %v3308_v23 = vpop.f32.mrb[139].mxu0  ;;  %v3321_v14 = vmax.f32 %v3303_v28, 0.0 }
0x14d9   :  { %v3309_v32 = vadd.f32 %v3308_v23, %v3240_v52  ;;  %v3322_v43 = vmax.f32 %v3305_v30, 0.0 }
0x14da   :  { %v3323_v1 = vmax.f32 %v3307_v33, 0.0 }
0x14db   :  { %v3324_v0 = vmax.f32 %v3309_v32, 0.0 }
0x14dc   :  { %v3334_v58 = vpack.c.bf16 %v3323_v1, %v3321_v14  ;;  %v4083_v1 = vld [vmem:[%s5784_s9 + $0x30] sm:$0xff]  }
0x14dd   :  { %v3335_v60 = vpack.c.bf16 %v3324_v0, %v3322_v43  ;;  %v3312_v37 = vpop.f32.mrb[140].mxu0  ;;  %v4084_v43 = vld [vmem:[%s5784_s9 + $0x38] sm:$0xff]   ;;  %v3457_v0 = vpop.permute.xlu0 %3456  ;;  %s4230_s9 = smov [#allocation2]  }
0x14de   :  { %v3313_v24 = vadd.f32 %v3312_v37, %v3245_v35  ;;  %v3314_v21 = vpop.f32.mrb[141].mxu0  ;;  %v3462_v37 = vpop.permute.xlu1 %3461  ;;  %s3564_s27 = sshll.u32 %s4230_s9, 4  ;;  %s3565_s27 = int_to_ptr.vmem [resolvable:$true] %s3564_s27 }
0x14df   :  { %v3315_v15 = vadd.f32 %v3314_v21, %v3245_v35  ;;  %v3316_v38 = vpop.f32.mrb[142].mxu0  ;;  %3379 = vmatprep.subr.bf16.mxu0 %v3335_v60  ;;  %s4205_s2 = scalar_lea.vmem %s3565_s27, 1024  ;;  %p4210_p1 = scmp.lt.s32.totalorder %s3565_s27, %s3565_s27 }
0x14e0   :  { %v3317_v31 = vadd.f32 %v3316_v38, %v3250_v6  ;;  %v3318_v57 = vpop.f32.mrb[143].mxu0  ;;  %3380 = vmatpush1.bf16.msra.mxu0 %v3334_v58  ;;  %v3325_v55 = vmax.f32 %v3313_v24, 0.0  ;;  %p4206_p0 = scmp.ne.s32.totalorder %s3565_s27, %s4205_s2  ;;  %p4211_p2 = scmp.lt.s32.totalorder %s4205_s2, %s4205_s2 }
0x14e1   :  { %v3319_v3 = vadd.f32 %v3318_v57, %v3250_v6  ;;  %v3326_v13 = vmax.f32 %v3315_v15, 0.0 }
0x14e2   :  { %v3327_v20 = vmax.f32 %v3317_v31, 0.0  ;;  %p4212_p3 = por %p4211_p2, %p4210_p1 }
0x14e3   :  { %v3328_v49 = vmax.f32 %v3319_v3, 0.0 }
0x14e4   :  { %v3336_v34 = vpack.c.bf16 %v3327_v20, %v3325_v55  ;;  %v3467_v55 = vpop.permute.xlu0 %3466  ;;  %p4213_p4 = pnand %p4212_p3, %p4206_p0 }
0x14e5   :  { %v3337_v44 = vpack.c.bf16 %v3328_v49, %v3326_v13 }
0x14e7   :  { %3381 = vmatprep.subr.bf16.mxu0 %v3337_v44 }
0x14e8   :  { %3382 = vmatpush1.bf16.msra.mxu0 %v3336_v34  ;;  %v3472_v34 = vpop.permute.xlu1 %3471 }
0x14eb   :  { %3829 = vmatmul.mubr.msk.bf16.vlgmr.msra.gmra.mrb[144].mxu0 %vm585_vm1, %v4081_v17 }
0x14ec   :  { %3421 = vmatprep.mubr.bf16.mxu0 %v5807_v54 }
0x14f3   :  { %3830 = vmatmul.mubr.msk.bf16.gmra.mrb[148].mxu0 %vm585_vm1, %v4082_v18 }
0x14f4   :  { %3522 = vmatprep.mubr.bf16.mxu0 %v5807_v54 }
0x15be   :  { %v3413_v46 = vpop.f32.mrb[144].mxu0 }
0x15bf   :  { %v3414_v61 = vadd.f32 %v3413_v46, %v3346_v50  ;;  %v3415_v51 = vpop.f32.mrb[145].mxu0 }
0x15c0   :  { %v3416_v36 = vadd.f32 %v3415_v51, %v3346_v50  ;;  %v3417_v19 = vpop.f32.mrb[146].mxu0 }
0x15c1   :  { %v3418_v62 = vadd.f32 %v3417_v19, %v3351_v22  ;;  %v3419_v7 = vpop.f32.mrb[147].mxu0  ;;  %v3432_v53 = vmax.f32 %v3414_v61, 0.0 }
0x15c2   :  { %v3420_v10 = vadd.f32 %v3419_v7, %v3351_v22  ;;  %v3433_v9 = vmax.f32 %v3416_v36, 0.0 }
0x15c3   :  { %v3434_v56 = vmax.f32 %v3418_v62, 0.0 }
0x15c4   :  { %v3435_v39 = vmax.f32 %v3420_v10, 0.0 }
0x15c5   :  { %v3445_v5 = vpack.c.bf16 %v3434_v56, %v3432_v53 }
0x15c6   :  { %v3446_v59 = vpack.c.bf16 %v3435_v39, %v3433_v9  ;;  %v3423_v45 = vpop.f32.mrb[148].mxu0 }
0x15c7   :  { %v3424_v12 = vadd.f32 %v3423_v45, %v3356_v16  ;;  %v3425_v8 = vpop.f32.mrb[149].mxu0 }
0x15c8   :  { %v3426_v27 = vadd.f32 %v3425_v8, %v3356_v16  ;;  %v3427_v47 = vpop.f32.mrb[150].mxu0  ;;  %3490 = vmatprep.subr.bf16.mxu0 %v3446_v59 }
0x15c9   :  { %v3428_v28 = vadd.f32 %v3427_v47, %v3361_v29  ;;  %v3429_v42 = vpop.f32.mrb[151].mxu0  ;;  %3491 = vmatpush1.bf16.msra.mxu0 %v3445_v5  ;;  %v3436_v30 = vmax.f32 %v3424_v12, 0.0 }
0x15ca   :  { %v3430_v52 = vadd.f32 %v3429_v42, %v3361_v29  ;;  %v3437_v33 = vmax.f32 %v3426_v27, 0.0 }
0x15cb   :  { %v3438_v4 = vmax.f32 %v3428_v28, 0.0 }
0x15cc   :  { %v3439_v23 = vmax.f32 %v3430_v52, 0.0 }
0x15cd   :  { %v3447_v32 = vpack.c.bf16 %v3438_v4, %v3436_v30 }
0x15ce   :  { %v3448_v14 = vpack.c.bf16 %v3439_v23, %v3437_v33 }
0x15d0   :  { %3492 = vmatprep.subr.bf16.mxu0 %v3448_v14 }
0x15d1   :  { %3493 = vmatpush1.bf16.msra.mxu0 %v3447_v32 }
0x15d4   :  { %3841 = vmatmul.mubr.msk.bf16.vlgmr.msra.gmra.mrb[152].mxu0 %vm585_vm1, %v4083_v1 }
0x15d5   :  { %3532 = vmatprep.mubr.bf16.mxu0 %v5807_v54 }
0x15dc   :  { %3842 = vmatmul.mubr.msk.bf16.gmra.mrb[156].mxu0 %vm585_vm1, %v4084_v43 }
0x16a7   :  { %v3524_v58 = vpop.f32.mrb[152].mxu0 }
0x16a8   :  { %v3525_v35 = vadd.f32 %v3524_v58, %v3457_v0  ;;  %v3526_v60 = vpop.f32.mrb[153].mxu0 }
0x16a9   :  { %v3527_v24 = vadd.f32 %v3526_v60, %v3457_v0  ;;  %v3528_v21 = vpop.f32.mrb[154].mxu0 }
0x16aa   :  { %v3543_v6 = vadd.f32 %v3525_v35, %v5568_v11  ;;  %v3529_v15 = vadd.f32 %v3528_v21, %v3462_v37  ;;  %v3530_v38 = vpop.f32.mrb[155].mxu0 }
0x16ab   :  { %v3544_v31 = vadd.f32 %v3527_v24, %v5562_v25  ;;  %v3531_v54 = vadd.f32 %v3530_v38, %v3462_v37 }
0x16ac   :  { %3551 = vst [vmem:[#allocation2] sm:$0xff] %v3543_v6  ;;  %v3545_v57 = vadd.f32 %v3529_v15, %v5559_v63 }
0x16ad   :  { %3552 = vst [vmem:[#allocation2 + $0x8] sm:$0xff] %v3544_v31  ;;  %v3546_v3 = vadd.f32 %v3531_v54, %v5565_v48 }
0x16ae   :  { %3553 = vst [vmem:[#allocation2 + $0x10] sm:$0xff] %v3545_v57 }
0x16af   :  { %3554 = vst [vmem:[#allocation2 + $0x18] sm:$0xff] %v3546_v3  ;;  %v3534_v20 = vpop.f32.mrb[156].mxu0 }
0x16b0   :  { %v3535_v13 = vadd.f32 %v3534_v20, %v3467_v55  ;;  %v3536_v49 = vpop.f32.mrb[157].mxu0 }
0x16b1   :  { %v3537_v44 = vadd.f32 %v3536_v49, %v3467_v55  ;;  %v3538_v11 = vpop.f32.mrb[158].mxu0 }
0x16b2   :  { %v3547_v17 = vadd.f32 %v3535_v13, %v5590_v26  ;;  %v3539_v18 = vadd.f32 %v3538_v11, %v3472_v34  ;;  %v3540_v25 = vpop.f32.mrb[159].mxu0 }
0x16b3   :  { %v3548_v63 = vadd.f32 %v3537_v44, %v5584_v2  ;;  %v3541_v50 = vadd.f32 %v3540_v25, %v3472_v34 }
0x16b4   :  { %3555 = vst [vmem:[#allocation2 + $0x20] sm:$0xff] %v3547_v17  ;;  %v3549_v48 = vadd.f32 %v3539_v18, %v5578_v41 }
0x16b5   :  { %3556 = vst [vmem:[#allocation2 + $0x28] sm:$0xff] %v3548_v63  ;;  %v3550_v46 = vadd.f32 %v3541_v50, %v5587_v40 }
0x16b6   :  { %3557 = vst [vmem:[#allocation2 + $0x30] sm:$0xff] %v3549_v48 }
0x16b7   :  { %3558 = vst [vmem:[#allocation2 + $0x38] sm:$0xff] %v3550_v46 }
0x16b8   :  { %4216 = shalt.err (!%p4213_p4)
}
0x16b9   :  { %s4217_s29 = scalar_lea.hbm %s5786_s11, 1024 }
0x16ba   :  { %p4218_p5 = scmp.ne.s32.totalorder %s5786_s11, %s4217_s29  ;;  %p4221_p6 = scmp.lt.u32.totalorder %s4217_s29, %s5786_s11 }
0x16bc   :  { %p4223_p7 = pnand %p4221_p6, %p4218_p5 }
0x16be   :  { %4226 = shalt.err (!%p4223_p7)
}
0x16bf   :  { %s4231_s3 = smov 256   ;;  %s4232_s10 = smov 16  }
0x16c0   :  { %3570 = dma.vmem_to_hbm [thread:$0]  %s3565_s27, 1024, %s5786_s11, [#allocation3], %s4231_s3, %s4231_s3, %s4232_s10  }
0x16c1   :  { %4227 = dma.done.wait [#allocation3], 1024  }
0x16c2   :  { %4228 = vsyncadd [#allocation3], 4294966272 }
0x16c3   :  { %3574 = vsyncpa [#allocation3], 1 }

</bundles_post_ra>
